<compile_context>
chip_gen: v6e
topology: v6e:2x2x1
jax: 0.10.0
libtpu: 0.0.40
codegen_flags: <defaults>
</compile_context>

<pallas_src>
import functools

import jax
import jax.numpy as jnp
from jax.experimental import pallas as pl
from jax.experimental.pallas import tpu as pltpu

# ---- model hyper-parameters (small, synthetic) ------------------------------
B, C, F, H, W = 2, 4, 2, 16, 16          # batch, latent channels, frames, spatial
G, CIN = 2, 3                            # guidance types, channels per guidance
DH, DT = 32, 32                          # hidden width, timestep-embedding width
L, D = 8, 32                             # text sequence length, text hidden
HW = H * W                               # 256
N = F * HW                               # 512 lanes per example
BN = B * N                               # 1024 (batch folded into lanes)
GCIN = G * CIN                           # 6
GDH = G * DH                             # 64

# ---- packed bf16 weight slab: row offsets (lane dim padded to 128) ----------
RO_W1 = 0              # (GDH, GCIN)  block-diag guidance encoder layer-1
RO_H1 = RO_W1 + GDH    # 64  (DH, GDH + C)  [w_g-folded guidance decoder | w_in^T]
RO_Q = RO_H1 + DH      # 96  (DH, DH)  wq^T * DH**-0.5
RO_KV = RO_Q + DH      # 128 (D, 2*DH) [wk | wv]
RO_O = RO_KV + D       # 160 (DH, DH)  wo^T
RO_OUT = RO_O + DH     # 192 (C, DH)   w_out^T          (region padded to 16 rows)
RO_R1 = RO_OUT + 16    # 208 (DH, C)   wr1^T
RO_RW2 = RO_R1 + DH    # 240 (C, DH)   w_out^T @ wr2^T  (region padded to 16 rows)
W_ROWS = RO_RW2 + 16   # 256
W_LANES = 128

# ---- packed f32 constant-bias slab: row offsets ------------------------------
FO_B1 = 0              # (GDH, 1) guidance encoder bias
FO_BOUT = FO_B1 + GDH  # 64 (C, 1) output bias      (padded to 8 rows)
FO_BR1 = FO_BOUT + 8   # 72 (DH, 1) reference-proj bias
FB_ROWS = FO_BR1 + DH  # 104


# ---------------------------------------------------------------------------
# Fused kernel body: guidance encoders + simplified denoising core (+ ref path)
# ---------------------------------------------------------------------------
def _mgp_kernel(act_ref, text_ref, bias_ref, w_ref, fb_ref, out_ref, *, use_ref):
    f32, bf16 = jnp.float32, jnp.bfloat16

    x = act_ref[0:C, :]                                     # (C, BN)     bf16
    cond = act_ref[C:C + GCIN, :]                           # (GCIN, BN)  bf16

    # --- fused guidance encoders: block-diagonal 1x1 conv -> SiLU (one dot) --
    w1 = w_ref[RO_W1:RO_W1 + GDH, 0:GCIN]                   # (GDH, GCIN)
    b1 = fb_ref[FO_B1:FO_B1 + GDH, :]                       # (GDH, 1) f32
    gh = jnp.dot(w1, cond, preferred_element_type=f32) + b1
    gh = gh * jax.nn.sigmoid(gh)                            # SiLU (f32)

    # --- merged conv_in + guidance projection: single dot over [silu_gh ; x] -
    # (gh rows first so the bf16 sublane-concat offsets are 16-row aligned)
    w_h1 = w_ref[RO_H1:RO_H1 + DH, 0:GDH + C]               # (DH, GDH+C)
    xin = jnp.concatenate([gh.astype(bf16), x], axis=0)     # (GDH+C, BN)
    h1_pre = jnp.dot(w_h1, xin, preferred_element_type=f32)  # (DH, BN)

    # --- shared small operands -----------------------------------------------
    bias = bias_ref[...]                                    # (DH, B) f32
    wq = w_ref[RO_Q:RO_Q + DH, 0:DH]                        # attn scale folded
    wkv = w_ref[RO_KV:RO_KV + D, 0:2 * DH]
    wo = w_ref[RO_O:RO_O + DH, 0:DH]
    w_out = w_ref[RO_OUT:RO_OUT + C, 0:DH]
    b_out = fb_ref[FO_BOUT:FO_BOUT + C, :]                  # (C, 1) f32

    # text K/V for both examples in a single dot
    kv = jnp.dot(text_ref[...], wkv, preferred_element_type=f32)   # (B*L, 2*DH)

    out_parts = []
    for b in range(B):                                      # static unroll, B=2
        # per-example 512-lane half: bias add + SiLU
        h1 = h1_pre[:, b * N:(b + 1) * N] + bias[:, b:b + 1]
        h1 = h1 * jax.nn.sigmoid(h1)                        # (DH, N) f32
        h1b = h1.astype(bf16)

        # cross-attention over this example's text embeds (softmax over L)
        q = jnp.dot(wq, h1b, preferred_element_type=f32)    # (DH, N)
        kb = kv[b * L:(b + 1) * L, 0:DH]                    # (L, DH)
        vb = kv[b * L:(b + 1) * L, DH:2 * DH]               # (L, DH)
        s = jnp.dot(kb.astype(bf16), q.astype(bf16),
                    preferred_element_type=f32)             # (L, N)
        s = s - jnp.max(s, axis=0, keepdims=True)
        p = jnp.exp(s)
        p = p * pl.reciprocal(jnp.sum(p, axis=0, keepdims=True), approx=True)
        attn = jnp.dot(vb.T.astype(bf16), p.astype(bf16),
                       preferred_element_type=f32)          # (DH, N)
        h2 = h1 + jnp.dot(wo, attn.astype(bf16), preferred_element_type=f32)

        out_parts.append(
            jnp.dot(w_out, h2.astype(bf16), preferred_element_type=f32) + b_out)

    out = jnp.concatenate(out_parts, axis=1)                # (C, BN), 512-aligned

    if use_ref:
        # --- reference-latent injection, folded through w_out ---------------
        r = act_ref[C + GCIN:C + GCIN + C, 0:B * HW]        # (C, B*HW) bf16
        wr1 = w_ref[RO_R1:RO_R1 + DH, 0:C]
        br1 = fb_ref[FO_BR1:FO_BR1 + DH, :]
        rf = jnp.dot(wr1, r, preferred_element_type=f32) + br1
        rf = rf * jax.nn.sigmoid(rf)
        wow = w_ref[RO_RW2:RO_RW2 + C, 0:DH]                # w_out^T @ wr2^T
        rout = jnp.dot(wow, rf.astype(bf16), preferred_element_type=f32)  # (C, B*HW)
        # frame broadcast via 256-lane-aligned slices (no (DH, N) copy)
        rinj = jnp.concatenate(
            [rout[:, b * HW:(b + 1) * HW] for b in range(B) for _ in range(F)],
            axis=1)                                         # (C, BN)
        out = out + rinj

    out_ref[...] = out.astype(out_ref.dtype)


# ---------------------------------------------------------------------------
# One-time parameter packing (hoisted out of the per-call forward path)
# ---------------------------------------------------------------------------
def init_params(key):
    def nrm(k, shape, scale=0.1):
        return scale * jax.random.normal(k, shape, jnp.float32)
    ks = list(jax.random.split(key, 16))
    it = iter(ks)
    return {
        "g_w1": nrm(next(it), (G, CIN, DH)),
        "g_b1": jnp.zeros((G, 1, DH), jnp.float32),
        "g_w2": nrm(next(it), (G, DH, C)),
        "g_b2": jnp.zeros((G, 1, C), jnp.float32),
        "w_in": nrm(next(it), (C, DH)),
        "w_g": nrm(next(it), (C, DH)),
        "b_in": jnp.zeros((1, DH), jnp.float32),
        "w_t": nrm(next(it), (DT, DH)),
        "b_t": jnp.zeros((1, DH), jnp.float32),
        "wq": nrm(next(it), (DH, DH)),
        "wk": nrm(next(it), (D, DH)),
        "wv": nrm(next(it), (D, DH)),
        "wo": nrm(next(it), (DH, DH)),
        "wr1": nrm(next(it), (C, DH)),
        "br1": jnp.zeros((1, DH), jnp.float32),
        "wr2": nrm(next(it), (DH, DH)),
        "w_out": nrm(next(it), (DH, C)),
        "b_out": jnp.zeros((1, C), jnp.float32),
    }


def _block_diag(blocks):
    ncols = [blk.shape[1] for blk in blocks]
    rows = []
    for i, blk in enumerate(blocks):
        left = sum(ncols[:i])
        right = sum(ncols[i + 1:])
        rows.append(jnp.pad(blk, ((0, 0), (left, right))))
    return jnp.concatenate(rows, axis=0)


def prepare_params(params):
    """Pack every constant weight/bias into one bf16 slab + one f32 bias slab."""
    f32 = jnp.float32

    # guidance encoders -> one block-diagonal matmul pair; the sum over types
    # falls out of the concatenated second matrix; fold the denoiser's w_g in.
    w1_bd = _block_diag([params["g_w1"][g].T for g in range(G)])        # (GDH, GCIN)
    b1_cat = params["g_b1"].reshape(GDH, 1)
    w2_cat = jnp.concatenate([params["g_w2"][g].T for g in range(G)], axis=1)  # (C, GDH)
    b2_sum = params["g_b2"].sum(axis=0).reshape(C, 1)
    w2g = params["w_g"].T @ w2_cat                                      # (DH, GDH)
    bias_g = (params["w_g"].T @ b2_sum)[:, 0]                           # (DH,)

    # merged conv_in + guidance projection weight:  [w2g | w_in^T]
    w_h1 = jnp.concatenate([w2g, params["w_in"].T], axis=1)             # (DH, GDH+C)
    wq_s = params["wq"].T * (float(DH) ** -0.5)                         # scale folded
    wkv = jnp.concatenate([params["wk"], params["wv"]], axis=1)         # (D, 2*DH)
    wo_t = params["wo"].T
    w_out_t = params["w_out"].T                                         # (C, DH)
    wr1_t = params["wr1"].T                                             # (DH, C)
    w_out_wr2 = w_out_t @ params["wr2"].T                               # (C, DH)

    def put(slab, arr, r0):
        r, c = arr.shape
        return slab.at[r0:r0 + r, 0:c].set(arr)

    w_slab = jnp.zeros((W_ROWS, W_LANES), f32)
    w_slab = put(w_slab, w1_bd, RO_W1)
    w_slab = put(w_slab, w_h1, RO_H1)
    w_slab = put(w_slab, wq_s, RO_Q)
    w_slab = put(w_slab, wkv, RO_KV)
    w_slab = put(w_slab, wo_t, RO_O)
    w_slab = put(w_slab, w_out_t, RO_OUT)
    w_slab = put(w_slab, wr1_t, RO_R1)
    w_slab = put(w_slab, w_out_wr2, RO_RW2)
    w_slab = w_slab.astype(jnp.bfloat16)

    fbias = jnp.zeros((FB_ROWS, 1), f32)
    fbias = fbias.at[FO_B1:FO_B1 + GDH, :].set(b1_cat)
    fbias = fbias.at[FO_BOUT:FO_BOUT + C, :].set(params["b_out"].T)
    fbias = fbias.at[FO_BR1:FO_BR1 + DH, :].set(params["br1"].T)

    # constant part of the per-example pre-activation bias
    b_const = params["b_t"] + params["b_in"] + bias_g[None, :]          # (1, DH)

    return {"w_slab": w_slab, "fbias": fbias,
            "w_t": params["w_t"], "b_const": b_const}


def timestep_embedding(t, dim):
    half = dim // 2
    freqs = jnp.exp(-jnp.log(10000.0) * jnp.arange(half, dtype=jnp.float32) / half)
    args = t.astype(jnp.float32)[:, None] * freqs[None, :]
    return jnp.concatenate([jnp.sin(args), jnp.cos(args)], axis=-1)     # (B, dim)


# ---------------------------------------------------------------------------
# Per-call forward: activation layout plumbing + timestep bias + pallas_call
# ---------------------------------------------------------------------------
def mgp_forward(prepared, noisy_latents, timesteps, ref_image_latents,
                multi_guidance_cond, text_embeds, uncond_fwd=False):
    bf16 = jnp.bfloat16
    use_ref = not uncond_fwd

    # channels-major slabs with batch folded into the lane dim (lane = b*N + f*HW + hw)
    noisy_slab = jnp.transpose(noisy_latents.reshape(B, C, N), (1, 0, 2)).reshape(C, BN)
    cond_slab = jnp.transpose(multi_guidance_cond.reshape(B, GCIN, N),
                              (1, 0, 2)).reshape(GCIN, BN)
    act_rows = [noisy_slab, cond_slab]
    if use_ref:
        ref_slab = jnp.transpose(ref_image_latents.reshape(B, C, HW),
                                 (1, 0, 2)).reshape(C, B * HW)
        act_rows.append(jnp.pad(ref_slab, ((0, 0), (0, BN - B * HW))))
    act = jnp.concatenate(act_rows, axis=0).astype(bf16)                # (10|14, BN)

    text_slab = text_embeds.reshape(B * L, D).astype(bf16)              # (B*L, D)

    # per-example pre-activation bias: timestep proj + conv_in bias + guidance bias
    temb = timestep_embedding(timesteps, DT)                            # (B, DT)
    bias = (temb @ prepared["w_t"] + prepared["b_const"]).T             # (DH, B) f32

    kernel = functools.partial(_mgp_kernel, use_ref=use_ref)
    full2 = lambda i: (0, 0)
    n_act = act.shape[0]

    out = pl.pallas_call(
        kernel,
        out_shape=jax.ShapeDtypeStruct((C, BN), jnp.float32),
        grid_spec=pltpu.PrefetchScalarGridSpec(
            num_scalar_prefetch=0,
            grid=(1,),                                   # single fused step, no serial grid
            in_specs=[
                pl.BlockSpec((n_act, BN), full2),        # activations (per call)
                pl.BlockSpec((B * L, D), full2),         # text embeds (per call)
                pl.BlockSpec((DH, B), full2),            # per-example bias (per call)
                pl.BlockSpec((W_ROWS, W_LANES), full2),  # packed bf16 weights (prepared)
                pl.BlockSpec((FB_ROWS, 1), full2),       # packed f32 biases (prepared)
            ],
            out_specs=pl.BlockSpec((C, BN), full2),
        ),
        compiler_params=pltpu.CompilerParams(dimension_semantics=("arbitrary",)),
        cost_estimate=pl.CostEstimate(flops=11_000_000, transcendentals=130_000,
                                      bytes_accessed=110_000),
    )(act, text_slab, bias, prepared["w_slab"], prepared["fbias"])

    # (C, B*F*H*W) -> (B, C, F, H, W)
    return jnp.transpose(out.reshape(C, B, F, H, W), (1, 0, 2, 3, 4))


if __name__ == "__main__":
    key = jax.random.PRNGKey(0)
    k0, k1, k2, k3 = jax.random.split(key, 4)

    noisy_latents = jax.random.normal(k0, (B, C, F, H, W), jnp.float32)
    timesteps = jnp.array([10, 500], dtype=jnp.int32)
    ref_image_latents = jax.random.normal(k1, (B, C, H, W), jnp.float32)
    multi_guidance_cond = jax.random.normal(k2, (B, G * CIN, F, H, W), jnp.float32)
    text_embeds = jax.random.normal(k3, (B, L, D), jnp.float32)

    params = init_params(jax.random.PRNGKey(42))
    prepared = prepare_params(params)                 # one-time weight packing

    fwd = jax.jit(mgp_forward, static_argnames=("uncond_fwd",))

    out = fwd(prepared, noisy_latents, timesteps, ref_image_latents,
              multi_guidance_cond, text_embeds, uncond_fwd=False)
    jax.block_until_ready(out)
    assert out.shape == noisy_latents.shape and out.dtype == jnp.float32
    assert bool(jnp.all(jnp.isfinite(out)))

    # uncond_fwd=True branch (reference path skipped, like the torch `if`)
    out_uncond = fwd(prepared, noisy_latents, timesteps, ref_image_latents,
                     multi_guidance_cond, text_embeds, uncond_fwd=True)
    jax.block_until_ready(out_uncond)
    assert out_uncond.shape == noisy_latents.shape
    assert bool(jnp.all(jnp.isfinite(out_uncond)))

    print("KERNEL_OK")
</pallas_src>

<mosaic_0001>
module attributes {stable_mosaic.version = 11 : i64} {
  func.func @_mgp_kernel(%arg0: i32, %arg1: memref<14x1024xbf16, #tpu.memory_space<vmem>>, %arg2: memref<16x32xbf16, #tpu.memory_space<vmem>>, %arg3: memref<32x2xf32, #tpu.memory_space<vmem>>, %arg4: memref<256x128xbf16, #tpu.memory_space<vmem>>, %arg5: memref<104x1xf32, #tpu.memory_space<vmem>>, %arg6: memref<4x1024xf32, #tpu.memory_space<vmem>>) attributes {dimension_semantics = [#tpu.dimension_semantics<arbitrary>], iteration_bounds = array<i64: 1>, scalar_prefetch = 0 : i64, scratch_operands = 0 : i64, tpu.core_type = #tpu.core_type<tc>, window_params = [{pipeline_mode = #tpu.pipeline_mode<synchronous>, transform_indices = @transform_0, window_bounds = array<i64: 14, 1024>}, {pipeline_mode = #tpu.pipeline_mode<synchronous>, transform_indices = @transform_1, window_bounds = array<i64: 16, 32>}, {pipeline_mode = #tpu.pipeline_mode<synchronous>, transform_indices = @transform_2, window_bounds = array<i64: 32, 2>}, {pipeline_mode = #tpu.pipeline_mode<synchronous>, transform_indices = @transform_3, window_bounds = array<i64: 256, 128>}, {pipeline_mode = #tpu.pipeline_mode<synchronous>, transform_indices = @transform_4, window_bounds = array<i64: 104, 1>}, {pipeline_mode = #tpu.pipeline_mode<synchronous>, transform_indices = @transform_5, window_bounds = array<i64: 4, 1024>}]} {
    %c0 = arith.constant 0 : index
    %c0_0 = arith.constant 0 : index
    %0 = vector.load %arg1[%c0, %c0_0] : memref<14x1024xbf16, #tpu.memory_space<vmem>>, vector<4x1024xbf16>
    %c4 = arith.constant 4 : index
    %c0_1 = arith.constant 0 : index
    %1 = vector.load %arg1[%c4, %c0_1] : memref<14x1024xbf16, #tpu.memory_space<vmem>>, vector<6x1024xbf16>
    %c0_2 = arith.constant 0 : index
    %c0_3 = arith.constant 0 : index
    %2 = vector.load %arg4[%c0_2, %c0_3] : memref<256x128xbf16, #tpu.memory_space<vmem>>, vector<64x6xbf16>
    %c0_4 = arith.constant 0 : index
    %c0_5 = arith.constant 0 : index
    %3 = vector.load %arg5[%c0_4, %c0_5] : memref<104x1xf32, #tpu.memory_space<vmem>>, vector<64x1xf32>
    %cst = arith.constant dense<0.000000e+00> : vector<64x1024xf32>
    %4 = tpu.matmul %2, %1, %cst {dimension_numbers = #tpu.dot_dimension_numbers<[1], [0], [0], [1], [0, 0, 1, 1], [], []>} : vector<64x6xbf16>, vector<6x1024xbf16>, vector<64x1024xf32> -> vector<64x1024xf32>
    %5 = vector.broadcast %3 : vector<64x1xf32> to vector<64x1024xf32>
    %6 = arith.addf %4, %5 : vector<64x1024xf32>
    %7 = arith.negf %6 : vector<64x1024xf32>
    %8 = math.exp %7 : vector<64x1024xf32>
    %cst_6 = arith.constant 1.000000e+00 : f32
    %9 = vector.broadcast %cst_6 : f32 to vector<64x1024xf32>
    %10 = arith.addf %9, %8 : vector<64x1024xf32>
    %11 = arith.divf %9, %10 : vector<64x1024xf32>
    %12 = arith.mulf %6, %11 : vector<64x1024xf32>
    %c64 = arith.constant 64 : index
    %c0_7 = arith.constant 0 : index
    %13 = vector.load %arg4[%c64, %c0_7] : memref<256x128xbf16, #tpu.memory_space<vmem>>, vector<32x68xbf16>
    %14 = arith.truncf %12 : vector<64x1024xf32> to vector<64x1024xbf16>
    %15 = tpu.concatenate %14, %0 in 0 : vector<64x1024xbf16>, vector<4x1024xbf16> -> vector<68x1024xbf16>
    %cst_8 = arith.constant dense<0.000000e+00> : vector<32x1024xf32>
    %16 = tpu.matmul %13, %15, %cst_8 {dimension_numbers = #tpu.dot_dimension_numbers<[1], [0], [0], [1], [0, 0, 1, 1], [], []>} : vector<32x68xbf16>, vector<68x1024xbf16>, vector<32x1024xf32> -> vector<32x1024xf32>
    %c0_9 = arith.constant 0 : index
    %c0_10 = arith.constant 0 : index
    %17 = vector.load %arg3[%c0_9, %c0_10] : memref<32x2xf32, #tpu.memory_space<vmem>>, vector<32x2xf32>
    %c96 = arith.constant 96 : index
    %c0_11 = arith.constant 0 : index
    %18 = vector.load %arg4[%c96, %c0_11] : memref<256x128xbf16, #tpu.memory_space<vmem>>, vector<32x32xbf16>
    %c128 = arith.constant 128 : index
    %c0_12 = arith.constant 0 : index
    %19 = vector.load %arg4[%c128, %c0_12] : memref<256x128xbf16, #tpu.memory_space<vmem>>, vector<32x64xbf16>
    %c160 = arith.constant 160 : index
    %c0_13 = arith.constant 0 : index
    %20 = vector.load %arg4[%c160, %c0_13] : memref<256x128xbf16, #tpu.memory_space<vmem>>, vector<32x32xbf16>
    %c192 = arith.constant 192 : index
    %c0_14 = arith.constant 0 : index
    %21 = vector.load %arg4[%c192, %c0_14] : memref<256x128xbf16, #tpu.memory_space<vmem>>, vector<4x32xbf16>
    %c64_15 = arith.constant 64 : index
    %c0_16 = arith.constant 0 : index
    %22 = vector.load %arg5[%c64_15, %c0_16] : memref<104x1xf32, #tpu.memory_space<vmem>>, vector<4x1xf32>
    %c0_17 = arith.constant 0 : index
    %c0_18 = arith.constant 0 : index
    %23 = vector.load %arg2[%c0_17, %c0_18] : memref<16x32xbf16, #tpu.memory_space<vmem>>, vector<16x32xbf16>
    %cst_19 = arith.constant dense<0.000000e+00> : vector<16x64xf32>
    %24 = tpu.matmul %23, %19, %cst_19 {dimension_numbers = #tpu.dot_dimension_numbers<[1], [0], [0], [1], [0, 0, 1, 1], [], []>} : vector<16x32xbf16>, vector<32x64xbf16>, vector<16x64xf32> -> vector<16x64xf32>
    %25 = vector.extract_strided_slice %16 {offsets = [0, 0], sizes = [32, 512], strides = [1, 1]} : vector<32x1024xf32> to vector<32x512xf32>
    %26 = vector.extract_strided_slice %17 {offsets = [0, 0], sizes = [32, 1], strides = [1, 1]} : vector<32x2xf32> to vector<32x1xf32>
    %27 = vector.broadcast %26 : vector<32x1xf32> to vector<32x512xf32>
    %28 = arith.addf %25, %27 : vector<32x512xf32>
    %29 = arith.negf %28 : vector<32x512xf32>
    %30 = math.exp %29 : vector<32x512xf32>
    %cst_20 = arith.constant 1.000000e+00 : f32
    %31 = vector.broadcast %cst_20 : f32 to vector<32x512xf32>
    %32 = arith.addf %31, %30 : vector<32x512xf32>
    %33 = arith.divf %31, %32 : vector<32x512xf32>
    %34 = arith.mulf %28, %33 : vector<32x512xf32>
    %35 = arith.truncf %34 : vector<32x512xf32> to vector<32x512xbf16>
    %cst_21 = arith.constant dense<0.000000e+00> : vector<32x512xf32>
    %36 = tpu.matmul %18, %35, %cst_21 {dimension_numbers = #tpu.dot_dimension_numbers<[1], [0], [0], [1], [0, 0, 1, 1], [], []>} : vector<32x32xbf16>, vector<32x512xbf16>, vector<32x512xf32> -> vector<32x512xf32>
    %37 = vector.extract_strided_slice %24 {offsets = [0, 0], sizes = [8, 32], strides = [1, 1]} : vector<16x64xf32> to vector<8x32xf32>
    %38 = vector.extract_strided_slice %24 {offsets = [0, 32], sizes = [8, 32], strides = [1, 1]} : vector<16x64xf32> to vector<8x32xf32>
    %39 = arith.truncf %37 : vector<8x32xf32> to vector<8x32xbf16>
    %40 = arith.truncf %36 : vector<32x512xf32> to vector<32x512xbf16>
    %cst_22 = arith.constant dense<0.000000e+00> : vector<8x512xf32>
    %41 = tpu.matmul %39, %40, %cst_22 {dimension_numbers = #tpu.dot_dimension_numbers<[1], [0], [0], [1], [0, 0, 1, 1], [], []>} : vector<8x32xbf16>, vector<32x512xbf16>, vector<8x512xf32> -> vector<8x512xf32>
    %cst_23 = arith.constant dense<0xFF800000> : vector<512xf32>
    %42 = vector.multi_reduction <maximumf>, %41, %cst_23 [0] : vector<8x512xf32> to vector<512xf32>
    %43 = vector.shape_cast %42 : vector<512xf32> to vector<1x512xf32>
    %44 = vector.broadcast %43 : vector<1x512xf32> to vector<8x512xf32>
    %45 = arith.subf %41, %44 : vector<8x512xf32>
    %46 = math.exp %45 : vector<8x512xf32>
    %cst_24 = arith.constant dense<0.000000e+00> : vector<512xf32>
    %47 = vector.multi_reduction <add>, %46, %cst_24 [0] : vector<8x512xf32> to vector<512xf32>
    %48 = vector.shape_cast %47 : vector<512xf32> to vector<1x512xf32>
    %49 = tpu.reciprocal %48 {approx = true} : vector<1x512xf32> -> vector<1x512xf32>
    %50 = vector.broadcast %49 : vector<1x512xf32> to vector<8x512xf32>
    %51 = arith.mulf %46, %50 : vector<8x512xf32>
    %52 = tpu.transpose %38, [1, 0] : vector<8x32xf32> -> vector<32x8xf32>
    %53 = arith.truncf %52 : vector<32x8xf32> to vector<32x8xbf16>
    %54 = arith.truncf %51 : vector<8x512xf32> to vector<8x512xbf16>
    %cst_25 = arith.constant dense<0.000000e+00> : vector<32x512xf32>
    %55 = tpu.matmul %53, %54, %cst_25 {dimension_numbers = #tpu.dot_dimension_numbers<[1], [0], [0], [1], [0, 0, 1, 1], [], []>} : vector<32x8xbf16>, vector<8x512xbf16>, vector<32x512xf32> -> vector<32x512xf32>
    %56 = arith.truncf %55 : vector<32x512xf32> to vector<32x512xbf16>
    %cst_26 = arith.constant dense<0.000000e+00> : vector<32x512xf32>
    %57 = tpu.matmul %20, %56, %cst_26 {dimension_numbers = #tpu.dot_dimension_numbers<[1], [0], [0], [1], [0, 0, 1, 1], [], []>} : vector<32x32xbf16>, vector<32x512xbf16>, vector<32x512xf32> -> vector<32x512xf32>
    %58 = arith.addf %34, %57 : vector<32x512xf32>
    %59 = arith.truncf %58 : vector<32x512xf32> to vector<32x512xbf16>
    %cst_27 = arith.constant dense<0.000000e+00> : vector<4x512xf32>
    %60 = tpu.matmul %21, %59, %cst_27 {dimension_numbers = #tpu.dot_dimension_numbers<[1], [0], [0], [1], [0, 0, 1, 1], [], []>} : vector<4x32xbf16>, vector<32x512xbf16>, vector<4x512xf32> -> vector<4x512xf32>
    %61 = vector.broadcast %22 : vector<4x1xf32> to vector<4x512xf32>
    %62 = arith.addf %60, %61 : vector<4x512xf32>
    %63 = vector.extract_strided_slice %16 {offsets = [0, 512], sizes = [32, 512], strides = [1, 1]} : vector<32x1024xf32> to vector<32x512xf32>
    %64 = vector.extract_strided_slice %17 {offsets = [0, 1], sizes = [32, 1], strides = [1, 1]} : vector<32x2xf32> to vector<32x1xf32>
    %65 = vector.broadcast %64 : vector<32x1xf32> to vector<32x512xf32>
    %66 = arith.addf %63, %65 : vector<32x512xf32>
    %67 = arith.negf %66 : vector<32x512xf32>
    %68 = math.exp %67 : vector<32x512xf32>
    %cst_28 = arith.constant 1.000000e+00 : f32
    %69 = vector.broadcast %cst_28 : f32 to vector<32x512xf32>
    %70 = arith.addf %69, %68 : vector<32x512xf32>
    %71 = arith.divf %69, %70 : vector<32x512xf32>
    %72 = arith.mulf %66, %71 : vector<32x512xf32>
    %73 = arith.truncf %72 : vector<32x512xf32> to vector<32x512xbf16>
    %cst_29 = arith.constant dense<0.000000e+00> : vector<32x512xf32>
    %74 = tpu.matmul %18, %73, %cst_29 {dimension_numbers = #tpu.dot_dimension_numbers<[1], [0], [0], [1], [0, 0, 1, 1], [], []>} : vector<32x32xbf16>, vector<32x512xbf16>, vector<32x512xf32> -> vector<32x512xf32>
    %75 = vector.extract_strided_slice %24 {offsets = [8, 0], sizes = [8, 32], strides = [1, 1]} : vector<16x64xf32> to vector<8x32xf32>
    %76 = vector.extract_strided_slice %24 {offsets = [8, 32], sizes = [8, 32], strides = [1, 1]} : vector<16x64xf32> to vector<8x32xf32>
    %77 = arith.truncf %75 : vector<8x32xf32> to vector<8x32xbf16>
    %78 = arith.truncf %74 : vector<32x512xf32> to vector<32x512xbf16>
    %cst_30 = arith.constant dense<0.000000e+00> : vector<8x512xf32>
    %79 = tpu.matmul %77, %78, %cst_30 {dimension_numbers = #tpu.dot_dimension_numbers<[1], [0], [0], [1], [0, 0, 1, 1], [], []>} : vector<8x32xbf16>, vector<32x512xbf16>, vector<8x512xf32> -> vector<8x512xf32>
    %cst_31 = arith.constant dense<0xFF800000> : vector<512xf32>
    %80 = vector.multi_reduction <maximumf>, %79, %cst_31 [0] : vector<8x512xf32> to vector<512xf32>
    %81 = vector.shape_cast %80 : vector<512xf32> to vector<1x512xf32>
    %82 = vector.broadcast %81 : vector<1x512xf32> to vector<8x512xf32>
    %83 = arith.subf %79, %82 : vector<8x512xf32>
    %84 = math.exp %83 : vector<8x512xf32>
    %cst_32 = arith.constant dense<0.000000e+00> : vector<512xf32>
    %85 = vector.multi_reduction <add>, %84, %cst_32 [0] : vector<8x512xf32> to vector<512xf32>
    %86 = vector.shape_cast %85 : vector<512xf32> to vector<1x512xf32>
    %87 = tpu.reciprocal %86 {approx = true} : vector<1x512xf32> -> vector<1x512xf32>
    %88 = vector.broadcast %87 : vector<1x512xf32> to vector<8x512xf32>
    %89 = arith.mulf %84, %88 : vector<8x512xf32>
    %90 = tpu.transpose %76, [1, 0] : vector<8x32xf32> -> vector<32x8xf32>
    %91 = arith.truncf %90 : vector<32x8xf32> to vector<32x8xbf16>
    %92 = arith.truncf %89 : vector<8x512xf32> to vector<8x512xbf16>
    %cst_33 = arith.constant dense<0.000000e+00> : vector<32x512xf32>
    %93 = tpu.matmul %91, %92, %cst_33 {dimension_numbers = #tpu.dot_dimension_numbers<[1], [0], [0], [1], [0, 0, 1, 1], [], []>} : vector<32x8xbf16>, vector<8x512xbf16>, vector<32x512xf32> -> vector<32x512xf32>
    %94 = arith.truncf %93 : vector<32x512xf32> to vector<32x512xbf16>
    %cst_34 = arith.constant dense<0.000000e+00> : vector<32x512xf32>
    %95 = tpu.matmul %20, %94, %cst_34 {dimension_numbers = #tpu.dot_dimension_numbers<[1], [0], [0], [1], [0, 0, 1, 1], [], []>} : vector<32x32xbf16>, vector<32x512xbf16>, vector<32x512xf32> -> vector<32x512xf32>
    %96 = arith.addf %72, %95 : vector<32x512xf32>
    %97 = arith.truncf %96 : vector<32x512xf32> to vector<32x512xbf16>
    %cst_35 = arith.constant dense<0.000000e+00> : vector<4x512xf32>
    %98 = tpu.matmul %21, %97, %cst_35 {dimension_numbers = #tpu.dot_dimension_numbers<[1], [0], [0], [1], [0, 0, 1, 1], [], []>} : vector<4x32xbf16>, vector<32x512xbf16>, vector<4x512xf32> -> vector<4x512xf32>
    %99 = vector.broadcast %22 : vector<4x1xf32> to vector<4x512xf32>
    %100 = arith.addf %98, %99 : vector<4x512xf32>
    %101 = tpu.concatenate %62, %100 in 1 : vector<4x512xf32>, vector<4x512xf32> -> vector<4x1024xf32>
    %c10 = arith.constant 10 : index
    %c0_36 = arith.constant 0 : index
    %102 = vector.load %arg1[%c10, %c0_36] : memref<14x1024xbf16, #tpu.memory_space<vmem>>, vector<4x512xbf16>
    %c208 = arith.constant 208 : index
    %c0_37 = arith.constant 0 : index
    %103 = vector.load %arg4[%c208, %c0_37] : memref<256x128xbf16, #tpu.memory_space<vmem>>, vector<32x4xbf16>
    %c72 = arith.constant 72 : index
    %c0_38 = arith.constant 0 : index
    %104 = vector.load %arg5[%c72, %c0_38] : memref<104x1xf32, #tpu.memory_space<vmem>>, vector<32x1xf32>
    %cst_39 = arith.constant dense<0.000000e+00> : vector<32x512xf32>
    %105 = tpu.matmul %103, %102, %cst_39 {dimension_numbers = #tpu.dot_dimension_numbers<[1], [0], [0], [1], [0, 0, 1, 1], [], []>} : vector<32x4xbf16>, vector<4x512xbf16>, vector<32x512xf32> -> vector<32x512xf32>
    %106 = vector.broadcast %104 : vector<32x1xf32> to vector<32x512xf32>
    %107 = arith.addf %105, %106 : vector<32x512xf32>
    %108 = arith.negf %107 : vector<32x512xf32>
    %109 = math.exp %108 : vector<32x512xf32>
    %cst_40 = arith.constant 1.000000e+00 : f32
    %110 = vector.broadcast %cst_40 : f32 to vector<32x512xf32>
    %111 = arith.addf %110, %109 : vector<32x512xf32>
    %112 = arith.divf %110, %111 : vector<32x512xf32>
    %113 = arith.mulf %107, %112 : vector<32x512xf32>
    %c240 = arith.constant 240 : index
    %c0_41 = arith.constant 0 : index
    %114 = vector.load %arg4[%c240, %c0_41] : memref<256x128xbf16, #tpu.memory_space<vmem>>, vector<4x32xbf16>
    %115 = arith.truncf %113 : vector<32x512xf32> to vector<32x512xbf16>
    %cst_42 = arith.constant dense<0.000000e+00> : vector<4x512xf32>
    %116 = tpu.matmul %114, %115, %cst_42 {dimension_numbers = #tpu.dot_dimension_numbers<[1], [0], [0], [1], [0, 0, 1, 1], [], []>} : vector<4x32xbf16>, vector<32x512xbf16>, vector<4x512xf32> -> vector<4x512xf32>
    %117 = vector.extract_strided_slice %116 {offsets = [0, 0], sizes = [4, 256], strides = [1, 1]} : vector<4x512xf32> to vector<4x256xf32>
    %118 = vector.extract_strided_slice %116 {offsets = [0, 0], sizes = [4, 256], strides = [1, 1]} : vector<4x512xf32> to vector<4x256xf32>
    %119 = vector.extract_strided_slice %116 {offsets = [0, 256], sizes = [4, 256], strides = [1, 1]} : vector<4x512xf32> to vector<4x256xf32>
    %120 = vector.extract_strided_slice %116 {offsets = [0, 256], sizes = [4, 256], strides = [1, 1]} : vector<4x512xf32> to vector<4x256xf32>
    %121 = tpu.concatenate %117, %118, %119, %120 in 1 : vector<4x256xf32>, vector<4x256xf32>, vector<4x256xf32>, vector<4x256xf32> -> vector<4x1024xf32>
    %122 = arith.addf %101, %121 : vector<4x1024xf32>
    %c0_43 = arith.constant 0 : index
    %c0_44 = arith.constant 0 : index
    %123 = vector.load %arg6[%c0_43, %c0_44] : memref<4x1024xf32, #tpu.memory_space<vmem>>, vector<4x1024xf32>
    tpu.vector_store %arg6[%c0_43, %c0_44], %122 {strides = array<i32>} : memref<4x1024xf32, #tpu.memory_space<vmem>>, vector<4x1024xf32>,
    return
  }
  func.func @transform_0(%arg0: i32) -> (i32, i32) {
    %c0_i32 = arith.constant 0 : i32
    %c0_i32_0 = arith.constant 0 : i32
    %c0_i32_1 = arith.constant 0 : i32
    return %c0_i32, %c0_i32_0 : i32, i32
  }
  func.func @transform_1(%arg0: i32) -> (i32, i32) {
    %c0_i32 = arith.constant 0 : i32
    %c0_i32_0 = arith.constant 0 : i32
    %c0_i32_1 = arith.constant 0 : i32
    return %c0_i32, %c0_i32_0 : i32, i32
  }
  func.func @transform_2(%arg0: i32) -> (i32, i32) {
    %c0_i32 = arith.constant 0 : i32
    %c0_i32_0 = arith.constant 0 : i32
    %c0_i32_1 = arith.constant 0 : i32
    return %c0_i32, %c0_i32_0 : i32, i32
  }
  func.func @transform_3(%arg0: i32) -> (i32, i32) {
    %c0_i32 = arith.constant 0 : i32
    %c0_i32_0 = arith.constant 0 : i32
    %c0_i32_1 = arith.constant 0 : i32
    return %c0_i32, %c0_i32_0 : i32, i32
  }
  func.func @transform_4(%arg0: i32) -> (i32, i32) {
    %c0_i32 = arith.constant 0 : i32
    %c0_i32_0 = arith.constant 0 : i32
    %c0_i32_1 = arith.constant 0 : i32
    return %c0_i32, %c0_i32_0 : i32, i32
  }
  func.func @transform_5(%arg0: i32) -> (i32, i32) {
    %c0_i32 = arith.constant 0 : i32
    %c0_i32_0 = arith.constant 0 : i32
    %c0_i32_1 = arith.constant 0 : i32
    return %c0_i32, %c0_i32_0 : i32, i32
  }
}

</mosaic_0001>

<bundles_post_ra>
// kernel: mgp_forward.1
= control target key start
LH: loop header
LB: loop body
LE: loop exit
PB: predicated region body
PF: predicated region fallthrough
CT: control target
= control target key end

     0   :  { %v5542_v3 = vmov 0   ;;  %vm162_vm0 = vcmask 1042432   ;;  %vm149_vm1 = vcmask 48128   ;;  %vm1000_vm2 = vcmask 1041408   ;;  %s4153_s12 = smov 96   ;;  %s5536_s0 = inlined_call_operand.vmem [shape: bf16[14,1024], index: 0, kind: input, shape index: {}]   ;;  %s5537_s3 = inlined_call_operand.vmem [shape: bf16[256,128], index: 3, kind: input, shape index: {}]   ;;  %s5538_s4 = inlined_call_operand.vmem [shape: f32[104,1], index: 4, kind: input, shape index: {}]   ;;  %s5539_s2 = inlined_call_operand.vmem [shape: f32[32,2], index: 2, kind: input, shape index: {}]   ;;  %s5540_s1 = inlined_call_operand.vmem [shape: bf16[16,32], index: 1, kind: input, shape index: {}]   ;;  %s5541_s5 = inlined_call_operand.vmem [shape: f32[4,1024], index: 5, kind: output, shape index: {}]  }
   0x1   :  { %v25_v0 = vld [vmem:[%s5536_s0] sm:$0xcc]  ;;  %v29_v1 = vld [vmem:[%s5536_s0 + $0x20] sm:$0x11]  ;;  %v26_v2 = vld [vmem:[%s5536_s0 + $0x8] sm:$0xcc]  ;;  %219 = vmatprep.mubr.bf16.mxu0 %v5542_v3  ;;  %292 = vmatprep.mubr.bf16.mxu1 %v5542_v3 }
   0x2   :  { %v3399_v4 = vcombine.high %v25_v0, %v29_v1  ;;  %v30_v5 = vld [vmem:[%s5536_s0 + $0x28] sm:$0x11]  ;;  %v3398_v6 = vcombine.low %v25_v0, %v29_v1  ;;  %3634 = vset.pattern.permute.xlu0 %v5542_v3  ;;  %3635 = vset.pattern.permute.xlu1 %v5542_v3  ;;  %v4205_v14 = vld [vmem:[%s5537_s3] sm:$0xff]   ;;  %v27_v15 = vld [vmem:[%s5536_s0 + $0x10] sm:$0xcc]  ;;  %vm993_vm3 = vcmask 556032  }
   0x3   :  { %v3401_v7 = vcombine.high %v26_v2, %v30_v5  ;;  %v3400_v8 = vcombine.low %v26_v2, %v30_v5  ;;  %v31_v17 = vld [vmem:[%s5536_s0 + $0x30] sm:$0x11]  ;;  %v28_v18 = vld [vmem:[%s5536_s0 + $0x18] sm:$0xcc]  ;;  %v32_v21 = vld [vmem:[%s5536_s0 + $0x38] sm:$0x11] }
   0x4   :  { %v142_v9 = vrot.slane %v3399_v4, 2  ;;  %v141_v10 = vrot.slane %v3398_v6, 2  ;;  %v47_v19 = vld [vmem:[%s5538_s4 + $0x30] sm:$0xff]  ;;  %v3403_v20 = vcombine.high %v27_v15, %v31_v17  ;;  %v3402_v22 = vcombine.low %v27_v15, %v31_v17  ;;  %v45_v23 = vld [vmem:[%s5538_s4 + $0x20] sm:$0xff]  ;;  %v48_v30 = vld [vmem:[%s5538_s4 + $0x38] sm:$0xff] }
   0x5   :  { %v144_v11 = vrot.slane %v3401_v7, 2  ;;  %v143_v12 = vrot.slane %v3400_v8, 2  ;;  %81 = vperm.xlu0 %3634, %v47_v19   ;;  %v3405_v24 = vcombine.high %v28_v18, %v32_v21  ;;  %v3404_v25 = vcombine.low %v28_v18, %v32_v21  ;;  %71 = vperm.xlu1 %3635, %v45_v23   ;;  %v3639_v31 = vld [vmem:[%s5537_s3 + $0x8] sm:$0xff]   ;;  %v43_v35 = vld [vmem:[%s5538_s4 + $0x10] sm:$0xff]  ;;  %v44_v36 = vld [vmem:[%s5538_s4 + $0x18] sm:$0xff] }
   0x6   :  { %3406 = vmatprep.subr.msk.bf16.mxu0 %vm162_vm0, %v142_v9  ;;  %v164_v13 = vsel %vm162_vm0, %v141_v10, 0  ;;  %v146_v26 = vrot.slane %v3403_v20, 2  ;;  %v145_v27 = vrot.slane %v3402_v22, 2  ;;  %v46_v33 = vld [vmem:[%s5538_s4 + $0x28] sm:$0xff]  ;;  %v41_v37 = vld [vmem:[%s5538_s4] sm:$0xff]  ;;  %v3640_v39 = vld [vmem:[%s5537_s3 + $0x10] sm:$0xff]  }
   0x7   :  { %3411 = vmatprep.subr.msk.bf16.mxu1 %vm162_vm0, %v144_v11  ;;  %202 = vmatpush1.bf16.msra.mxu0 %v164_v13  ;;  %v170_v16 = vsel %vm162_vm0, %v143_v12, 0  ;;  %v148_v28 = vrot.slane %v3405_v24, 2  ;;  %v147_v29 = vrot.slane %v3404_v25, 2  ;;  %v42_v38 = vld [vmem:[%s5538_s4 + $0x8] sm:$0xff]  ;;  %v1239_v40 = vld [vmem:[%s5539_s2 + $0x10] sm:$0xff]  ;;  %v1240_v41 = vld [vmem:[%s5539_s2 + $0x18] sm:$0xff] }
   0x8   :  { %275 = vmatpush1.bf16.msra.mxu1 %v170_v16  ;;  %3416 = vmatprep.subr.msk.bf16.mxu0 %vm162_vm0, %v146_v26  ;;  %v176_v32 = vsel %vm162_vm0, %v145_v27, 0  ;;  %v1237_v42 = vld [vmem:[%s5539_s2] sm:$0xff]  ;;  %v1238_v43 = vld [vmem:[%s5539_s2 + $0x8] sm:$0xff]  ;;  %v3641_v44 = vld [vmem:[%s5537_s3 + $0x18] sm:$0xff]   ;;  %vm4151_vm4 = vmmov 0   ;;  %vm1274_vm5 = vcmask 261120  }
   0x9   :  { %3421 = vmatprep.subr.msk.bf16.mxu1 %vm162_vm0, %v148_v28  ;;  %v182_v34 = vsel %vm162_vm0, %v147_v29, 0  ;;  %86 = vperm.xlu0 %3634, %v48_v30   ;;  %v21_v46 = vld [vmem:[%s5536_s0] sm:$0x33]  ;;  %v22_v47 = vld [vmem:[%s5536_s0 + $0x8] sm:$0x33]  ;;  %vm1808_vm6 = vcmask 1043456  }
   0xa   :  { %3407 = vmatmul.mubr.msk.bf16.vlgmr.msra.gmra.mxu0 %vm149_vm1, %v4205_v14  ;;  %76 = vperm.xlu1 %3635, %v46_v33   ;;  %v3491_v49 = vcombine.high %v21_v46, %v21_v46  ;;  %v3493_v50 = vcombine.high %v22_v47, %v22_v47  ;;  %v3490_v51 = vcombine.low %v21_v46, %v21_v46  ;;  %vm1801_vm7 = vcmask 64512  }
   0xb   :  { %3412 = vmatmul.mubr.msk.bf16.vlgmr.msra.gmra.mxu1 %vm149_vm1, %v4205_v14  ;;  %229 = vmatprep.mubr.bf16.mxu0 %v5542_v3  ;;  %v3492_v52 = vcombine.low %v22_v47, %v22_v47  ;;  %vm3031_vm8 = vcmask 31744  }
   0xc   :  { %302 = vmatprep.mubr.bf16.mxu1 %v5542_v3  ;;  %348 = vmatpush1.bf16.msra.mxu0 %v176_v32  ;;  %v1002_v54 = vsel %vm1000_vm2, %v3490_v51, 0 }
   0xd   :  { %421 = vmatpush1.bf16.msra.mxu1 %v182_v34  ;;  %61 = vperm.xlu0 %3634, %v43_v35   ;;  %v1008_v55 = vsel %vm1000_vm2, %v3492_v52, 0 }
   0xe   :  { %66 = vperm.xlu1 %3635, %v44_v36   ;;  %3500 = vmatprep.subr.msk.bf16.mxu0 %vm1000_vm2, %v3491_v49 }
   0xf   :  { %3503 = vmatprep.subr.msk.bf16.mxu1 %vm1000_vm2, %v3493_v50 }
  0x11   :  { %51 = vperm.xlu0 %3634, %v41_v37  }
  0x12   :  { %3408 = vmatmul.mubr.msk.bf16.gmra.mxu0 %vm149_vm1, %v3639_v31  ;;  %56 = vperm.xlu1 %3635, %v42_v38  }
  0x13   :  { %3413 = vmatmul.mubr.msk.bf16.gmra.mxu1 %vm149_vm1, %v3639_v31  ;;  %239 = vmatprep.mubr.bf16.mxu0 %v5542_v3 }
  0x14   :  { %312 = vmatprep.mubr.bf16.mxu1 %v5542_v3 }
  0x15   :  { %1331 = vperm.xlu0 %3634, %v1239_v40  }
  0x16   :  { %1336 = vperm.xlu1 %3635, %v1240_v41  }
  0x19   :  { %1321 = vperm.xlu0 %3634, %v1237_v42  }
  0x1a   :  { %3409 = vmatmul.mubr.msk.bf16.gmra.mxu0 %vm149_vm1, %v3640_v39  ;;  %1326 = vperm.xlu1 %3635, %v1238_v43  }
  0x1b   :  { %3414 = vmatmul.mubr.msk.bf16.gmra.mxu1 %vm149_vm1, %v3640_v39  ;;  %249 = vmatprep.mubr.bf16.mxu0 %v5542_v3 }
  0x1c   :  { %322 = vmatprep.mubr.bf16.mxu1 %v5542_v3 }
  0x22   :  { %3410 = vmatmul.mubr.msk.bf16.gmra.mxu0 %vm149_vm1, %v3641_v44 }
  0x23   :  { %3415 = vmatmul.mubr.msk.bf16.gmra.mxu1 %vm149_vm1, %v3641_v44  ;;  %365 = vmatprep.mubr.bf16.mxu0 %v5542_v3 }
  0x24   :  { %438 = vmatprep.mubr.bf16.mxu1 %v5542_v3 }
  0x2a   :  { %3417 = vmatmul.mubr.msk.bf16.vlgmr.msra.gmra.mxu0 %vm149_vm1, %v4205_v14 }
  0x2b   :  { %3422 = vmatmul.mubr.msk.bf16.vlgmr.msra.gmra.mxu1 %vm149_vm1, %v4205_v14  ;;  %375 = vmatprep.mubr.bf16.mxu0 %v5542_v3 }
  0x2c   :  { %448 = vmatprep.mubr.bf16.mxu1 %v5542_v3  ;;  %1032 = vmatpush1.bf16.msra.mxu0 %v1002_v54 }
  0x2d   :  { %1085 = vmatpush1.bf16.msra.mxu1 %v1008_v55 }
  0x32   :  { %3418 = vmatmul.mubr.msk.bf16.gmra.mxu0 %vm149_vm1, %v3639_v31 }
  0x33   :  { %3423 = vmatmul.mubr.msk.bf16.gmra.mxu1 %vm149_vm1, %v3639_v31  ;;  %385 = vmatprep.mubr.bf16.mxu0 %v5542_v3 }
  0x34   :  { %458 = vmatprep.mubr.bf16.mxu1 %v5542_v3 }
  0x3a   :  { %3419 = vmatmul.mubr.msk.bf16.gmra.mxu0 %vm149_vm1, %v3640_v39 }
  0x3b   :  { %3424 = vmatmul.mubr.msk.bf16.gmra.mxu1 %vm149_vm1, %v3640_v39  ;;  %395 = vmatprep.mubr.bf16.mxu0 %v5542_v3 }
  0x3c   :  { %468 = vmatprep.mubr.bf16.mxu1 %v5542_v3 }
  0x42   :  { %3420 = vmatmul.mubr.msk.bf16.gmra.mxu0 %vm149_vm1, %v3641_v44 }
  0x43   :  { %3425 = vmatmul.mubr.msk.bf16.gmra.mxu1 %vm149_vm1, %v3641_v44  ;;  %1057 = vmatprep.mubr.bf16.mxu0 %v5542_v3 }
  0x44   :  { %1110 = vmatprep.mubr.bf16.mxu1 %v5542_v3 }
  0x80   :  { %v4306_v45 = vpop.permute.xlu0 %81  ;;  %v4314_v48 = vpop.permute.xlu1 %71 }
  0x81   :  { %5584 = vst [vmem:[#allocation2_spill] sm:$0xff] %v4306_v45  ;;  %5585 = vst [vmem:[#allocation3_spill] sm:$0xff] %v4314_v48 }
  0x84   :  { %v4316_v53 = vpop.permute.xlu0 %86 }
  0x85   :  { %5586 = vst [vmem:[#allocation4_spill] sm:$0xff] %v4316_v53  ;;  %v4322_v56 = vpop.permute.xlu1 %76 }
  0x86   :  { %5587 = vst [vmem:[#allocation5_spill] sm:$0xff] %v4322_v56 }
  0x88   :  { %v4324_v57 = vpop.permute.xlu0 %61 }
  0x89   :  { %v4326_v58 = vpop.permute.xlu1 %66 }
  0x8c   :  { %v4328_v59 = vpop.permute.xlu0 %51 }
  0x8d   :  { %v4336_v1 = vpop.permute.xlu1 %56 }
  0xca   :  { %v221_v60 = vpop.f32.mrf.mxu0 }
  0xcb   :  { %v4331_v61 = vadd.f32 %v221_v60, %v4328_v59  ;;  %v294_v62 = vpop.f32.mrf.mxu1 }
  0xcc   :  { %v4334_v63 = vadd.f32 %v294_v62, %v4328_v59  ;;  %v223_v0 = vpop.f32.mrf.mxu0 }
  0xcd   :  { %v3426_v2 = vmul.f32 -1.442695, %v4331_v61  ;;  %v4340_v4 = vadd.f32 %v223_v0, %v4328_v59  ;;  %v296_v5 = vpop.f32.mrf.mxu1 }
  0xce   :  { %v3428_v6 = vmul.f32 -1.442695, %v4334_v63  ;;  %v4344_v7 = vadd.f32 %v296_v5, %v4328_v59  ;;  %v225_v8 = vpop.f32.mrf.mxu0 }
  0xcf   :  { %3665 = vpow2.f32 %v3426_v2  ;;  %v3427_v9 = vmul.f32 -1.442695, %v4340_v4  ;;  %v4348_v10 = vadd.f32 %v225_v8, %v4336_v1  ;;  %v298_v11 = vpop.f32.mrf.mxu1 }
  0xd0   :  { %3667 = vpow2.f32 %v3428_v6  ;;  %v3429_v12 = vmul.f32 -1.442695, %v4344_v7  ;;  %v4352_v13 = vadd.f32 %v298_v11, %v4336_v1  ;;  %v227_v14 = vpop.f32.mrf.mxu0 }
  0xd1   :  { %5588 = vst [vmem:[#allocation6_spill] sm:$0xff] %v4348_v10  ;;  %3669 = vpow2.f32 %v3427_v9  ;;  %v3434_v15 = vmul.f32 -1.442695, %v4348_v10  ;;  %v4356_v16 = vadd.f32 %v227_v14, %v4336_v1  ;;  %v300_v17 = vpop.f32.mrf.mxu1 }
  0xd2   :  { %5589 = vst [vmem:[#allocation7_spill] sm:$0xff] %v4352_v13  ;;  %3671 = vpow2.f32 %v3429_v12  ;;  %v3436_v18 = vmul.f32 -1.442695, %v4352_v13  ;;  %v4360_v19 = vadd.f32 %v300_v17, %v4336_v1  ;;  %v231_v20 = vpop.f32.mrf.mxu0 }
  0xd3   :  { %3673 = vpow2.f32 %v3434_v15  ;;  %v3435_v21 = vmul.f32 -1.442695, %v4356_v16  ;;  %v4364_v22 = vadd.f32 %v231_v20, %v4324_v57  ;;  %v304_v23 = vpop.f32.mrf.mxu1 }
  0xd4   :  { %3675 = vpow2.f32 %v3436_v18  ;;  %v3437_v24 = vmul.f32 -1.442695, %v4360_v19  ;;  %v4368_v25 = vadd.f32 %v304_v23, %v4324_v57  ;;  %v233_v26 = vpop.f32.mrf.mxu0 }
  0xd5   :  { %3677 = vpow2.f32 %v3435_v21  ;;  %v3442_v27 = vmul.f32 -1.442695, %v4364_v22  ;;  %v4372_v28 = vadd.f32 %v233_v26, %v4324_v57  ;;  %v306_v29 = vpop.f32.mrf.mxu1 }
  0xd6   :  { %5590 = vst [vmem:[#allocation8_spill] sm:$0xff] %v4368_v25  ;;  %3679 = vpow2.f32 %v3437_v24  ;;  %v3444_v30 = vmul.f32 -1.442695, %v4368_v25  ;;  %v4376_v31 = vadd.f32 %v306_v29, %v4324_v57  ;;  %v235_v32 = vpop.f32.mrf.mxu0 }
  0xd7   :  { %3681 = vpow2.f32 %v3442_v27  ;;  %v3443_v33 = vmul.f32 -1.442695, %v4372_v28  ;;  %v4380_v34 = vadd.f32 %v235_v32, %v4326_v58  ;;  %v308_v35 = vpop.f32.mrf.mxu1 }
  0xd8   :  { %3683 = vpow2.f32 %v3444_v30  ;;  %v3445_v36 = vmul.f32 -1.442695, %v4376_v31  ;;  %v4384_v37 = vadd.f32 %v308_v35, %v4326_v58  ;;  %v237_v38 = vpop.f32.mrf.mxu0 }
  0xd9   :  { %5591 = vst [vmem:[#allocation9_spill] sm:$0xff] %v4380_v34  ;;  %3685 = vpow2.f32 %v3443_v33  ;;  %v3450_v39 = vmul.f32 -1.442695, %v4380_v34  ;;  %v4388_v40 = vadd.f32 %v237_v38, %v4326_v58  ;;  %v310_v41 = vpop.f32.mrf.mxu1 }
  0xda   :  { %5592 = vst [vmem:[#allocation10_spill] sm:$0xff] %v4384_v37  ;;  %3687 = vpow2.f32 %v3445_v36  ;;  %v4391_v42 = vadd.f32 %v310_v41, %v4326_v58  ;;  %v241_v43 = vpop.f32.mrf.mxu0  ;;  %v3452_v44 = vmul.f32 -1.442695, %v4384_v37 }
  0xdb   :  { %3689 = vpow2.f32 %v3450_v39  ;;  %v314_v46 = vpop.f32.mrf.mxu1  ;;  %v3451_v49 = vmul.f32 -1.442695, %v4388_v40  ;;  %v4397_v35 = vadd.f32 %v241_v43, %v4314_v48 }
  0xdc   :  { %5593 = vst [vmem:[#allocation11_spill] sm:$0xff] %v4391_v42  ;;  %v3666_v47 = vpop.eup %3665  ;;  %v243_v50 = vpop.f32.mrf.mxu0  ;;  %v3453_v52 = vmul.f32 -1.442695, %v4391_v42  ;;  %3691 = vpow2.f32 %v3452_v44  ;;  %v4400_v41 = vadd.f32 %v314_v46, %v4314_v48 }
  0xdd   :  { %v3668_v51 = vpop.eup %3667  ;;  %v316_v54 = vpop.f32.mrf.mxu1  ;;  %v671_v60 = vadd.f32 1.0, %v3666_v47  ;;  %3693 = vpow2.f32 %v3451_v49  ;;  %5594 = vst [vmem:[#allocation12_spill] sm:$0xff] %v4397_v35  ;;  %v4403_v47 = vadd.f32 %v243_v50, %v4314_v48  ;;  %v3458_v43 = vmul.f32 -1.442695, %v4397_v35 }
  0xde   :  { %v3670_v55 = vpop.eup %3669  ;;  %v245_v62 = vpop.f32.mrf.mxu0  ;;  %v673_v2 = vadd.f32 1.0, %v3668_v51  ;;  %3695 = vpow2.f32 %v3453_v52  ;;  %5595 = vst [vmem:[#allocation13_spill] sm:$0xff] %v4400_v41  ;;  %v4406_v51 = vadd.f32 %v316_v54, %v4314_v48 }
  0xdf   :  { %v3672_v0 = vpop.eup %3671  ;;  %v318_v5 = vpop.f32.mrf.mxu1  ;;  %v672_v8 = vadd.f32 1.0, %v3670_v55  ;;  %3697 = vrcp.f32 %v671_v60  ;;  %v4410_v55 = vadd.f32 %v245_v62, %v4322_v56  ;;  %v3459_v54 = vmul.f32 -1.442695, %v4403_v47 }
  0xe0   :  { %v3674_v6 = vpop.eup %3673  ;;  %v674_v11 = vadd.f32 1.0, %v3672_v0  ;;  %v247_v15 = vpop.f32.mrf.mxu0  ;;  %3699 = vrcp.f32 %v673_v2  ;;  %5596 = vst [vmem:[#allocation14_spill] sm:$0xff] %v4406_v51  ;;  %v3460_v0 = vmul.f32 -1.442695, %v4400_v41  ;;  %v4416_v50 = vadd.f32 %v318_v5, %v4322_v56 }
  0xe1   :  { %v3676_v9 = vpop.eup %3675  ;;  %v679_v14 = vadd.f32 1.0, %v3674_v6  ;;  %v320_v20 = vpop.f32.mrf.mxu1  ;;  %3701 = vrcp.f32 %v672_v8  ;;  %5597 = vst [vmem:[#allocation15_spill] sm:$0xff] %v4410_v55  ;;  %v4422_v6 = vadd.f32 %v247_v15, %v4322_v56  ;;  %v3461_v62 = vmul.f32 -1.442695, %v4406_v51 }
  0xe2   :  { %v3678_v12 = vpop.eup %3677  ;;  %v681_v18 = vadd.f32 1.0, %v3676_v9  ;;  %3703 = vrcp.f32 %v674_v11  ;;  %v251_v30 = vpop.f32.mrf.mxu0  ;;  %5598 = vst [vmem:[#allocation16_spill] sm:$0xff] %v4416_v50  ;;  %v4428_v9 = vadd.f32 %v320_v20, %v4322_v56  ;;  %v3466_v5 = vmul.f32 -1.442695, %v4410_v55 }
  0xe3   :  { %v3680_v17 = vpop.eup %3679  ;;  %v680_v23 = vadd.f32 1.0, %v3678_v12  ;;  %3705 = vrcp.f32 %v679_v14  ;;  %v324_v36 = vpop.f32.mrf.mxu1  ;;  %v4434_v14 = vadd.f32 %v251_v30, %v4306_v45 }
  0xe4   :  { %v3682_v21 = vpop.eup %3681  ;;  %v682_v26 = vadd.f32 1.0, %v3680_v17  ;;  %3707 = vrcp.f32 %v681_v18  ;;  %v253_v52 = vpop.f32.mrf.mxu0  ;;  %v3468_v18 = vmul.f32 -1.442695, %v4416_v50 }
  0xe5   :  { %v3684_v24 = vpop.eup %3683  ;;  %v687_v29 = vadd.f32 1.0, %v3682_v21  ;;  %3709 = vrcp.f32 %v680_v23  ;;  %v326_v60 = vpop.f32.mrf.mxu1  ;;  %v4440_v21 = vadd.f32 %v324_v36, %v4306_v45  ;;  %v3467_v23 = vmul.f32 -1.442695, %v4422_v6 }
  0xe6   :  { %v3686_v27 = vpop.eup %3685  ;;  %v689_v33 = vadd.f32 1.0, %v3684_v24  ;;  %3711 = vrcp.f32 %v682_v26  ;;  %v255_v11 = vpop.f32.mrf.mxu0  ;;  %v4446_v24 = vadd.f32 %v253_v52, %v4306_v45 }
  0xe7   :  { %v3688_v32 = vpop.eup %3687  ;;  %v688_v39 = vadd.f32 1.0, %v3686_v27  ;;  %3713 = vrcp.f32 %v687_v29  ;;  %v328_v17 = vpop.f32.mrf.mxu1  ;;  %5599 = vst [vmem:[#allocation17_spill] sm:$0xff] %v4440_v21  ;;  %v3469_v27 = vmul.f32 -1.442695, %v4428_v9  ;;  %v4452_v29 = vadd.f32 %v326_v60, %v4306_v45 }
  0xe8   :  { %v3690_v38 = vpop.eup %3689  ;;  %v690_v44 = vadd.f32 1.0, %v3688_v32  ;;  %3715 = vrcp.f32 %v689_v33  ;;  %v257_v30 = vpop.f32.mrf.mxu0  ;;  %v3474_v33 = vmul.f32 -1.442695, %v4434_v14  ;;  %v4458_v36 = vadd.f32 %v255_v11, %v4316_v53 }
  0xe9   :  { %v695_v49 = vadd.f32 1.0, %v3690_v38  ;;  %v4412_v46 = vpop.eup %3691  ;;  %3717 = vrcp.f32 %v688_v39  ;;  %v330_v38 = vpop.f32.mrf.mxu1  ;;  %v4470_v60 = vadd.f32 %v257_v30, %v4316_v53 }
  0xea   :  { %v4418_v2 = vpop.eup %3693  ;;  %3719 = vrcp.f32 %v690_v44  ;;  %v3476_v44 = vmul.f32 -1.442695, %v4440_v21  ;;  %v4478_v11 = vpop.f32.mrf.mxu0  ;;  %v697_v56 = vadd.f32 1.0, %v4412_v46 }
  0xeb   :  { %v4424_v8 = vpop.eup %3695  ;;  %3721 = vrcp.f32 %v695_v49  ;;  %v4464_v49 = vadd.f32 %v328_v17, %v4316_v53  ;;  %v3482_v17 = vmul.f32 -1.442695, %v4458_v36 }
  0xec   :  { %v4430_v12 = vpop.eup %3697  ;;  %3723 = vpow2.f32 %v3458_v43  ;;  %v3475_v43 = vmul.f32 -1.442695, %v4446_v24  ;;  %v698_v13 = vadd.f32 1.0, %v4424_v8 }
  0xed   :  { %v4436_v15 = vpop.eup %3699  ;;  %3725 = vpow2.f32 %v3460_v0  ;;  %v3484_v30 = vmul.f32 -1.442695, %v4464_v49 }
  0xee   :  { %v4442_v20 = vpop.eup %3701  ;;  %3727 = vpow2.f32 %v3459_v54  ;;  %v3477_v54 = vmul.f32 -1.442695, %v4452_v29 }
  0xef   :  { %v4448_v26 = vpop.eup %3703  ;;  %3729 = vpow2.f32 %v3461_v62  ;;  %v4476_v62 = vadd.f32 %v330_v38, %v4316_v53  ;;  %v3483_v38 = vmul.f32 -1.442695, %v4470_v60 }
  0xf0   :  { %v4454_v32 = vpop.eup %3705  ;;  %3731 = vpow2.f32 %v3466_v5 }
  0xf1   :  { %5600 = vst [vmem:[#allocation18_spill] sm:$0xff] %v4454_v32  ;;  %v4460_v39 = vpop.eup %3707  ;;  %3733 = vpow2.f32 %v3468_v18  ;;  %v4483_v18 = vpop.f32.mrf.mxu1  ;;  %v3485_v53 = vmul.f32 -1.442695, %v4476_v62 }
  0xf2   :  { %5601 = vst [vmem:[#allocation19_spill] sm:$0xff] %v4460_v39  ;;  %v4466_v52 = vpop.eup %3709  ;;  %3735 = vpow2.f32 %v3467_v23  ;;  %v696_v39 = vadd.f32 1.0, %v4418_v2 }
  0xf3   :  { %v4472_v0 = vpop.eup %3711  ;;  %3737 = vpow2.f32 %v3469_v27 }
  0xf4   :  { %v4480_v5 = vpop.eup %3713  ;;  %3739 = vpow2.f32 %v3474_v33  ;;  %v4494_v33 = vpop.f32.mrf.mxu0 }
  0xf5   :  { %v4485_v23 = vpop.eup %3715  ;;  %3741 = vpow2.f32 %v3476_v44  ;;  %v4499_v44 = vpop.f32.mrf.mxu1 }
  0xf6   :  { %5602 = vst [vmem:[#allocation20_spill] sm:$0xff] %v4485_v23  ;;  %v4488_v27 = vpop.eup %3717  ;;  %3743 = vpow2.f32 %v3475_v43  ;;  %v4503_v32 = vpop.f32.mrf.mxu0 }
  0xf7   :  { %v4491_v3 = vpop.eup %3719  ;;  %3745 = vpow2.f32 %v3477_v54  ;;  %v4505_v25 = vpop.f32.mrf.mxu1 }
  0xf8   :  { %v4496_v45 = vpop.eup %3721  ;;  %3747 = vpow2.f32 %v3482_v17  ;;  %v373_v41 = vpop.f32.mrf.mxu0 }
  0xf9   :  { %5603 = vst [vmem:[#allocation21_spill] sm:$0xff] %v4496_v45  ;;  %v3724_v48 = vpop.eup %3723  ;;  %3749 = vpow2.f32 %v3484_v30 }
  0xfa   :  { %v3726_v43 = vpop.eup %3725  ;;  %3751 = vpow2.f32 %v3483_v38 }
  0xfb   :  { %v3728_v54 = vpop.eup %3727  ;;  %3753 = vpow2.f32 %v3485_v53  ;;  %v446_v53 = vpop.f32.mrf.mxu1 }
  0xfc   :  { %v3730_v10 = vpop.eup %3729  ;;  %3755 = vrcp.f32 %v697_v56  ;;  %v704_v23 = vadd.f32 1.0, %v3728_v54 }
  0xfd   :  { %v3732_v46 = vpop.eup %3731  ;;  %3757 = vrcp.f32 %v696_v39  ;;  %v706_v17 = vadd.f32 1.0, %v3730_v10  ;;  %v4507_v10 = vpop.f32.mrf.mxu0 }
  0xfe   :  { %v3734_v37 = vpop.eup %3733  ;;  %3759 = vrcp.f32 %v698_v13  ;;  %v711_v2 = vadd.f32 1.0, %v3732_v46 }
  0xff   :  { %v3736_v30 = vpop.eup %3735  ;;  %3761 = vrcp.f32 %v704_v23  ;;  %v450_v23 = vpop.f32.mrf.mxu1  ;;  %v713_v55 = vadd.f32 1.0, %v3734_v37  ;;  %v4522_v37 = vadd.f32 %v4494_v33, %v4328_v59 }
 0x100   :  { %v3738_v8 = vpop.eup %3737  ;;  %3763 = vrcp.f32 %v706_v17  ;;  %v712_v38 = vadd.f32 1.0, %v3736_v30 }
 0x101   :  { %v3740_v45 = vpop.eup %3739  ;;  %3765 = vrcp.f32 %v711_v2  ;;  %v714_v34 = vadd.f32 1.0, %v3738_v8  ;;  %5605 = vst [vmem:[#allocation23_spill] sm:$0xff] %v4522_v37 }
 0x102   :  { %v3742_v56 = vpop.eup %3741  ;;  %3767 = vrcp.f32 %v712_v38  ;;  %v719_v54 = vadd.f32 1.0, %v3740_v45  ;;  %v379_v38 = vpop.f32.mrf.mxu0 }
 0x103   :  { %v3744_v35 = vpop.eup %3743  ;;  %3769 = vrcp.f32 %v714_v34  ;;  %v721_v39 = vadd.f32 1.0, %v3742_v56  ;;  %v452_v56 = vpop.f32.mrf.mxu1 }
 0x104   :  { %v3746_v13 = vpop.eup %3745  ;;  %3771 = vrcp.f32 %v719_v54  ;;  %v720_v46 = vadd.f32 1.0, %v3744_v35  ;;  %v703_v54 = vadd.f32 1.0, %v3724_v48  ;;  %v4527_v48 = vld [vmem:[%s5536_s0 + $0x18] sm:$0x33] }
 0x105   :  { %v3748_v42 = vpop.eup %3747  ;;  %3773 = vrcp.f32 %v721_v39  ;;  %v722_v17 = vadd.f32 1.0, %v3746_v13  ;;  %v705_v39 = vadd.f32 1.0, %v3726_v43 }
 0x106   :  { %v3750_v30 = vpop.eup %3749  ;;  %3775 = vrcp.f32 %v720_v46  ;;  %v727_v50 = vadd.f32 1.0, %v3748_v42  ;;  %v4516_v42 = vld [vmem:[%s5536_s0 + $0x10] sm:$0x33]  ;;  %v4533_v46 = vadd.f32 %v4478_v11, %v4328_v59 }
 0x107   :  { %v3752_v2 = vpop.eup %3751  ;;  %3777 = vrcp.f32 %v722_v17  ;;  %v729_v8 = vadd.f32 1.0, %v3750_v30  ;;  %5604 = vst [vmem:[#allocation22_spill] sm:$0xff] %v4516_v42  ;;  %v4537_v17 = vadd.f32 %v4499_v44, %v4328_v59  ;;  %v454_v30 = vpop.f32.mrf.mxu1  ;;  %v4553_v44 = vadd.f32 %v446_v53, %v4336_v1 }
 0x108   :  { %v3754_v45 = vpop.eup %3753  ;;  %3779 = vrcp.f32 %v727_v50  ;;  %v728_v34 = vadd.f32 1.0, %v3752_v2  ;;  %v381_v50 = vpop.f32.mrf.mxu0  ;;  %5606 = vst [vmem:[#allocation24_spill] sm:$0xff] %v4533_v46  ;;  %v4543_v2 = vadd.f32 %v4483_v18, %v4328_v59  ;;  %v3431_v18 = vmul.f32 -1.442695, %v4522_v37 }
 0x109   :  { %v4509_v51 = vpop.eup %3755  ;;  %3781 = vrcp.f32 %v729_v8  ;;  %v730_v35 = vadd.f32 1.0, %v3754_v45  ;;  %5607 = vst [vmem:[#allocation25_spill] sm:$0xff] %v4537_v17  ;;  %v4546_v8 = vadd.f32 %v373_v41, %v4336_v1  ;;  %5610 = vst [vmem:[#allocation28_spill] sm:$0xff] %v4553_v44  ;;  %v4562_v41 = vadd.f32 %v4503_v32, %v4336_v1 }
 0x10a   :  { %v4511_v21 = vpop.eup %3757  ;;  %3783 = vrcp.f32 %v728_v34  ;;  %5608 = vst [vmem:[#allocation26_spill] sm:$0xff] %v4543_v2  ;;  %v4569_v53 = vadd.f32 %v379_v38, %v4324_v57  ;;  %v4573_v45 = vmul.f32 %v4430_v12, %v4331_v61  ;;  %v4577_v34 = vmul.f32 %v4436_v15, %v4334_v63 }
 0x10b   :  { %v4518_v13 = vpop.eup %3759  ;;  %3785 = vrcp.f32 %v730_v35  ;;  %5609 = vst [vmem:[#allocation27_spill] sm:$0xff] %v4546_v8  ;;  %5611 = vst [vmem:[#allocation29_spill] sm:$0xff] %v4562_v41  ;;  %v383_v35 = vpop.f32.mrf.mxu0  ;;  %v4580_v32 = vmul.f32 -1.442695, %v4533_v46  ;;  %v4586_v38 = vmul.f32 -1.442695, %v4543_v2  ;;  %v4591_v61 = vadd.f32 %v4507_v10, %v4324_v57 }
 0x10c   :  { %v4529_v43 = vpop.eup %3761  ;;  %3787 = vrcp.f32 %v713_v55  ;;  %v3433_v55 = vmul.f32 -1.442695, %v4537_v17  ;;  %v3439_v37 = vmul.f32 -1.442695, %v4546_v8  ;;  %v4594_v63 = vadd.f32 %v450_v23, %v4324_v57 }
 0x10d   :  { %v4539_v33 = vpop.eup %3763  ;;  %3789 = vrcp.f32 %v703_v54  ;;  %v4566_v54 = vadd.f32 %v4505_v25, %v4336_v1  ;;  %v4583_v1 = vpop.f32.mrf.mxu1  ;;  %5613 = vst [vmem:[#allocation31_spill] sm:$0xff] %v4591_v61  ;;  %v4598_v15 = vmul.f32 %v4442_v20, %v4340_v4  ;;  %v4602_v46 = vmul.f32 %v4448_v26, %v4344_v7 }
 0x10e   :  { %v4550_v11 = vpop.eup %3765  ;;  %3791 = vrcp.f32 %v705_v39  ;;  %5614 = vst [vmem:[#allocation32_spill] sm:$0xff] %v4594_v63  ;;  %v3441_v2 = vmul.f32 -1.442695, %v4553_v44  ;;  %v4606_v17 = vadd.f32 %v452_v56, %v4324_v57  ;;  %v3438_v10 = vmul.f32 -1.442695, %v4562_v41  ;;  %v4613_v4 = vpop.f32.mrf.mxu0 }
 0x10f   :  { %v3768_v59 = vpop.eup %3767  ;;  %5612 = vst [vmem:[#allocation30_spill] sm:$0xff] %v4566_v54  ;;  %3793 = vpow2.f32 %v3431_v18  ;;  %v4610_v23 = vmul.f32 -1.442695, %v4566_v54  ;;  %v3447_v42 = vmul.f32 -1.442695, %v4569_v53  ;;  %v4617_v7 = vmul.f32 %v4466_v52, %v4356_v16  ;;  %v4627_v56 = vpop.f32.mrf.mxu1 }
 0x110   :  { %v3770_v39 = vpop.eup %3769  ;;  %v4621_v57 = vmul.f32 %v4472_v0, %v4360_v19  ;;  %v4625_v26 = vmul.f32 %v4480_v5, %v4364_v22  ;;  %3795 = vpow2.f32 %v3433_v55  ;;  %v4631_v54 = vmul.f32 %v4488_v27, %v4372_v28  ;;  %v4654_v41 = vpop.f32.mrf.mxu0 }
 0x111   :  { %v3772_v25 = vpop.eup %3771  ;;  %3797 = vpow2.f32 %v3439_v37  ;;  %v3446_v16 = vmul.f32 -1.442695, %v4591_v61  ;;  %v4635_v52 = vmul.f32 -1.442695, %v4594_v63  ;;  %v4639_v0 = vmul.f32 %v4491_v3, %v4376_v31  ;;  %v4660_v61 = vpop.f32.mrf.mxu1 }
 0x112   :  { %v3774_v12 = vpop.eup %3773  ;;  %3799 = vpow2.f32 %v3441_v2  ;;  %v4642_v22 = vmul.f32 -1.442695, %v4606_v17  ;;  %v4645_v5 = vadd.f32 %v381_v50, %v4326_v58  ;;  %v4649_v37 = vadd.f32 %v454_v30, %v4326_v58 }
 0x113   :  { %v3776_v8 = vpop.eup %3775  ;;  %3801 = vpow2.f32 %v3447_v42  ;;  %v4652_v55 = vadd.f32 %v383_v35, %v4326_v58  ;;  %v904_v31 = vmul.f32 %v3768_v59, %v4422_v6  ;;  %v906_v42 = vmul.f32 %v3770_v39, %v4428_v9  ;;  %v5617_v39 = vld [vmem:[#allocation15_spill] sm:$0xff] }
 0x114   :  { %v3778_v20 = vpop.eup %3777  ;;  %v912_v2 = vmul.f32 %v3776_v8, %v4446_v24  ;;  %v911_v30 = vmul.f32 %v3772_v25, %v4434_v14  ;;  %v888_v6 = vmul.f32 %v4511_v21, %v4388_v40  ;;  %v896_v24 = vmul.f32 %v4529_v43, %v4403_v47  ;;  %v4675_v25 = vpop.f32.mrf.mxu0  ;;  %v5619_v43 = vld [vmem:[#allocation11_spill] sm:$0xff] }
 0x115   :  { %v3780_v18 = vpop.eup %3779  ;;  %v914_v35 = vmul.f32 %v3778_v20, %v4452_v29  ;;  %v903_v14 = vmul.f32 %v4550_v11, %v5617_v39  ;;  %v5618_v20 = vld [vmem:[#allocation16_spill] sm:$0xff]  ;;  %3803 = vpow2.f32 %v4580_v32  ;;  %v4679_v47 = vpop.f32.mrf.mxu1  ;;  %v4690_v32 = vadd.f32 %v4583_v1, %v4326_v58  ;;  %v5630_v39 = vld [vmem:[#allocation19_spill] sm:$0xff] }
 0x116   :  { %v3782_v19 = vpop.eup %3781  ;;  %v919_v27 = vmul.f32 %v3780_v18, %v4458_v36  ;;  %v948_v21 = vpack.c.bf16 %v904_v31, %v896_v24  ;;  %3805 = vpow2.f32 %v4586_v38  ;;  %v3454_v38 = vmul.f32 -1.442695, %v4645_v5  ;;  %v5625_v24 = vld [vmem:[#allocation8_spill] sm:$0xff] }
 0x117   :  { %v3784_v28 = vpop.eup %3783  ;;  %v921_v50 = vmul.f32 %v3782_v19, %v4464_v49  ;;  %v5615_v49 = vld [vmem:[#allocation17_spill] sm:$0xff]  ;;  %v5616_v19 = vld [vmem:[#allocation14_spill] sm:$0xff]  ;;  %3807 = vpow2.f32 %v3438_v10  ;;  %v3456_v10 = vmul.f32 -1.442695, %v4649_v37  ;;  %v4699_v58 = vpop.f32.mrf.mxu1  ;;  %v940_v1 = vpack.c.bf16 %v888_v6, %v4631_v54 }
 0x118   :  { %v3786_v3 = vpop.eup %3785  ;;  %v920_v63 = vmul.f32 %v3784_v28, %v4470_v60  ;;  %v913_v60 = vmul.f32 %v3774_v12, %v5615_v49  ;;  %v898_v9 = vmul.f32 %v4539_v33, %v5616_v19  ;;  %v955_v29 = vpack.c.bf16 %v919_v27, %v911_v30  ;;  %v5620_v33 = vld [vmem:[#allocation12_spill] sm:$0xff]  ;;  %v5621_v27 = vld [vmem:[#allocation9_spill] sm:$0xff] }
 0x119   :  { %v3788_v36 = vpop.eup %3787  ;;  %v922_v18 = vmul.f32 %v3786_v3, %v4476_v62  ;;  %v5622_v3 = vld [vmem:[#allocation21_spill] sm:$0xff]  ;;  %3809 = vpow2.f32 %v4610_v23  ;;  %v3455_v23 = vmul.f32 -1.442695, %v4652_v55  ;;  %v3457_v54 = vmul.f32 -1.442695, %v4690_v32 }
 0x11a   :  { %v3790_v44 = vpop.eup %3789  ;;  %v956_v8 = vpack.c.bf16 %v920_v63, %v912_v2  ;;  %v905_v28 = vmul.f32 %v3788_v36, %v5618_v20  ;;  %v957_v40 = vpack.c.bf16 %v921_v50, %v913_v60  ;;  %v890_v63 = vmul.f32 %v4518_v13, %v5619_v43  ;;  %v5623_v50 = vld [vmem:[#allocation13_spill] sm:$0xff]  ;;  %v5624_v13 = vld [vmem:[#allocation10_spill] sm:$0xff] }
 0x11b   :  { %v3792_v59 = vpop.eup %3791  ;;  %v958_v62 = vpack.c.bf16 %v922_v18, %v914_v35  ;;  %v895_v12 = vmul.f32 %v3790_v44, %v5620_v33  ;;  %v950_v11 = vpack.c.bf16 %v906_v42, %v898_v9  ;;  %v887_v2 = vmul.f32 %v5622_v3, %v5621_v27  ;;  %v4696_v42 = vpop.f32.mrf.mxu0  ;;  %v5629_v9 = vld [vmem:[#allocation7_spill] sm:$0xff] }
 0x11c   :  { %1033 = vmatprep.subr.bf16.mxu0 %v956_v8  ;;  %v897_v36 = vmul.f32 %v3792_v59, %v5623_v50  ;;  %v889_v44 = vmul.f32 %v4509_v51, %v5624_v13  ;;  %v3794_v30 = vpop.eup %3793  ;;  %3811 = vpow2.f32 %v3446_v16  ;;  %v5626_v51 = vld [vmem:[#allocation20_spill] sm:$0xff]  ;;  %v942_v60 = vpack.c.bf16 %v890_v63, %v4639_v0  ;;  %v5627_v59 = vld [vmem:[#allocation6_spill] sm:$0xff] }
 0x11d   :  { %1086 = vmatprep.subr.bf16.mxu1 %v958_v62  ;;  %1034 = vmatpush1.bf16.msra.mxu0 %v955_v29  ;;  %v947_v31 = vpack.c.bf16 %v903_v14, %v895_v12  ;;  %v3796_v18 = vpop.eup %3795  ;;  %v881_v49 = vmul.f32 %v5626_v51, %v5625_v24  ;;  %3813 = vpow2.f32 %v4635_v52  ;;  %v5628_v16 = vld [vmem:[#allocation18_spill] sm:$0xff]  ;;  %v873_v14 = vmul.f32 %v5630_v39, %v5629_v9  ;;  %v397_v0 = vpop.f32.mrf.mxu0 }
 0x11e   :  { %1087 = vmatpush1.bf16.msra.mxu1 %v957_v40  ;;  %1035 = vmatprep.subr.bf16.mxu0 %v948_v21  ;;  %v949_v35 = vpack.c.bf16 %v905_v28, %v897_v36  ;;  %v3798_v8 = vpop.eup %3797  ;;  %v871_v19 = vmul.f32 %v5628_v16, %v5627_v59  ;;  %3815 = vpow2.f32 %v4642_v22  ;;  %v939_v52 = vpack.c.bf16 %v887_v2, %v4625_v26  ;;  %v5631_v40 = vld [vmem:[#allocation3_spill] sm:$0xff]  ;;  %v470_v22 = vpop.f32.mrf.mxu1  ;;  %v5637_v51 = vld [vmem:[#allocation2_spill] sm:$0xff] }
 0x11f   :  { %1088 = vmatprep.subr.bf16.mxu1 %v950_v11  ;;  %v3800_v6 = vpop.eup %3799  ;;  %v941_v29 = vpack.c.bf16 %v889_v44, %v881_v49  ;;  %v676_v62 = vadd.f32 1.0, %v3794_v30  ;;  %3817 = vpow2.f32 %v3454_v38  ;;  %v678_v28 = vadd.f32 1.0, %v3796_v18  ;;  %v399_v27 = vpop.f32.mrf.mxu0  ;;  %v5633_v44 = vld [vmem:[#allocation22_spill] sm:$0xff] }
 0x120   :  { %v3802_v20 = vpop.eup %3801  ;;  %3819 = vpow2.f32 %v3456_v10  ;;  %v4716_v21 = vadd.f32 %v4613_v4, %v5631_v40  ;;  %v932_v43 = vpack.c.bf16 %v4617_v7, %v4598_v15  ;;  %v684_v63 = vadd.f32 1.0, %v3798_v8 }
 0x121   :  { %1036 = vmatpush1.bf16.msra.mxu0 %v947_v31  ;;  %3821 = vpow2.f32 %v3455_v23  ;;  %v4722_v26 = vadd.f32 %v4627_v56, %v5631_v40  ;;  %v934_v33 = vpack.c.bf16 %v4621_v57, %v4602_v46  ;;  %v931_v12 = vpack.c.bf16 %v871_v19, %v4573_v45  ;;  %v5632_v45 = vld [vmem:[#allocation5_spill] sm:$0xff] }
 0x122   :  { %1089 = vmatpush1.bf16.msra.mxu1 %v949_v35  ;;  %1037 = vmatprep.subr.bf16.mxu0 %v940_v1  ;;  %v686_v11 = vadd.f32 1.0, %v3800_v6  ;;  %3823 = vpow2.f32 %v3457_v54  ;;  %v4729_v4 = vadd.f32 %v4654_v41, %v5631_v40  ;;  %v933_v15 = vpack.c.bf16 %v873_v14, %v4577_v34  ;;  %v472_v41 = vpop.f32.mrf.mxu1  ;;  %v4744_v34 = vld [vmem:[%s5537_s3 + $0x20] sm:$0xff]   ;;  %v401_v35 = vpop.f32.mrf.mxu0 }
 0x123   :  { %1090 = vmatprep.subr.bf16.mxu1 %v942_v60  ;;  %3825 = vrcp.f32 %v676_v62  ;;  %v692_v7 = vadd.f32 1.0, %v3802_v20  ;;  %v4734_v56 = vadd.f32 %v4660_v61, %v5631_v40  ;;  %v3462_v46 = vmul.f32 -1.442695, %v4716_v21  ;;  %v4748_v61 = vpop.eup %3803  ;;  %v5639_v62 = vld [vmem:[#allocation4_spill] sm:$0xff] }
 0x124   :  { %3827 = vrcp.f32 %v678_v28  ;;  %v4739_v57 = vadd.f32 %v4675_v25, %v5632_v45  ;;  %v3496_v3 = vcombine.low %v4527_v48, %v4527_v48  ;;  %v3464_v2 = vmul.f32 -1.442695, %v4722_v26  ;;  %v4755_v25 = vpop.eup %3805  ;;  %v403_v6 = vpop.f32.mrf.mxu0  ;;  %v4819_v28 = vld [vmem:[%s5537_s3 + $0x28] sm:$0xff]  }
 0x125   :  { %1038 = vmatpush1.bf16.msra.mxu0 %v939_v52  ;;  %3829 = vrcp.f32 %v684_v63  ;;  %v4753_v50 = vadd.f32 %v4679_v47, %v5632_v45  ;;  %v3463_v36 = vmul.f32 -1.442695, %v4729_v4  ;;  %v4760_v13 = vadd.f32 %v4696_v42, %v5632_v45  ;;  %v4766_v38 = vpop.eup %3807 }
 0x126   :  { %1091 = vmatpush1.bf16.msra.mxu1 %v941_v29  ;;  %1039 = vmatprep.subr.bf16.mxu0 %v932_v43  ;;  %3831 = vrcp.f32 %v686_v11  ;;  %v5634_v31 = vcombine.high %v5633_v44, %v5633_v44  ;;  %v3465_v47 = vmul.f32 -1.442695, %v4734_v56  ;;  %v4771_v30 = vadd.f32 %v4699_v58, %v5632_v45  ;;  %v4781_v18 = vpop.eup %3809  ;;  %v474_v58 = vpop.f32.mrf.mxu1 }
 0x127   :  { %1092 = vmatprep.subr.bf16.mxu1 %v934_v33  ;;  %3833 = vrcp.f32 %v692_v7  ;;  %v5635_v42 = vcombine.high %v4527_v48, %v4527_v48  ;;  %v5636_v10 = vcombine.low %v5633_v44, %v5633_v44  ;;  %v3470_v24 = vmul.f32 -1.442695, %v4739_v57 }
 0x128   :  { %3835 = vpow2.f32 %v3462_v46  ;;  %v4785_v49 = vadd.f32 %v397_v0, %v5637_v51  ;;  %v1020_v48 = vsel %vm1000_vm2, %v3496_v3, 0  ;;  %v3472_v60 = vmul.f32 -1.442695, %v4753_v50  ;;  %v476_v20 = vpop.f32.mrf.mxu1 }
 0x129   :  { %1040 = vmatpush1.bf16.msra.mxu0 %v931_v12  ;;  %v1014_v1 = vsel %vm1000_vm2, %v5636_v10, 0  ;;  %v4790_v23 = vpop.eup %3811  ;;  %3837 = vpow2.f32 %v3464_v2  ;;  %v4794_v8 = vadd.f32 %v470_v22, %v5637_v51  ;;  %v5638_v59 = vmov 0  }
 0x12a   :  { %1093 = vmatpush1.bf16.msra.mxu1 %v933_v15  ;;  %3506 = vmatprep.subr.msk.bf16.mxu0 %vm1000_vm2, %v5634_v31  ;;  %v4799_v16 = vpop.eup %3813  ;;  %3839 = vpow2.f32 %v3463_v36  ;;  %v3471_v19 = vmul.f32 -1.442695, %v4760_v13  ;;  %v4803_v9 = vadd.f32 %v399_v27, %v5637_v51  ;;  %v3473_v14 = vmul.f32 -1.442695, %v4771_v30 }
 0x12b   :  { %3509 = vmatprep.subr.msk.bf16.mxu1 %vm1000_vm2, %v5635_v42  ;;  %v3816_v39 = vpop.eup %3815  ;;  %3841 = vpow2.f32 %v3465_v47  ;;  %v4808_v54 = vadd.f32 %v472_v41, %v5637_v51  ;;  %v3478_v29 = vmul.f32 -1.442695, %v4785_v49  ;;  %v4814_v0 = vadd.f32 %v401_v35, %v5639_v62 }
 0x12c   :  { %3501 = vmatmul.mubr.msk.bf16.vlgmr.msra.gmra.mxu0 %vm993_vm3, %v4744_v34  ;;  %v4810_v52 = vpop.eup %3817  ;;  %3843 = vpow2.f32 %v3470_v24  ;;  %v3480_v22 = vmul.f32 -1.442695, %v4794_v8  ;;  %v4825_v43 = vadd.f32 %v474_v58, %v5639_v62  ;;  %v3479_v33 = vmul.f32 -1.442695, %v4803_v9 }
 0x12d   :  { %3504 = vmatmul.mubr.msk.bf16.vlgmr.msra.gmra.mxu1 %vm993_vm3, %v4744_v34  ;;  %1067 = vmatprep.mubr.bf16.mxu0 %v5638_v59  ;;  %v4821_v40 = vpop.eup %3819  ;;  %3845 = vpow2.f32 %v3472_v60  ;;  %v4829_v12 = vadd.f32 %v403_v6, %v5639_v62  ;;  %v3481_v15 = vmul.f32 -1.442695, %v4808_v54  ;;  %v4833_v7 = vadd.f32 %v476_v20, %v5639_v62 }
 0x12e   :  { %1120 = vmatprep.mubr.bf16.mxu1 %v5638_v59  ;;  %1138 = vmatpush1.bf16.msra.mxu0 %v1014_v1  ;;  %v3822_v63 = vpop.eup %3821  ;;  %3847 = vpow2.f32 %v3471_v19  ;;  %v3486_v46 = vmul.f32 -1.442695, %v4814_v0  ;;  %v3488_v41 = vmul.f32 -1.442695, %v4825_v43  ;;  %v694_v47 = vadd.f32 1.0, %v3816_v39 }
 0x12f   :  { %1191 = vmatpush1.bf16.msra.mxu1 %v1020_v48  ;;  %v3824_v11 = vpop.eup %3823  ;;  %3849 = vpow2.f32 %v3473_v14  ;;  %v3487_v2 = vmul.f32 -1.442695, %v4829_v12  ;;  %v3489_v44 = vmul.f32 -1.442695, %v4833_v7  ;;  %v700_v42 = vadd.f32 1.0, %v3822_v63 }
 0x130   :  { %v4835_v27 = vpop.eup %3825  ;;  %3851 = vpow2.f32 %v3478_v29  ;;  %v702_v1 = vadd.f32 1.0, %v3824_v11 }
 0x131   :  { %v4840_v45 = vpop.eup %3827  ;;  %3853 = vpow2.f32 %v3480_v22 }
 0x132   :  { %v4846_v3 = vpop.eup %3829  ;;  %3855 = vpow2.f32 %v3479_v33 }
 0x133   :  { %v4850_v36 = vpop.eup %3831  ;;  %3857 = vpow2.f32 %v3481_v15 }
 0x134   :  { %3502 = vmatmul.mubr.msk.bf16.gmra.mxu0 %vm993_vm3, %v4819_v28  ;;  %v4853_v31 = vpop.eup %3833  ;;  %3859 = vpow2.f32 %v3486_v46 }
 0x135   :  { %3505 = vmatmul.mubr.msk.bf16.gmra.mxu1 %vm993_vm3, %v4819_v28  ;;  %1163 = vmatprep.mubr.bf16.mxu0 %v5638_v59  ;;  %v3836_v35 = vpop.eup %3835  ;;  %3861 = vpow2.f32 %v3488_v41 }
 0x136   :  { %1216 = vmatprep.mubr.bf16.mxu1 %v5638_v59  ;;  %v3838_v10 = vpop.eup %3837  ;;  %3863 = vpow2.f32 %v3487_v2 }
 0x137   :  { %v3840_v24 = vpop.eup %3839  ;;  %3865 = vpow2.f32 %v3489_v44 }
 0x138   :  { %v3842_v51 = vpop.eup %3841  ;;  %3867 = vrcp.f32 %v694_v47  ;;  %v708_v58 = vadd.f32 1.0, %v3840_v24 }
 0x139   :  { %v3844_v48 = vpop.eup %3843  ;;  %3869 = vrcp.f32 %v700_v42  ;;  %v710_v60 = vadd.f32 1.0, %v3842_v51 }
 0x13a   :  { %v3846_v19 = vpop.eup %3845  ;;  %3871 = vrcp.f32 %v702_v1  ;;  %v715_v14 = vadd.f32 1.0, %v3844_v48 }
 0x13b   :  { %v3848_v6 = vpop.eup %3847  ;;  %3873 = vrcp.f32 %v708_v58  ;;  %v717_v51 = vadd.f32 1.0, %v3846_v19  ;;  %v691_v19 = vadd.f32 1.0, %v4790_v23  ;;  %v677_v23 = vadd.f32 1.0, %v4755_v25 }
 0x13c   :  { %v3850_v39 = vpop.eup %3849  ;;  %3875 = vrcp.f32 %v710_v60  ;;  %v716_v29 = vadd.f32 1.0, %v3848_v6  ;;  %v707_v60 = vadd.f32 1.0, %v3836_v35  ;;  %v693_v35 = vadd.f32 1.0, %v4799_v16 }
 0x13d   :  { %v3852_v62 = vpop.eup %3851  ;;  %3877 = vrcp.f32 %v715_v14  ;;  %v718_v20 = vadd.f32 1.0, %v3850_v39  ;;  %v709_v39 = vadd.f32 1.0, %v3838_v10  ;;  %v683_v10 = vadd.f32 1.0, %v4766_v38 }
 0x13e   :  { %v3854_v22 = vpop.eup %3853  ;;  %3879 = vrcp.f32 %v716_v29  ;;  %v723_v63 = vadd.f32 1.0, %v3852_v62  ;;  %v699_v62 = vadd.f32 1.0, %v4810_v52  ;;  %v685_v52 = vadd.f32 1.0, %v4781_v18 }
 0x13f   :  { %v3856_v33 = vpop.eup %3855  ;;  %3881 = vrcp.f32 %v718_v20  ;;  %v725_v11 = vadd.f32 1.0, %v3854_v22  ;;  %v701_v22 = vadd.f32 1.0, %v4821_v40  ;;  %v675_v40 = vadd.f32 1.0, %v4748_v61 }
 0x140   :  { %v3858_v15 = vpop.eup %3857  ;;  %3883 = vrcp.f32 %v723_v63  ;;  %v724_v46 = vadd.f32 1.0, %v3856_v33 }
 0x141   :  { %v3860_v41 = vpop.eup %3859  ;;  %3885 = vrcp.f32 %v725_v11  ;;  %v726_v2 = vadd.f32 1.0, %v3858_v15 }
 0x142   :  { %v3862_v44 = vpop.eup %3861  ;;  %3887 = vrcp.f32 %v724_v46  ;;  %v731_v47 = vadd.f32 1.0, %v3860_v41 }
 0x143   :  { %v3864_v42 = vpop.eup %3863  ;;  %3889 = vrcp.f32 %v726_v2  ;;  %v733_v1 = vadd.f32 1.0, %v3862_v44 }
 0x144   :  { %v3866_v24 = vpop.eup %3865  ;;  %3891 = vrcp.f32 %v731_v47  ;;  %v732_v58 = vadd.f32 1.0, %v3864_v42 }
 0x145   :  { %v4855_v48 = vpop.eup %3867  ;;  %3893 = vrcp.f32 %v733_v1  ;;  %v734_v14 = vadd.f32 1.0, %v3866_v24 }
 0x146   :  { %v3870_v6 = vpop.eup %3869  ;;  %3895 = vrcp.f32 %v732_v58 }
 0x147   :  { %v3872_v29 = vpop.eup %3871  ;;  %3897 = vrcp.f32 %v734_v14 }
 0x148   :  { %v3874_v20 = vpop.eup %3873  ;;  %3899 = vrcp.f32 %v717_v51 }
 0x149   :  { %v3876_v63 = vpop.eup %3875  ;;  %3901 = vrcp.f32 %v707_v60 }
 0x14a   :  { %v3878_v33 = vpop.eup %3877  ;;  %3903 = vrcp.f32 %v709_v39 }
 0x14b   :  { %v3880_v11 = vpop.eup %3879  ;;  %3905 = vrcp.f32 %v699_v62 }
 0x14c   :  { %v3882_v15 = vpop.eup %3881  ;;  %3907 = vrcp.f32 %v701_v22  ;;  %v908_v1 = vmul.f32 %v3880_v11, %v4760_v13 }
 0x14d   :  { %v3884_v46 = vpop.eup %3883  ;;  %3909 = vrcp.f32 %v691_v19  ;;  %v910_v58 = vmul.f32 %v3882_v15, %v4771_v30 }
 0x14e   :  { %v3886_v41 = vpop.eup %3885  ;;  %3911 = vrcp.f32 %v693_v35  ;;  %v915_v60 = vmul.f32 %v3884_v46, %v4785_v49  ;;  %v892_v49 = vmul.f32 %v3870_v6, %v4652_v55 }
 0x14f   :  { %v3888_v2 = vpop.eup %3887  ;;  %3913 = vrcp.f32 %v683_v10  ;;  %v917_v13 = vmul.f32 %v3886_v41, %v4794_v8 }
 0x150   :  { %v3890_v16 = vpop.eup %3889  ;;  %3915 = vrcp.f32 %v685_v52  ;;  %v916_v61 = vmul.f32 %v3888_v2, %v4803_v9  ;;  %v5644_v2 = vld [vmem:[#allocation32_spill] sm:$0xff] }
 0x151   :  { %v3892_v44 = vpop.eup %3891  ;;  %3917 = vrcp.f32 %v675_v40  ;;  %v918_v14 = vmul.f32 %v3890_v16, %v4808_v54  ;;  %v5642_v40 = vld [vmem:[#allocation31_spill] sm:$0xff] }
 0x152   :  { %v3894_v38 = vpop.eup %3893  ;;  %3919 = vrcp.f32 %v677_v23  ;;  %v923_v18 = vmul.f32 %v3892_v44, %v4814_v0  ;;  %v900_v0 = vmul.f32 %v3874_v20, %v4729_v4  ;;  %v894_v4 = vmul.f32 %v3872_v29, %v4690_v32  ;;  %v5640_v29 = vld [vmem:[#allocation27_spill] sm:$0xff] }
 0x153   :  { %v3896_v47 = vpop.eup %3895  ;;  %v925_v24 = vmul.f32 %v3894_v38, %v4825_v43  ;;  %v902_v43 = vmul.f32 %v3876_v63, %v4734_v56  ;;  %v5646_v38 = vld [vmem:[#allocation29_spill] sm:$0xff] }
 0x154   :  { %v3898_v42 = vpop.eup %3897  ;;  %v924_v25 = vmul.f32 %v3896_v47, %v4829_v12  ;;  %v907_v12 = vmul.f32 %v3878_v33, %v4739_v57  ;;  %v959_v19 = vpack.c.bf16 %v923_v18, %v915_v60  ;;  %v884_v57 = vmul.f32 %v4853_v31, %v4569_v53 }
 0x155   :  { %v3900_v51 = vpop.eup %3899  ;;  %v926_v39 = vmul.f32 %v3898_v42, %v4833_v7  ;;  %v961_v11 = vpack.c.bf16 %v925_v24, %v917_v13  ;;  %v952_v7 = vpack.c.bf16 %v908_v1, %v900_v0  ;;  %v954_v56 = vpack.c.bf16 %v910_v58, %v902_v43  ;;  %v5648_v24 = vld [vmem:[#allocation24_spill] sm:$0xff]  ;;  %v3654_v0 = vld [vmem:[%s5540_s1] sm:$0xff]   ;;  %v1332_v13 = vpop.permute.xlu0 %1331 }
 0x156   :  { %v3902_v62 = vpop.eup %3901  ;;  %v960_v22 = vpack.c.bf16 %v924_v25, %v916_v61  ;;  %v909_v54 = vmul.f32 %v3900_v51, %v4753_v50  ;;  %v886_v50 = vmul.f32 %v4855_v48, %v4606_v17  ;;  %v876_v33 = vmul.f32 %v4846_v3, %v5640_v29  ;;  %v5649_v51 = vld [vmem:[#allocation26_spill] sm:$0xff] }
 0x157   :  { %v3904_v9 = vpop.eup %3903  ;;  %v962_v35 = vpack.c.bf16 %v926_v39, %v918_v14  ;;  %v899_v8 = vmul.f32 %v3902_v62, %v4716_v21  ;;  %v944_v53 = vpack.c.bf16 %v892_v49, %v884_v57  ;;  %v4150_v39 = vmov 0.0   ;;  %v3653_v62 = vld [vmem:[%s5537_s3 + $0x40] sm:$0xff]  }
 0x158   :  { %v3906_v30 = vpop.eup %3905  ;;  %1139 = vmatprep.subr.bf16.mxu0 %v960_v22  ;;  %v901_v63 = vmul.f32 %v3904_v9, %v4722_v26  ;;  %v5641_v26 = vld [vmem:[#allocation28_spill] sm:$0xff]  ;;  %v946_v17 = vpack.c.bf16 %v894_v4, %v886_v50  ;;  %v1337_v22 = vpop.permute.xlu1 %1336 }
 0x159   :  { %v3908_v10 = vpop.eup %3907  ;;  %1192 = vmatprep.subr.bf16.mxu1 %v962_v35  ;;  %1140 = vmatpush1.bf16.msra.mxu0 %v959_v19  ;;  %v891_v6 = vmul.f32 %v3906_v30, %v4645_v5  ;;  %v951_v32 = vpack.c.bf16 %v907_v12, %v899_v8  ;;  %v878_v46 = vmul.f32 %v4850_v36, %v5641_v26  ;;  %v5643_v5 = vld [vmem:[#allocation23_spill] sm:$0xff]  ;;  %v5647_v36 = vld [vmem:[#allocation30_spill] sm:$0xff]  ;;  %v1322_v9 = vpop.permute.xlu0 %1321 }
 0x15a   :  { %v3910_v20 = vpop.eup %3909  ;;  %1193 = vmatpush1.bf16.msra.mxu1 %v961_v11  ;;  %1141 = vmatprep.subr.bf16.mxu0 %v952_v7  ;;  %v893_v15 = vmul.f32 %v3908_v10, %v4649_v37  ;;  %v953_v52 = vpack.c.bf16 %v909_v54, %v901_v63  ;;  %v868_v23 = vmul.f32 %v4835_v27, %v5643_v5  ;;  %v5645_v37 = vld [vmem:[#allocation25_spill] sm:$0xff] }
 0x15b   :  { %v3912_v55 = vpop.eup %3911  ;;  %1194 = vmatprep.subr.bf16.mxu1 %v954_v56  ;;  %v883_v41 = vmul.f32 %v3910_v20, %v5642_v40  ;;  %v870_v44 = vmul.f32 %v4840_v45, %v5645_v37  ;;  %v3652_v45 = vld [vmem:[%s5537_s3 + $0x48] sm:$0xff]  }
 0x15c   :  { %v3914_v21 = vpop.eup %3913  ;;  %v885_v16 = vmul.f32 %v3912_v55, %v5644_v2  ;;  %v936_v61 = vpack.c.bf16 %v876_v33, %v868_v23  ;;  %v1327_v11 = vpop.permute.xlu1 %1326 }
 0x15d   :  { %v3916_v31 = vpop.eup %3915  ;;  %1142 = vmatpush1.bf16.msra.mxu0 %v951_v32  ;;  %v875_v47 = vmul.f32 %v3914_v21, %v5646_v38  ;;  %v943_v18 = vpack.c.bf16 %v891_v6, %v883_v41  ;;  %v938_v27 = vpack.c.bf16 %v878_v46, %v870_v44 }
 0x15e   :  { %v3918_v48 = vpop.eup %3917  ;;  %1195 = vmatpush1.bf16.msra.mxu1 %v953_v52  ;;  %1143 = vmatprep.subr.bf16.mxu0 %v944_v53  ;;  %v877_v42 = vmul.f32 %v3916_v31, %v5647_v36  ;;  %v945_v1 = vpack.c.bf16 %v893_v15, %v885_v16 }
 0x15f   :  { %v3920_v3 = vpop.eup %3919  ;;  %1196 = vmatprep.subr.bf16.mxu1 %v946_v17  ;;  %v867_v25 = vmul.f32 %v3918_v48, %v5648_v24 }
 0x160   :  { %v869_v58 = vmul.f32 %v3920_v3, %v5649_v51 }
 0x161   :  { %1144 = vmatpush1.bf16.msra.mxu0 %v943_v18  ;;  %v935_v60 = vpack.c.bf16 %v875_v47, %v867_v25 }
 0x162   :  { %1197 = vmatpush1.bf16.msra.mxu1 %v945_v1  ;;  %1145 = vmatprep.subr.bf16.mxu0 %v936_v61  ;;  %v937_v14 = vpack.c.bf16 %v877_v42, %v869_v58 }
 0x163   :  { %1198 = vmatprep.subr.bf16.mxu1 %v938_v27 }
 0x165   :  { %1146 = vmatpush1.bf16.msra.mxu0 %v935_v60 }
 0x166   :  { %1199 = vmatpush1.bf16.msra.mxu1 %v937_v14  ;;  %3621 = vmatprep.subr.bf16.mxu0 %v4150_v39 }
 0x168   :  { %3507 = vmatmul.mubr.msk.bf16.vlgmr.msra.gmra.mxu0 %vm993_vm3, %v4744_v34 }
 0x169   :  { %1173 = vmatprep.mubr.bf16.mxu0 %v5638_v59  ;;  %3622 = vmatpush3.bf16.msra.mxu0 %v3652_v45 }
 0x16a   :  { %3623 = vmatprep.subr.bf16.mxu0 %v4150_v39  ;;  %3510 = vmatmul.mubr.msk.bf16.vlgmr.msra.gmra.mxu1 %vm993_vm3, %v4744_v34  ;;  %v4152_v34 = vmov 1  }
 0x16b   :  { %1226 = vmatprep.mubr.bf16.mxu1 %v5638_v59  ;;  %3636 = vset.pattern.permute.xlu0 %v4152_v34 }
 0x16d   :  { %3624 = vmatpush3.bf16.msra.mxu0 %v3653_v62 }
 0x170   :  { %3508 = vmatmul.mubr.msk.bf16.gmra.mxu0 %vm993_vm3, %v4819_v28 }
 0x171   :  { %3625 = vmatprep.mubr.msk.bf16.mxu0 %vm4151_vm4, %v4150_v39 }
 0x172   :  { %3511 = vmatmul.mubr.msk.bf16.gmra.mxu1 %vm993_vm3, %v4819_v28 }
 0x173   :  { %1523 = vmatprep.mubr.bf16.mxu1 %v5638_v59 }
 0x178   :  { %3626 = vmatmul.mubr.msk.bf16.vlgmr.msra.gmra.mxu0 %vm1274_vm5, %v3654_v0 }
 0x179   :  { %1576 = vmatprep.mubr.bf16.mxu0 %v5638_v59 }
 0x1ec   :  { %v1059_v43 = vpop.f32.mrf.mxu0 }
 0x1ed   :  { %v4925_v12 = vadd.f32 %v1322_v9, %v1059_v43  ;;  %v1112_v28 = vpop.f32.mrf.mxu1 }
 0x1ee   :  { %v4927_v19 = vadd.f32 %v1322_v9, %v1112_v28  ;;  %v1061_v35 = vpop.f32.mrf.mxu0 }
 0x1ef   :  { %v3516_v30 = vmul.f32 -1.442695, %v4925_v12  ;;  %v4930_v49 = vadd.f32 %v1322_v9, %v1061_v35  ;;  %v1114_v54 = vpop.f32.mrf.mxu1 }
 0x1f0   :  { %v3518_v7 = vmul.f32 -1.442695, %v4927_v19  ;;  %v4933_v10 = vadd.f32 %v1322_v9, %v1114_v54  ;;  %v1063_v4 = vpop.f32.mrf.mxu0 }
 0x1f1   :  { %3921 = vpow2.f32 %v3516_v30  ;;  %v3517_v8 = vmul.f32 -1.442695, %v4930_v49  ;;  %v4936_v56 = vadd.f32 %v1327_v11, %v1063_v4  ;;  %v1116_v20 = vpop.f32.mrf.mxu1 }
 0x1f2   :  { %3923 = vpow2.f32 %v3518_v7  ;;  %v3519_v57 = vmul.f32 -1.442695, %v4933_v10  ;;  %v4939_v63 = vadd.f32 %v1327_v11, %v1116_v20  ;;  %v1065_v55 = vpop.f32.mrf.mxu0 }
 0x1f3   :  { %3925 = vpow2.f32 %v3517_v8  ;;  %v3520_v50 = vmul.f32 -1.442695, %v4936_v56  ;;  %v4942_v6 = vadd.f32 %v1327_v11, %v1065_v55  ;;  %v1118_v32 = vpop.f32.mrf.mxu1 }
 0x1f4   :  { %3927 = vpow2.f32 %v3519_v57  ;;  %v3522_v21 = vmul.f32 -1.442695, %v4939_v63  ;;  %v4945_v29 = vadd.f32 %v1327_v11, %v1118_v32  ;;  %v1069_v33 = vpop.f32.mrf.mxu0 }
 0x1f5   :  { %3929 = vpow2.f32 %v3520_v50  ;;  %v3521_v15 = vmul.f32 -1.442695, %v4942_v6  ;;  %v4948_v52 = vadd.f32 %v1332_v13, %v1069_v33  ;;  %v1122_v53 = vpop.f32.mrf.mxu1 }
 0x1f6   :  { %3931 = vpow2.f32 %v3522_v21  ;;  %v3523_v31 = vmul.f32 -1.442695, %v4945_v29  ;;  %v4951_v26 = vadd.f32 %v1332_v13, %v1122_v53  ;;  %v1071_v46 = vpop.f32.mrf.mxu0 }
 0x1f7   :  { %3933 = vpow2.f32 %v3521_v15  ;;  %v3524_v40 = vmul.f32 -1.442695, %v4948_v52  ;;  %v4954_v41 = vadd.f32 %v1332_v13, %v1071_v46  ;;  %v1124_v17 = vpop.f32.mrf.mxu1 }
 0x1f8   :  { %3935 = vpow2.f32 %v3523_v31  ;;  %v3526_v48 = vmul.f32 -1.442695, %v4951_v26  ;;  %v4957_v5 = vadd.f32 %v1332_v13, %v1124_v17  ;;  %v1073_v23 = vpop.f32.mrf.mxu0 }
 0x1f9   :  { %3937 = vpow2.f32 %v3524_v40  ;;  %v3525_v2 = vmul.f32 -1.442695, %v4954_v41  ;;  %v4960_v16 = vadd.f32 %v1337_v22, %v1073_v23  ;;  %v1126_v3 = vpop.f32.mrf.mxu1 }
 0x1fa   :  { %3939 = vpow2.f32 %v3526_v48  ;;  %v3527_v37 = vmul.f32 -1.442695, %v4957_v5  ;;  %v4963_v44 = vadd.f32 %v1337_v22, %v1126_v3  ;;  %v1075_v38 = vpop.f32.mrf.mxu0 }
 0x1fb   :  { %3941 = vpow2.f32 %v3525_v2  ;;  %v3528_v47 = vmul.f32 -1.442695, %v4960_v16  ;;  %v4966_v18 = vadd.f32 %v1337_v22, %v1075_v38  ;;  %v1128_v36 = vpop.f32.mrf.mxu1 }
 0x1fc   :  { %3943 = vpow2.f32 %v3527_v37  ;;  %v3530_v42 = vmul.f32 -1.442695, %v4963_v44  ;;  %v4969_v1 = vadd.f32 %v1337_v22, %v1128_v36 }
 0x1fd   :  { %3945 = vpow2.f32 %v3528_v47  ;;  %v3529_v61 = vmul.f32 -1.442695, %v4966_v18 }
 0x1fe   :  { %v3922_v24 = vpop.eup %3921  ;;  %3947 = vpow2.f32 %v3530_v42  ;;  %v3531_v25 = vmul.f32 -1.442695, %v4969_v1 }
 0x1ff   :  { %v3924_v27 = vpop.eup %3923  ;;  %3949 = vpow2.f32 %v3529_v61  ;;  %v1403_v33 = vadd.f32 1.0, %v3922_v24 }
 0x200   :  { %v3926_v51 = vpop.eup %3925  ;;  %3951 = vpow2.f32 %v3531_v25  ;;  %v1405_v53 = vadd.f32 1.0, %v3924_v27 }
 0x201   :  { %v3928_v58 = vpop.eup %3927  ;;  %v1404_v60 = vadd.f32 1.0, %v3926_v51 }
 0x202   :  { %v3930_v14 = vpop.eup %3929  ;;  %v1406_v45 = vadd.f32 1.0, %v3928_v58 }
 0x203   :  { %v3932_v39 = vpop.eup %3931  ;;  %v1407_v62 = vadd.f32 1.0, %v3930_v14  ;;  %3953 = vrcp.f32 %v1404_v60 }
 0x204   :  { %v3934_v0 = vpop.eup %3933  ;;  %3955 = vrcp.f32 %v1406_v45  ;;  %v1409_v32 = vadd.f32 1.0, %v3932_v39 }
 0x205   :  { %v3936_v34 = vpop.eup %3935  ;;  %v1408_v13 = vadd.f32 1.0, %v3934_v0  ;;  %3957 = vrcp.f32 %v1407_v62 }
 0x206   :  { %v3938_v22 = vpop.eup %3937  ;;  %v1410_v9 = vadd.f32 1.0, %v3936_v34 }
 0x207   :  { %v3940_v43 = vpop.eup %3939  ;;  %3959 = vrcp.f32 %v1408_v13  ;;  %v1411_v28 = vadd.f32 1.0, %v3938_v22  ;;  %v5053_v13 = vld [vmem:[%s5537_s3 + $0x38] sm:$0xff]  }
 0x208   :  { %v3942_v35 = vpop.eup %3941  ;;  %3961 = vrcp.f32 %v1410_v9  ;;  %v1413_v30 = vadd.f32 1.0, %v3940_v43  ;;  %5654 = vst [vmem:[#allocation11_spill] sm:$0xff] %v5053_v13 }
 0x209   :  { %v3944_v54 = vpop.eup %3943  ;;  %3963 = vrcp.f32 %v1411_v28  ;;  %v1412_v11 = vadd.f32 1.0, %v3942_v35 }
 0x20a   :  { %v3946_v7 = vpop.eup %3945  ;;  %3965 = vrcp.f32 %v1413_v30  ;;  %v1414_v4 = vadd.f32 1.0, %v3944_v54 }
 0x20b   :  { %v3948_v8 = vpop.eup %3947  ;;  %3967 = vrcp.f32 %v1412_v11  ;;  %v1415_v20 = vadd.f32 1.0, %v3946_v7 }
 0x20c   :  { %v3950_v57 = vpop.eup %3949  ;;  %3969 = vrcp.f32 %v1414_v4  ;;  %v1417_v55 = vadd.f32 1.0, %v3948_v8  ;;  %v4145_v4 = vld [vmem:[%s5539_s2 + $0x10] sm:$0xff]  ;;  %v4146_v8 = vld [vmem:[%s5539_s2 + $0x18] sm:$0xff] }
 0x20d   :  { %v3952_v50 = vpop.eup %3951  ;;  %3971 = vrcp.f32 %v1415_v20  ;;  %v1416_v21 = vadd.f32 1.0, %v3950_v57  ;;  %v4147_v20 = vld [vmem:[%s5539_s2] sm:$0xff]  ;;  %v4148_v57 = vld [vmem:[%s5539_s2 + $0x8] sm:$0xff] }
 0x20e   :  { %3973 = vrcp.f32 %v1417_v55  ;;  %v1418_v15 = vadd.f32 1.0, %v3952_v50 }
 0x20f   :  { %3975 = vrcp.f32 %v1416_v21 }
 0x210   :  { %3977 = vrcp.f32 %v1418_v15  ;;  %v3954_v31 = vpop.eup %3953 }
 0x211   :  { %3979 = vrcp.f32 %v1409_v32  ;;  %v3956_v46 = vpop.eup %3955 }
 0x212   :  { %3981 = vrcp.f32 %v1403_v33  ;;  %v3958_v40 = vpop.eup %3957 }
 0x213   :  { %3983 = vrcp.f32 %v1405_v53 }
 0x214   :  { %v3960_v17 = vpop.eup %3959 }
 0x215   :  { %v3962_v48 = vpop.eup %3961  ;;  %v4977_v24 = vmul.f32 %v3960_v17, %v4942_v6 }
 0x216   :  { %v3964_v23 = vpop.eup %3963  ;;  %v4989_v60 = vmul.f32 %v3962_v48, %v4945_v29 }
 0x217   :  { %v3966_v2 = vpop.eup %3965 }
 0x218   :  { %v3968_v3 = vpop.eup %3967 }
 0x219   :  { %v3970_v37 = vpop.eup %3969  ;;  %v4980_v25 = vmul.f32 %v3968_v3, %v4954_v41  ;;  %v2985_v3 = vld [vmem:[%s5538_s4 + $0x58] sm:$0xff] }
 0x21a   :  { %v3972_v38 = vpop.eup %3971  ;;  %v4995_v14 = vmul.f32 %v3970_v37, %v4957_v5  ;;  %v5012_v5 = vmul.f32 %v3958_v40, %v4936_v56 }
 0x21b   :  { %v3974_v47 = vpop.eup %3973  ;;  %v4974_v42 = vmul.f32 %v3972_v38, %v4960_v16  ;;  %v4992_v16 = vmul.f32 %v3964_v23, %v4948_v52  ;;  %v5009_v52 = vmul.f32 %v3956_v46, %v4933_v10  ;;  %v2983_v38 = vld [vmem:[%s5538_s4 + $0x48] sm:$0xff] }
 0x21c   :  { %v3976_v36 = vpop.eup %3975  ;;  %v4983_v27 = vmul.f32 %v3974_v47, %v4963_v44  ;;  %v5001_v44 = vmul.f32 %v3954_v31, %v4930_v49 }
 0x21d   :  { %v3978_v61 = vpop.eup %3977  ;;  %v4986_v51 = vmul.f32 %v3976_v36, %v4966_v18  ;;  %v5004_v18 = vmul.f32 %v3966_v2, %v4951_v26  ;;  %v1470_v56 = vpack.c.bf16 %v4989_v60, %v5009_v52  ;;  %v2984_v36 = vld [vmem:[%s5538_s4 + $0x50] sm:$0xff] }
 0x21e   :  { %v3980_v58 = vpop.eup %3979  ;;  %v4998_v6 = vmul.f32 %v3978_v61, %v4969_v1  ;;  %v1471_v1 = vpack.c.bf16 %v4974_v42, %v4992_v16  ;;  %v1468_v10 = vpack.c.bf16 %v4977_v24, %v5001_v44 }
 0x21f   :  { %v3982_v41 = vpop.eup %3981  ;;  %v1472_v29 = vpack.c.bf16 %v4986_v51, %v4980_v25  ;;  %v5019_v39 = vmul.f32 %v3980_v58, %v4939_v63  ;;  %v1473_v26 = vpack.c.bf16 %v4983_v27, %v5004_v18  ;;  %v1254_v58 = vld [vmem:[%s5538_s4 + $0x40] sm:$0xf] }
 0x220   :  { %v3984_v45 = vpop.eup %3983  ;;  %v1474_v49 = vpack.c.bf16 %v4998_v6, %v4995_v14  ;;  %v5026_v62 = vmul.f32 %v3982_v41, %v4925_v12  ;;  %v5040_v12 = vld [vmem:[%s5537_s3 + $0x30] sm:$0xff]  }
 0x221   :  { %5650 = vst [vmem:[#allocation17_spill] sm:$0xff] %v5019_v39  ;;  %1503 = vmatprep.subr.bf16.mxu1 %v1472_v29  ;;  %v5031_v0 = vmul.f32 %v3984_v45, %v4927_v19  ;;  %5653 = vst [vmem:[#allocation16_spill] sm:$0xff] %v5040_v12 }
 0x222   :  { %5651 = vst [vmem:[#allocation14_spill] sm:$0xff] %v5026_v62  ;;  %1556 = vmatprep.subr.bf16.mxu0 %v1474_v49  ;;  %1504 = vmatpush1.bf16.msra.mxu1 %v1471_v1  ;;  %v1467_v63 = vpack.c.bf16 %v5012_v5, %v5026_v62 }
 0x223   :  { %5652 = vst [vmem:[#allocation15_spill] sm:$0xff] %v5031_v0  ;;  %1557 = vmatpush1.bf16.msra.mxu0 %v1473_v26  ;;  %1505 = vmatprep.subr.bf16.mxu1 %v1468_v10  ;;  %v1469_v34 = vpack.c.bf16 %v5019_v39, %v5031_v0 }
 0x224   :  { %1558 = vmatprep.subr.bf16.mxu0 %v1470_v56 }
 0x226   :  { %1506 = vmatpush1.bf16.msra.mxu1 %v1467_v63 }
 0x227   :  { %1559 = vmatpush1.bf16.msra.mxu0 %v1469_v34 }
 0x228   :  { %v5048_v19 = vpop.f32.mrf.mxu0 }
 0x229   :  { %3534 = vmatmul.mubr.msk.bf16.vlgmr.msra.gmra.mxu1 %vm1274_vm5, %v5040_v12 }
 0x22a   :  { %3536 = vmatmul.mubr.msk.bf16.vlgmr.msra.gmra.mxu0 %vm1274_vm5, %v5040_v12  ;;  %1533 = vmatprep.mubr.bf16.mxu1 %v5638_v59  ;;  %v5055_v22 = vpop.f32.mrf.mxu0  ;;  %v5093_v32 = vpop.f32.mrf.mxu1 }
 0x22b   :  { %1586 = vmatprep.mubr.bf16.mxu0 %v5638_v59 }
 0x22c   :  { %v5057_v9 = vpop.f32.mrf.mxu0  ;;  %v5095_v21 = vpop.f32.mrf.mxu1 }
 0x22e   :  { %v5061_v43 = vpop.f32.mrf.mxu0  ;;  %v5097_v33 = vpop.f32.mrf.mxu1 }
 0x230   :  { %v5067_v28 = vpop.f32.mrf.mxu0  ;;  %v5099_v53 = vpop.f32.mrf.mxu1 }
 0x231   :  { %3535 = vmatmul.mubr.msk.bf16.gmra.mxu1 %vm1274_vm5, %v5053_v13 }
 0x232   :  { %3537 = vmatmul.mubr.msk.bf16.gmra.mxu0 %vm1274_vm5, %v5053_v13  ;;  %1641 = vmatprep.mubr.bf16.mxu1 %v5638_v59  ;;  %v5069_v35 = vpop.f32.mrf.mxu0  ;;  %v5101_v31 = vpop.f32.mrf.mxu1 }
 0x233   :  { %1682 = vmatprep.mubr.bf16.mxu0 %v5638_v59 }
 0x234   :  { %v5071_v30 = vpop.f32.mrf.mxu0  ;;  %v5103_v46 = vpop.f32.mrf.mxu1 }
 0x236   :  { %v5073_v54 = vpop.f32.mrf.mxu0  ;;  %v5105_v40 = vpop.f32.mrf.mxu1 }
 0x238   :  { %v5075_v11 = vpop.f32.mrf.mxu0  ;;  %v1234_v48 = vpop.f32.mrf.mxu1 }
 0x239   :  { %1760 = vrot.lane.b32.xlu0 %v5075_v11, %s4153_s12  ;;  %v1597_v13 = vpack.c.bf16 %v5075_v11, %v5075_v11 }
 0x23a   :  { %v3627_v7 = vpop.f32.mrf.mxu0 }
 0x23c   :  { %v5090_v55 = vpop.f32.mrf.mxu0 }
 0x23d   :  { %2180 = vperm.xlu0 %3636, %v4145_v4   ;;  %5655 = vst [vmem:[#allocation12_spill] sm:$0xff] %v5090_v55 }
 0x23e   :  { %v3628_v50 = vpop.f32.mrf.mxu0 }
 0x241   :  { %2184 = vperm.xlu0 %3636, %v4146_v8  }
 0x245   :  { %2172 = vperm.xlu0 %3636, %v4147_v20  }
 0x249   :  { %2176 = vperm.xlu0 %3636, %v4148_v57  }
 0x24d   :  { %2592 = vrot.lane.b32.xlu0 %v5090_v55, %s4153_s12 }
 0x2ab   :  { %v1761_v15 = vpop.permute.xlu0 %1760 }
 0x2ac   :  { %1763 = vxpose.xlu1.b32.start.end [1/1] (short) (narrow) %v1761_v15, 32 }
 0x2b8   :  { %v5107_v17 = vpop.permute.xlu0 %2180 }
 0x2bc   :  { %v5109_v23 = vpop.permute.xlu0 %2184 }
 0x2bd   :  { %v5112_v2 = vadd.f32 %v5109_v23, %v1234_v48 }
 0x2c0   :  { %v5117_v37 = vpop.permute.xlu0 %2172 }
 0x2c4   :  { %v5122_v47 = vpop.permute.xlu0 %2176 }
 0x2c8   :  { %v2593_v61 = vpop.permute.xlu0 %2592 }
 0x2c9   :  { %2595 = vxpose.xlu0.b32.start.end [1/1] (short) (narrow) %v2593_v61, 32 }
 0x2d6   :  { %2999 = vperm.xlu1 %3635, %v2985_v3  }
 0x2da   :  { %2989 = vperm.xlu1 %3635, %v2983_v38  }
 0x2de   :  { %2994 = vperm.xlu1 %3635, %v2984_v36  }
 0x2e2   :  { %2083 = vperm.xlu1 %3635, %v1254_v58  }
 0x2e9   :  { %v1525_v41 = vpop.f32.mrf.mxu1 }
 0x2ea   :  { %v1578_v29 = vpop.f32.mrf.mxu0 }
 0x2eb   :  { %v1527_v45 = vpop.f32.mrf.mxu1 }
 0x2ec   :  { %v1580_v1 = vpop.f32.mrf.mxu0 }
 0x2ed   :  { %v1529_v49 = vpop.f32.mrf.mxu1 }
 0x2ee   :  { %v1582_v26 = vpop.f32.mrf.mxu0  ;;  %v1598_v58 = vpack.c.bf16 %v1529_v49, %v1525_v41 }
 0x2ef   :  { %v1531_v10 = vpop.f32.mrf.mxu1  ;;  %v1600_v55 = vpack.c.bf16 %v1582_v26, %v1578_v29 }
 0x2f0   :  { %v1584_v56 = vpop.f32.mrf.mxu0  ;;  %v1599_v38 = vpack.c.bf16 %v1531_v10, %v1527_v45 }
 0x2f1   :  { %v1535_v63 = vpop.f32.mrf.mxu1  ;;  %v1601_v61 = vpack.c.bf16 %v1584_v56, %v1580_v1 }
 0x2f2   :  { %v1588_v34 = vpop.f32.mrf.mxu0  ;;  %3637 = vset.pattern.permute.xlu0 %v5638_v59 }
 0x2f3   :  { %v1537_v7 = vpop.f32.mrf.mxu1 }
 0x2f4   :  { %v1590_v4 = vpop.f32.mrf.mxu0 }
 0x2f5   :  { %v1539_v8 = vpop.f32.mrf.mxu1 }
 0x2f6   :  { %v1592_v20 = vpop.f32.mrf.mxu0  ;;  %v1602_v48 = vpack.c.bf16 %v1539_v8, %v1535_v63 }
 0x2f7   :  { %v1541_v57 = vpop.f32.mrf.mxu1  ;;  %v1604_v36 = vpack.c.bf16 %v1592_v20, %v1588_v34 }
 0x2f8   :  { %v1603_v50 = vpack.c.bf16 %v1541_v57, %v1537_v7  ;;  %v1594_v15 = vpop.f32.mrf.mxu0 }
 0x2f9   :  { %v1605_v3 = vpack.c.bf16 %v1594_v15, %v1590_v4 }
 0x2fa   :  { %1621 = vmatprep.subr.bf16.mxu1 %v1603_v50 }
 0x2fb   :  { %1662 = vmatprep.subr.bf16.mxu0 %v1605_v3  ;;  %1622 = vmatpush1.bf16.msra.mxu1 %v1602_v48 }
 0x2fc   :  { %1663 = vmatpush1.bf16.msra.mxu0 %v1604_v36  ;;  %1623 = vmatprep.subr.bf16.mxu1 %v1599_v38 }
 0x2fd   :  { %1664 = vmatprep.subr.bf16.mxu0 %v1601_v61 }
 0x2ff   :  { %1624 = vmatpush1.bf16.msra.mxu1 %v1598_v58 }
 0x300   :  { %1665 = vmatpush1.bf16.msra.mxu0 %v1600_v55 }
 0x302   :  { %3538 = vmatmul.mubr.msk.bf16.vlgmr.msra.gmra.mxu1 %vm1274_vm5, %v1597_v13 }
 0x303   :  { %3539 = vmatmul.mubr.msk.bf16.vlgmr.msra.gmra.mxu0 %vm1274_vm5, %v1597_v13  ;;  %1853 = vmatprep.mubr.bf16.mxu1 %v5638_v59 }
 0x304   :  { %1906 = vmatprep.mubr.bf16.mxu0 %v5638_v59 }
 0x3c2   :  { %v1643_v45 = vpop.f32.mrf.mxu1 }
 0x3c3   :  { %v1691_v1 = vrot.slane %v1643_v45, 4  ;;  %v1684_v41 = vpop.f32.mrf.mxu0 }
 0x3c4   :  { %v1703_v49 = vrot.slane %v1684_v41, 4  ;;  %v1645_v29 = vpop.f32.mrf.mxu1 }
 0x3c5   :  { %v1692_v26 = vmax.f32 %v1643_v45, %v1691_v1  ;;  %v1697_v10 = vrot.slane %v1645_v29, 4  ;;  %v1686_v56 = vpop.f32.mrf.mxu0 }
 0x3c6   :  { %v1704_v11 = vmax.f32 %v1684_v41, %v1703_v49  ;;  %v1709_v55 = vrot.slane %v1686_v56, 4  ;;  %v1647_v63 = vpop.f32.mrf.mxu1 }
 0x3c7   :  { %v1693_v34 = vrot.slane %v1692_v26, 2  ;;  %v1698_v7 = vmax.f32 %v1645_v29, %v1697_v10  ;;  %v1688_v13 = vpop.f32.mrf.mxu0 }
 0x3c8   :  { %v1705_v4 = vrot.slane %v1704_v11, 2  ;;  %v1710_v8 = vmax.f32 %v1686_v56, %v1709_v55  ;;  %v1648_v20 = vpop.f32.mrf.mxu1 }
 0x3c9   :  { %v1694_v57 = vmax.f32 %v1692_v26, %v1693_v34  ;;  %v1699_v50 = vrot.slane %v1698_v7, 2  ;;  %v1689_v15 = vpop.f32.mrf.mxu0 }
 0x3ca   :  { %v1706_v48 = vmax.f32 %v1704_v11, %v1705_v4  ;;  %v1711_v3 = vrot.slane %v1710_v8, 2 }
 0x3cb   :  { %v1695_v38 = vrot.slane %v1694_v57, 1  ;;  %v1700_v36 = vmax.f32 %v1698_v7, %v1699_v50 }
 0x3cc   :  { %v1707_v61 = vrot.slane %v1706_v48, 1  ;;  %v1712_v58 = vmax.f32 %v1710_v8, %v1711_v3 }
 0x3cd   :  { %v1696_v1 = vmax.f32 %v1694_v57, %v1695_v38  ;;  %v1701_v12 = vrot.slane %v1700_v36, 1 }
 0x3ce   :  { %v1708_v49 = vmax.f32 %v1706_v48, %v1707_v61  ;;  %v1713_v0 = vrot.slane %v1712_v58, 1 }
 0x3cf   :  { %v1715_v63 = vsub.f32 %v1643_v45, %v1696_v1  ;;  %v1702_v62 = vmax.f32 %v1700_v36, %v1701_v12 }
 0x3d0   :  { %v1717_v10 = vsub.f32 %v1684_v41, %v1708_v49  ;;  %v1714_v13 = vmax.f32 %v1712_v58, %v1713_v0 }
 0x3d1   :  { %v1719_v39 = vmul.f32 1.442695, %v1715_v63  ;;  %v1716_v55 = vsub.f32 %v1645_v29, %v1702_v62 }
 0x3d2   :  { %v1723_v20 = vmul.f32 1.442695, %v1717_v10  ;;  %v1718_v26 = vsub.f32 %v1686_v56, %v1714_v13 }
 0x3d3   :  { %3985 = vpow2.f32 %v1719_v39  ;;  %v1721_v34 = vmul.f32 1.442695, %v1716_v55 }
 0x3d4   :  { %3987 = vpow2.f32 %v1723_v20  ;;  %v1725_v11 = vmul.f32 1.442695, %v1718_v26 }
 0x3d5   :  { %3989 = vpow2.f32 %v1721_v34  ;;  %v1779_v34 = vpop.trf.xlu1 }
 0x3d6   :  { %3991 = vpow2.f32 %v1725_v11 }
 0x3e0   :  { %v3986_v7 = vpop.eup %3985 }
 0x3e1   :  { %v3988_v4 = vpop.eup %3987  ;;  %v1727_v8 = vrot.slane %v3986_v7, 4 }
 0x3e2   :  { %v3990_v57 = vpop.eup %3989  ;;  %v1739_v50 = vrot.slane %v3988_v4, 4 }
 0x3e3   :  { %v3992_v15 = vpop.eup %3991  ;;  %v1733_v45 = vrot.slane %v3990_v57, 4  ;;  %v1728_v12 = vadd.f32 %v3986_v7, %v1727_v8 }
 0x3e4   :  { %v1745_v41 = vrot.slane %v3992_v15, 4  ;;  %v1740_v0 = vadd.f32 %v3988_v4, %v1739_v50 }
 0x3e5   :  { %v1734_v48 = vadd.f32 %v3990_v57, %v1733_v45  ;;  %v1729_v62 = vrot.slane %v1728_v12, 2 }
 0x3e6   :  { %v1746_v29 = vadd.f32 %v3992_v15, %v1745_v41  ;;  %v1741_v56 = vrot.slane %v1740_v0, 2 }
 0x3e7   :  { %v1735_v39 = vrot.slane %v1734_v48, 2  ;;  %v1730_v3 = vadd.f32 %v1729_v62, %v1728_v12  ;;  %v1780_v62 = vpop.trf.xlu1 }
 0x3e8   :  { %v1747_v38 = vrot.slane %v1746_v29, 2  ;;  %v1742_v36 = vadd.f32 %v1741_v56, %v1740_v0 }
 0x3e9   :  { %v1736_v61 = vadd.f32 %v1735_v39, %v1734_v48  ;;  %v1731_v58 = vrot.slane %v1730_v3, 1 }
 0x3ea   :  { %v1748_v1 = vadd.f32 %v1747_v38, %v1746_v29  ;;  %v1743_v49 = vrot.slane %v1742_v36, 1 }
 0x3eb   :  { %v1737_v63 = vrot.slane %v1736_v61, 1  ;;  %v1732_v10 = vadd.f32 %v1731_v58, %v1730_v3 }
 0x3ec   :  { %v1749_v13 = vrot.slane %v1748_v1, 1  ;;  %v1744_v55 = vadd.f32 %v1743_v49, %v1742_v36 }
 0x3ed   :  { %v1738_v20 = vadd.f32 %v1737_v63, %v1736_v61  ;;  %3993 = vrcp.f32 %v1732_v10 }
 0x3ee   :  { %v1750_v26 = vadd.f32 %v1749_v13, %v1748_v1  ;;  %3995 = vrcp.f32 %v1744_v55 }
 0x3ef   :  { %3997 = vrcp.f32 %v1738_v20 }
 0x3f0   :  { %3999 = vrcp.f32 %v1750_v26 }
 0x3fa   :  { %v3994_v11 = vpop.eup %3993 }
 0x3fb   :  { %v3996_v8 = vpop.eup %3995  ;;  %v1755_v50 = vmul.f32 %v3994_v11, %v3986_v7 }
 0x3fc   :  { %v3998_v45 = vpop.eup %3997  ;;  %v1757_v12 = vmul.f32 %v3996_v8, %v3988_v4  ;;  %v1795_v4 = vpack.c.bf16 %v1780_v62, %v1779_v34 }
 0x3fd   :  { %v4000_v41 = vpop.eup %3999  ;;  %v1756_v0 = vmul.f32 %v3998_v45, %v3990_v57  ;;  %v1797_v48 = vpack.c.bf16 %v1755_v50, %v1755_v50  ;;  %v1781_v57 = vpop.trf.xlu1 }
 0x3fe   :  { %v1758_v29 = vmul.f32 %v4000_v41, %v3992_v15  ;;  %v1799_v56 = vpack.c.bf16 %v1757_v12, %v1757_v12 }
 0x3ff   :  { %v1798_v39 = vpack.c.bf16 %v1756_v0, %v1756_v0  ;;  %v1810_v38 = vsel %vm1808_vm6, %v1797_v48, 0 }
 0x400   :  { %v1800_v3 = vpack.c.bf16 %v1758_v29, %v1758_v29  ;;  %v1816_v7 = vsel %vm1808_vm6, %v1799_v56, 0 }
 0x401   :  { %3540 = vmatprep.subr.msk.bf16.mxu1 %vm1808_vm6, %v1798_v39  ;;  %v1782_v15 = vpop.trf.xlu1 }
 0x402   :  { %3543 = vmatprep.subr.msk.bf16.mxu0 %vm1808_vm6, %v1800_v3  ;;  %1836 = vmatpush1.bf16.msra.mxu1 %v1810_v38  ;;  %v1796_v36 = vpack.c.bf16 %v1782_v15, %v1781_v57  ;;  %v5152_v38 = vld [vmem:[%s5537_s3 + $0x50] sm:$0xff]   ;;  %v5177_v57 = vadd.f32 %v5107_v17, %v5069_v35  ;;  %v5181_v15 = vadd.f32 %v5107_v17, %v5101_v31 }
 0x403   :  { %1889 = vmatpush1.bf16.msra.mxu0 %v1816_v7  ;;  %v5163_v7 = vld [vmem:[%s5537_s3 + $0x58] sm:$0xff]   ;;  %v5195_v35 = vadd.f32 %v5109_v23, %v5073_v54  ;;  %v5200_v31 = vadd.f32 %v5109_v23, %v5105_v40  ;;  %v5211_v54 = vadd.f32 %v5117_v37, %v5055_v22  ;;  %v5215_v40 = vadd.f32 %v5117_v37, %v5095_v21 }
 0x404   :  { %v5226_v22 = vadd.f32 %v5122_v47, %v5099_v53  ;;  %v5241_v53 = vadd.f32 %v5122_v47, %v5097_v33 }
 0x405   :  { %3541 = vmatmul.mubr.msk.bf16.vlgmr.msra.gmra.mxu1 %vm1801_vm7, %v1795_v4  ;;  %v3555_v21 = vmul.f32 -1.442695, %v5211_v54 }
 0x406   :  { %3544 = vmatmul.mubr.msk.bf16.vlgmr.msra.gmra.mxu0 %vm1801_vm7, %v1795_v4  ;;  %1863 = vmatprep.mubr.bf16.mxu1 %v5638_v59  ;;  %v5173_v4 = vadd.f32 %v5107_v17, %v5067_v28  ;;  %v3563_v28 = vmul.f32 -1.442695, %v5177_v57 }
 0x407   :  { %1916 = vmatprep.mubr.bf16.mxu0 %v5638_v59 }
 0x40d   :  { %3542 = vmatmul.mubr.msk.bf16.gmra.mxu1 %vm1801_vm7, %v1796_v36 }
 0x40e   :  { %3545 = vmatmul.mubr.msk.bf16.gmra.mxu0 %vm1801_vm7, %v1796_v36  ;;  %1983 = vmatprep.mubr.bf16.mxu1 %v5638_v59  ;;  %v5185_v36 = vadd.f32 %v5107_v17, %v5103_v46 }
 0x40f   :  { %2036 = vmatprep.mubr.bf16.mxu0 %v5638_v59 }
 0x410   :  { %v3565_v46 = vmul.f32 -1.442695, %v5185_v36 }
 0x4c5   :  { %v1855_v61 = vpop.f32.mrf.mxu1 }
 0x4c6   :  { %v1908_v58 = vpop.f32.mrf.mxu0 }
 0x4c7   :  { %v1857_v1 = vpop.f32.mrf.mxu1 }
 0x4c8   :  { %v1910_v49 = vpop.f32.mrf.mxu0 }
 0x4c9   :  { %v1859_v63 = vpop.f32.mrf.mxu1 }
 0x4ca   :  { %v1912_v10 = vpop.f32.mrf.mxu0  ;;  %v1927_v39 = vpack.c.bf16 %v1859_v63, %v1855_v61  ;;  %v3562_v61 = vmul.f32 -1.442695, %v5173_v4  ;;  %v5220_v63 = vadd.f32 %v5122_v47, %v5061_v43  ;;  %v5235_v43 = vadd.f32 %v5122_v47, %v5057_v9 }
 0x4cb   :  { %v1861_v13 = vpop.f32.mrf.mxu1  ;;  %v1929_v3 = vpack.c.bf16 %v1912_v10, %v1908_v58  ;;  %v5190_v58 = vadd.f32 %v5109_v23, %v5071_v30  ;;  %v5206_v30 = vadd.f32 %v5117_v37, %v5048_v19  ;;  %v3568_v23 = vmul.f32 -1.442695, %v5200_v31 }
 0x4cc   :  { %v1914_v55 = vpop.f32.mrf.mxu0  ;;  %v1928_v62 = vpack.c.bf16 %v1861_v13, %v1857_v1  ;;  %v3564_v1 = vmul.f32 -1.442695, %v5181_v15  ;;  %4001 = vpow2.f32 %v3562_v61  ;;  %v3569_v19 = vmul.f32 -1.442695, %v5112_v2 }
 0x4cd   :  { %v1865_v20 = vpop.f32.mrf.mxu1  ;;  %v1930_v56 = vpack.c.bf16 %v1914_v55, %v1910_v49  ;;  %v3566_v17 = vmul.f32 -1.442695, %v5190_v58  ;;  %4003 = vpow2.f32 %v3563_v28  ;;  %v3567_v49 = vmul.f32 -1.442695, %v5195_v35 }
 0x4ce   :  { %v1918_v26 = vpop.f32.mrf.mxu0  ;;  %4005 = vpow2.f32 %v3564_v1  ;;  %v3554_v10 = vmul.f32 -1.442695, %v5206_v30  ;;  %v5231_v13 = vadd.f32 %v5117_v37, %v5093_v32  ;;  %v3557_v55 = vmul.f32 -1.442695, %v5215_v40 }
 0x4cf   :  { %v1867_v34 = vpop.f32.mrf.mxu1  ;;  %4007 = vpow2.f32 %v3565_v46  ;;  %v3558_v37 = vmul.f32 -1.442695, %v5235_v43  ;;  %v3560_v9 = vmul.f32 -1.442695, %v5241_v53 }
 0x4d0   :  { %v1920_v11 = vpop.f32.mrf.mxu0  ;;  %4009 = vpow2.f32 %v3566_v17  ;;  %v3556_v32 = vmul.f32 -1.442695, %v5231_v13 }
 0x4d1   :  { %v1869_v8 = vpop.f32.mrf.mxu1  ;;  %4011 = vpow2.f32 %v3567_v49 }
 0x4d2   :  { %v1922_v50 = vpop.f32.mrf.mxu0  ;;  %v1931_v0 = vpack.c.bf16 %v1869_v8, %v1865_v20  ;;  %4013 = vpow2.f32 %v3568_v23  ;;  %v3559_v20 = vmul.f32 -1.442695, %v5220_v63 }
 0x4d3   :  { %v1871_v45 = vpop.f32.mrf.mxu1  ;;  %v1933_v29 = vpack.c.bf16 %v1922_v50, %v1918_v26  ;;  %4015 = vpow2.f32 %v3569_v19  ;;  %v3561_v26 = vmul.f32 -1.442695, %v5226_v22 }
 0x4d4   :  { %v1932_v12 = vpack.c.bf16 %v1871_v45, %v1867_v34  ;;  %v1924_v41 = vpop.f32.mrf.mxu0  ;;  %4017 = vpow2.f32 %v3554_v10 }
 0x4d5   :  { %v1934_v48 = vpack.c.bf16 %v1924_v41, %v1920_v11  ;;  %4019 = vpow2.f32 %v3555_v21 }
 0x4d6   :  { %1963 = vmatprep.subr.bf16.mxu1 %v1932_v12  ;;  %4021 = vpow2.f32 %v3557_v55 }
 0x4d7   :  { %2016 = vmatprep.subr.bf16.mxu0 %v1934_v48  ;;  %1964 = vmatpush1.bf16.msra.mxu1 %v1931_v0  ;;  %4023 = vpow2.f32 %v3559_v20 }
 0x4d8   :  { %2017 = vmatpush1.bf16.msra.mxu0 %v1933_v29  ;;  %1965 = vmatprep.subr.bf16.mxu1 %v1928_v62  ;;  %4025 = vpow2.f32 %v3561_v26 }
 0x4d9   :  { %2018 = vmatprep.subr.bf16.mxu0 %v1930_v56  ;;  %v4002_v34 = vpop.eup %4001  ;;  %4027 = vpow2.f32 %v3556_v32 }
 0x4da   :  { %v4004_v11 = vpop.eup %4003  ;;  %4029 = vpow2.f32 %v3558_v37  ;;  %v2259_v8 = vadd.f32 1.0, %v4002_v34 }
 0x4db   :  { %1966 = vmatpush1.bf16.msra.mxu1 %v1927_v39  ;;  %v4006_v33 = vpop.eup %4005  ;;  %4031 = vpow2.f32 %v3560_v9  ;;  %v2260_v45 = vadd.f32 1.0, %v4004_v11 }
 0x4dc   :  { %2019 = vmatpush1.bf16.msra.mxu0 %v1929_v3  ;;  %v4008_v47 = vpop.eup %4007  ;;  %v2261_v41 = vadd.f32 1.0, %v4006_v33  ;;  %4033 = vrcp.f32 %v2259_v8 }
 0x4dd   :  { %v4010_v50 = vpop.eup %4009  ;;  %v2262_v48 = vadd.f32 1.0, %v4008_v47  ;;  %4035 = vrcp.f32 %v2260_v45 }
 0x4de   :  { %3548 = vmatmul.mubr.msk.bf16.vlgmr.msra.gmra.mxu1 %vm1274_vm5, %v5152_v38  ;;  %v4012_v12 = vpop.eup %4011  ;;  %v2263_v29 = vadd.f32 1.0, %v4010_v50  ;;  %4037 = vrcp.f32 %v2261_v41 }
 0x4df   :  { %3550 = vmatmul.mubr.msk.bf16.vlgmr.msra.gmra.mxu0 %vm1274_vm5, %v5152_v38  ;;  %1993 = vmatprep.mubr.bf16.mxu1 %v5638_v59  ;;  %v4014_v0 = vpop.eup %4013  ;;  %v2264_v39 = vadd.f32 1.0, %v4012_v12  ;;  %4039 = vrcp.f32 %v2262_v48 }
 0x4e0   :  { %2046 = vmatprep.mubr.bf16.mxu0 %v5638_v59  ;;  %v4016_v62 = vpop.eup %4015  ;;  %v2265_v61 = vadd.f32 1.0, %v4014_v0  ;;  %4041 = vrcp.f32 %v2263_v29 }
 0x4e1   :  { %v4018_v56 = vpop.eup %4017  ;;  %v2266_v1 = vadd.f32 1.0, %v4016_v62  ;;  %4043 = vrcp.f32 %v2264_v39 }
 0x4e2   :  { %v4020_v3 = vpop.eup %4019  ;;  %v2251_v17 = vadd.f32 1.0, %v4018_v56  ;;  %4045 = vrcp.f32 %v2265_v61 }
 0x4e3   :  { %v4022_v28 = vpop.eup %4021  ;;  %v2252_v19 = vadd.f32 1.0, %v4020_v3  ;;  %4047 = vrcp.f32 %v2266_v1 }
 0x4e4   :  { %v4024_v46 = vpop.eup %4023  ;;  %v2254_v55 = vadd.f32 1.0, %v4022_v28  ;;  %4049 = vrcp.f32 %v2251_v17 }
 0x4e5   :  { %v4026_v23 = vpop.eup %4025  ;;  %v2256_v32 = vadd.f32 1.0, %v4024_v46  ;;  %4051 = vrcp.f32 %v2252_v19 }
 0x4e6   :  { %3549 = vmatmul.mubr.msk.bf16.gmra.mxu1 %vm1274_vm5, %v5163_v7  ;;  %v4028_v21 = vpop.eup %4027  ;;  %v2258_v34 = vadd.f32 1.0, %v4026_v23  ;;  %4053 = vrcp.f32 %v2254_v55 }
 0x4e7   :  { %3551 = vmatmul.mubr.msk.bf16.gmra.mxu0 %vm1274_vm5, %v5163_v7  ;;  %2121 = vmatprep.mubr.bf16.mxu1 %v5638_v59  ;;  %v4030_v26 = vpop.eup %4029  ;;  %v2253_v33 = vadd.f32 1.0, %v4028_v21  ;;  %4055 = vrcp.f32 %v2256_v32 }
 0x4e8   :  { %2162 = vmatprep.mubr.bf16.mxu0 %v5638_v59  ;;  %v4032_v9 = vpop.eup %4031  ;;  %v2255_v8 = vadd.f32 1.0, %v4030_v26  ;;  %4057 = vrcp.f32 %v2258_v34 }
 0x4e9   :  { %v2257_v45 = vadd.f32 1.0, %v4032_v9  ;;  %v4034_v0 = vpop.eup %4033  ;;  %4059 = vrcp.f32 %v2253_v33 }
 0x4ea   :  { %v4036_v62 = vpop.eup %4035  ;;  %4061 = vrcp.f32 %v2255_v8 }
 0x4eb   :  { %v4038_v56 = vpop.eup %4037  ;;  %4063 = vrcp.f32 %v2257_v45  ;;  %v5253_v19 = vmul.f32 %v4036_v62, %v5177_v57 }
 0x4ec   :  { %v4040_v3 = vpop.eup %4039 }
 0x4ed   :  { %v4042_v28 = vpop.eup %4041 }
 0x4ee   :  { %v4044_v46 = vpop.eup %4043 }
 0x4ef   :  { %v4046_v21 = vpop.eup %4045 }
 0x4f0   :  { %v4048_v33 = vpop.eup %4047 }
 0x4f1   :  { %v4050_v62 = vpop.eup %4049 }
 0x59e   :  { %v5247_v49 = vpop.f32.mrf.mxu1 }
 0x59f   :  { %v5249_v10 = vpop.f32.mrf.mxu0 }
 0x5a0   :  { %v1987_v20 = vpop.f32.mrf.mxu1 }
 0x5a1   :  { %v2040_v37 = vpop.f32.mrf.mxu0 }
 0x5a2   :  { %v1989_v11 = vpop.f32.mrf.mxu1 }
 0x5a3   :  { %v2042_v47 = vpop.f32.mrf.mxu0 }
 0x5a4   :  { %v1991_v50 = vpop.f32.mrf.mxu1 }
 0x5a5   :  { %v2044_v12 = vpop.f32.mrf.mxu0  ;;  %v2062_v55 = vadd.f32 %v1991_v50, %v4977_v24  ;;  %v2058_v24 = vadd.f32 %v1987_v20, %v5001_v44  ;;  %v2060_v50 = vadd.f32 %v2040_v37, %v5009_v52  ;;  %v5657_v20 = vld [vmem:[#allocation14_spill] sm:$0xff] }
 0x5a6   :  { %v1995_v41 = vpop.f32.mrf.mxu1  ;;  %v2064_v8 = vadd.f32 %v2044_v12, %v4989_v60  ;;  %v2061_v60 = vadd.f32 %v1989_v11, %v5012_v5  ;;  %v2057_v52 = vadd.f32 %v5247_v49, %v5657_v20  ;;  %v5280_v11 = vmul.f32 %v4034_v0, %v5173_v4 }
 0x5a7   :  { %v2048_v48 = vpop.f32.mrf.mxu0  ;;  %v2065_v45 = vadd.f32 %v1995_v41, %v4992_v16  ;;  %v5291_v49 = vmul.f32 %v4046_v21, %v5200_v31 }
 0x5a8   :  { %v1997_v29 = vpop.f32.mrf.mxu1  ;;  %v2076_v37 = vpack.c.bf16 %v2064_v8, %v2060_v50 }
 0x5a9   :  { %v2050_v39 = vpop.f32.mrf.mxu0  ;;  %v2066_v26 = vadd.f32 %v1997_v29, %v4980_v25  ;;  %v2067_v25 = vadd.f32 %v2048_v48, %v5004_v18  ;;  %v5275_v18 = vmul.f32 %v4048_v33, %v5112_v2  ;;  %v5288_v2 = vmul.f32 %v4038_v56, %v5181_v15 }
 0x5aa   :  { %v1999_v61 = vpop.f32.mrf.mxu1 }
 0x5ab   :  { %v2052_v1 = vpop.f32.mrf.mxu0  ;;  %v2069_v17 = vadd.f32 %v1999_v61, %v4974_v42  ;;  %v2068_v42 = vadd.f32 %v2050_v39, %v4995_v14  ;;  %v5264_v61 = vmul.f32 %v4040_v3, %v5185_v36  ;;  %v5656_v14 = vld [vmem:[#allocation17_spill] sm:$0xff]  ;;  %v5272_v36 = vmul.f32 %v4044_v46, %v5195_v35 }
 0x5ac   :  { %v2001_v23 = vpop.f32.mrf.mxu1  ;;  %v2071_v32 = vadd.f32 %v2052_v1, %v4983_v27  ;;  %v2063_v29 = vadd.f32 %v2042_v47, %v5656_v14  ;;  %v5658_v47 = vld [vmem:[#allocation15_spill] sm:$0xff]  ;;  %v5285_v3 = vmul.f32 %v4042_v28, %v5190_v58  ;;  %v2073_v1 = vpack.c.bf16 %v2061_v60, %v2057_v52  ;;  %v5312_v28 = vld [vmem:[%s5537_s3 + $0x60] sm:$0x3] }
 0x5ad   :  { %v2070_v9 = vadd.f32 %v2001_v23, %v4986_v51  ;;  %v2054_v34 = vpop.f32.mrf.mxu0  ;;  %v4052_v51 = vpop.eup %4051  ;;  %v2077_v12 = vpack.c.bf16 %v2069_v17, %v2065_v45  ;;  %v2059_v48 = vadd.f32 %v5249_v10, %v5658_v47  ;;  %v2320_v0 = vpack.c.bf16 %v5272_v36, %v5253_v19 }
 0x5ae   :  { %v2072_v57 = vadd.f32 %v2054_v34, %v4998_v6  ;;  %v4054_v41 = vpop.eup %4053  ;;  %v2074_v6 = vpack.c.bf16 %v2062_v55, %v2058_v24  ;;  %v2079_v39 = vpack.c.bf16 %v2071_v32, %v2067_v25  ;;  %v5296_v10 = vmul.f32 %v4052_v51, %v5211_v54  ;;  %v5659_v55 = vld [vmem:[#allocation16_spill] sm:$0xff] }
 0x5af   :  { %v2078_v27 = vpack.c.bf16 %v2070_v9, %v2066_v26  ;;  %v4056_v44 = vpop.eup %4055  ;;  %v2075_v4 = vpack.c.bf16 %v2063_v29, %v2059_v48  ;;  %v5302_v15 = vmul.f32 %v4054_v41, %v5215_v40  ;;  %v2322_v56 = vpack.c.bf16 %v5275_v18, %v5264_v61  ;;  %v5660_v26 = vld [vmem:[#allocation11_spill] sm:$0xff] }
 0x5b0   :  { %v2080_v16 = vpack.c.bf16 %v2072_v57, %v2068_v42  ;;  %v4058_v5 = vpop.eup %4057  ;;  %v5299_v17 = vmul.f32 %v4056_v44, %v5220_v63  ;;  %v5315_v54 = vmul.f32 %v4050_v62, %v5206_v30  ;;  %v2319_v63 = vpack.c.bf16 %v5285_v3, %v5280_v11 }
 0x5b1   :  { %2101 = vmatprep.subr.bf16.mxu1 %v2078_v27  ;;  %v4060_v35 = vpop.eup %4059  ;;  %v5305_v31 = vmul.f32 %v4058_v5, %v5226_v22  ;;  %v2321_v21 = vpack.c.bf16 %v5291_v49, %v5288_v2 }
 0x5b2   :  { %2142 = vmatprep.subr.bf16.mxu0 %v2080_v16  ;;  %2102 = vmatpush1.bf16.msra.mxu1 %v2077_v12  ;;  %v4062_v46 = vpop.eup %4061  ;;  %v5323_v22 = vmul.f32 %v4060_v35, %v5231_v13  ;;  %v2316_v30 = vpack.c.bf16 %v5299_v17, %v5296_v10 }
 0x5b3   :  { %2143 = vmatpush1.bf16.msra.mxu0 %v2079_v39  ;;  %2103 = vmatprep.subr.bf16.mxu1 %v2074_v6  ;;  %v4064_v58 = vpop.eup %4063  ;;  %v5318_v40 = vmul.f32 %v4062_v46, %v5235_v43  ;;  %v2318_v13 = vpack.c.bf16 %v5305_v31, %v5302_v15 }
 0x5b4   :  { %2144 = vmatprep.subr.bf16.mxu0 %v2076_v37  ;;  %v5326_v23 = vmul.f32 %v4064_v58, %v5241_v53 }
 0x5b5   :  { %v2315_v43 = vpack.c.bf16 %v5318_v40, %v5315_v54 }
 0x5b6   :  { %2104 = vmatpush1.bf16.msra.mxu1 %v2073_v1  ;;  %v2317_v53 = vpack.c.bf16 %v5326_v23, %v5323_v22 }
 0x5b7   :  { %2145 = vmatpush1.bf16.msra.mxu0 %v2075_v4  ;;  %2335 = vmatprep.subr.bf16.mxu1 %v2320_v0  ;;  %v5661_v4 = vld [vmem:[#allocation12_spill] sm:$0xff] }
 0x5b8   :  { %2388 = vmatprep.subr.bf16.mxu0 %v2322_v56  ;;  %v2429_v0 = vpack.c.bf16 %v5661_v4, %v5661_v4 }
 0x5b9   :  { %3552 = vmatmul.mubr.msk.bf16.vlgmr.msra.gmra.mxu1 %vm1274_vm5, %v5312_v28 }
 0x5ba   :  { %3553 = vmatmul.mubr.msk.bf16.vlgmr.msra.gmra.mxu0 %vm1274_vm5, %v5312_v28  ;;  %2336 = vmatpush1.bf16.msra.mxu1 %v2319_v63 }
 0x5bb   :  { %2389 = vmatpush1.bf16.msra.mxu0 %v2321_v21  ;;  %2337 = vmatprep.subr.bf16.mxu1 %v2316_v30 }
 0x5bc   :  { %2390 = vmatprep.subr.bf16.mxu0 %v2318_v13  ;;  %2355 = vmatprep.mubr.bf16.mxu1 %v5638_v59 }
 0x5bd   :  { %2408 = vmatprep.mubr.bf16.mxu0 %v5638_v59 }
 0x5be   :  { %2338 = vmatpush1.bf16.msra.mxu1 %v2315_v43 }
 0x5bf   :  { %2391 = vmatpush1.bf16.msra.mxu0 %v2317_v53 }
 0x5c1   :  { %3570 = vmatmul.mubr.msk.bf16.vlgmr.msra.gmra.mxu1 %vm1274_vm5, %v5659_v55 }
 0x5c2   :  { %3572 = vmatmul.mubr.msk.bf16.vlgmr.msra.gmra.mxu0 %vm1274_vm5, %v5659_v55  ;;  %2365 = vmatprep.mubr.bf16.mxu1 %v5638_v59 }
 0x5c3   :  { %2418 = vmatprep.mubr.bf16.mxu0 %v5638_v59 }
 0x5c9   :  { %3571 = vmatmul.mubr.msk.bf16.gmra.mxu1 %vm1274_vm5, %v5660_v26 }
 0x5ca   :  { %3573 = vmatmul.mubr.msk.bf16.gmra.mxu0 %vm1274_vm5, %v5660_v26  ;;  %2473 = vmatprep.mubr.bf16.mxu1 %v5638_v59 }
 0x5cb   :  { %2514 = vmatprep.mubr.bf16.mxu0 %v5638_v59 }
 0x679   :  { %v5356_v32 = vpop.f32.mrf.mxu1 }
 0x67a   :  { %v5358_v9 = vpop.f32.mrf.mxu0 }
 0x67b   :  { %v5360_v34 = vpop.f32.mrf.mxu1 }
 0x67c   :  { %v5362_v33 = vpop.f32.mrf.mxu0 }
 0x67d   :  { %v2127_v8 = vpop.f32.mrf.mxu1 }
 0x67e   :  { %v2168_v45 = vpop.f32.mrf.mxu0 }
 0x67f   :  { %v2128_v42 = vpop.f32.mrf.mxu1 }
 0x680   :  { %v2169_v57 = vpop.f32.mrf.mxu0 }
 0x681   :  { %v2357_v62 = vpop.f32.mrf.mxu1 }
 0x682   :  { %v2410_v24 = vpop.f32.mrf.mxu0 }
 0x683   :  { %v2359_v25 = vpop.f32.mrf.mxu1 }
 0x684   :  { %v2412_v27 = vpop.f32.mrf.mxu0 }
 0x685   :  { %v2361_v51 = vpop.f32.mrf.mxu1 }
 0x686   :  { %v2414_v50 = vpop.f32.mrf.mxu0  ;;  %v2430_v1 = vpack.c.bf16 %v2361_v51, %v2357_v62 }
 0x687   :  { %v2363_v60 = vpop.f32.mrf.mxu1  ;;  %v2432_v46 = vpack.c.bf16 %v2414_v50, %v2410_v24 }
 0x688   :  { %v2416_v12 = vpop.f32.mrf.mxu0  ;;  %v2431_v47 = vpack.c.bf16 %v2363_v60, %v2359_v25 }
 0x689   :  { %v2367_v16 = vpop.f32.mrf.mxu1  ;;  %v2433_v35 = vpack.c.bf16 %v2416_v12, %v2412_v27 }
 0x68a   :  { %v2420_v41 = vpop.f32.mrf.mxu0 }
 0x68b   :  { %v2369_v14 = vpop.f32.mrf.mxu1 }
 0x68c   :  { %v2422_v29 = vpop.f32.mrf.mxu0 }
 0x68d   :  { %v2371_v6 = vpop.f32.mrf.mxu1 }
 0x68e   :  { %v2424_v39 = vpop.f32.mrf.mxu0  ;;  %v2434_v37 = vpack.c.bf16 %v2371_v6, %v2367_v16 }
 0x68f   :  { %v2373_v44 = vpop.f32.mrf.mxu1  ;;  %v2436_v48 = vpack.c.bf16 %v2424_v39, %v2420_v41 }
 0x690   :  { %v2435_v20 = vpack.c.bf16 %v2373_v44, %v2369_v14  ;;  %v2426_v52 = vpop.f32.mrf.mxu0 }
 0x691   :  { %v2437_v5 = vpack.c.bf16 %v2426_v52, %v2422_v29 }
 0x692   :  { %2453 = vmatprep.subr.bf16.mxu1 %v2435_v20 }
 0x693   :  { %2494 = vmatprep.subr.bf16.mxu0 %v2437_v5  ;;  %2454 = vmatpush1.bf16.msra.mxu1 %v2434_v37 }
 0x694   :  { %2495 = vmatpush1.bf16.msra.mxu0 %v2436_v48  ;;  %2455 = vmatprep.subr.bf16.mxu1 %v2431_v47 }
 0x695   :  { %2496 = vmatprep.subr.bf16.mxu0 %v2433_v35 }
 0x697   :  { %2456 = vmatpush1.bf16.msra.mxu1 %v2430_v1 }
 0x698   :  { %2497 = vmatpush1.bf16.msra.mxu0 %v2432_v46 }
 0x69a   :  { %3574 = vmatmul.mubr.msk.bf16.vlgmr.msra.gmra.mxu1 %vm1274_vm5, %v2429_v0 }
 0x69b   :  { %3575 = vmatmul.mubr.msk.bf16.vlgmr.msra.gmra.mxu0 %vm1274_vm5, %v2429_v0  ;;  %2683 = vmatprep.mubr.bf16.mxu1 %v5638_v59 }
 0x69c   :  { %2736 = vmatprep.mubr.bf16.mxu0 %v5638_v59 }
 0x75a   :  { %v2475_v58 = vpop.f32.mrf.mxu1 }
 0x75b   :  { %v2523_v56 = vrot.slane %v2475_v58, 4  ;;  %v2516_v63 = vpop.f32.mrf.mxu0 }
 0x75c   :  { %v2535_v21 = vrot.slane %v2516_v63, 4  ;;  %v2477_v30 = vpop.f32.mrf.mxu1 }
 0x75d   :  { %v2524_v13 = vmax.f32 %v2475_v58, %v2523_v56  ;;  %v2529_v43 = vrot.slane %v2477_v30, 4  ;;  %v2518_v53 = vpop.f32.mrf.mxu0 }
 0x75e   :  { %v2536_v55 = vmax.f32 %v2516_v63, %v2535_v21  ;;  %v2541_v26 = vrot.slane %v2518_v53, 4  ;;  %v2479_v8 = vpop.f32.mrf.mxu1 }
 0x75f   :  { %v2525_v45 = vrot.slane %v2524_v13, 2  ;;  %v2530_v42 = vmax.f32 %v2477_v30, %v2529_v43  ;;  %v2520_v57 = vpop.f32.mrf.mxu0 }
 0x760   :  { %v2537_v62 = vrot.slane %v2536_v55, 2  ;;  %v2542_v24 = vmax.f32 %v2518_v53, %v2541_v26  ;;  %v2480_v25 = vpop.f32.mrf.mxu1 }
 0x761   :  { %v2526_v27 = vmax.f32 %v2524_v13, %v2525_v45  ;;  %v2531_v51 = vrot.slane %v2530_v42, 2  ;;  %v2521_v50 = vpop.f32.mrf.mxu0 }
 0x762   :  { %v2538_v60 = vmax.f32 %v2536_v55, %v2537_v62  ;;  %v2543_v12 = vrot.slane %v2542_v24, 2 }
 0x763   :  { %v2527_v16 = vrot.slane %v2526_v27, 1  ;;  %v2532_v41 = vmax.f32 %v2530_v42, %v2531_v51 }
 0x764   :  { %v2539_v14 = vrot.slane %v2538_v60, 1  ;;  %v2544_v29 = vmax.f32 %v2542_v24, %v2543_v12 }
 0x765   :  { %v2528_v6 = vmax.f32 %v2526_v27, %v2527_v16  ;;  %v2533_v39 = vrot.slane %v2532_v41, 1 }
 0x766   :  { %v2540_v44 = vmax.f32 %v2538_v60, %v2539_v14  ;;  %v2545_v20 = vrot.slane %v2544_v29, 1 }
 0x767   :  { %v2547_v52 = vsub.f32 %v2475_v58, %v2528_v6  ;;  %v2534_v37 = vmax.f32 %v2532_v41, %v2533_v39 }
 0x768   :  { %v2549_v5 = vsub.f32 %v2516_v63, %v2540_v44  ;;  %v2546_v47 = vmax.f32 %v2544_v29, %v2545_v20  ;;  %v2611_v44 = vpop.trf.xlu0 }
 0x769   :  { %v2551_v48 = vmul.f32 1.442695, %v2547_v52  ;;  %v2548_v35 = vsub.f32 %v2477_v30, %v2534_v37 }
 0x76a   :  { %v2555_v1 = vmul.f32 1.442695, %v2549_v5  ;;  %v2550_v46 = vsub.f32 %v2518_v53, %v2546_v47 }
 0x76b   :  { %4065 = vpow2.f32 %v2551_v48  ;;  %v2553_v4 = vmul.f32 1.442695, %v2548_v35 }
 0x76c   :  { %4067 = vpow2.f32 %v2555_v1  ;;  %v2557_v0 = vmul.f32 1.442695, %v2550_v46  ;;  %v2612_v47 = vpop.trf.xlu0 }
 0x76d   :  { %4069 = vpow2.f32 %v2553_v4 }
 0x76e   :  { %4071 = vpow2.f32 %v2557_v0 }
 0x778   :  { %v4066_v56 = vpop.eup %4065 }
 0x779   :  { %v4068_v21 = vpop.eup %4067  ;;  %v2559_v13 = vrot.slane %v4066_v56, 4 }
 0x77a   :  { %v4070_v43 = vpop.eup %4069  ;;  %v2571_v55 = vrot.slane %v4068_v21, 4 }
 0x77b   :  { %v4072_v26 = vpop.eup %4071  ;;  %v2565_v58 = vrot.slane %v4070_v43, 4  ;;  %v2560_v8 = vadd.f32 %v4066_v56, %v2559_v13 }
 0x77c   :  { %v2577_v63 = vrot.slane %v4072_v26, 4  ;;  %v2572_v45 = vadd.f32 %v4068_v21, %v2571_v55 }
 0x77d   :  { %v2566_v42 = vadd.f32 %v4070_v43, %v2565_v58  ;;  %v2561_v30 = vrot.slane %v2560_v8, 2 }
 0x77e   :  { %v2578_v57 = vadd.f32 %v4072_v26, %v2577_v63  ;;  %v2573_v53 = vrot.slane %v2572_v45, 2  ;;  %v2627_v63 = vpack.c.bf16 %v2612_v47, %v2611_v44 }
 0x77f   :  { %v2567_v62 = vrot.slane %v2566_v42, 2  ;;  %v2562_v24 = vadd.f32 %v2561_v30, %v2560_v8 }
 0x780   :  { %v2579_v25 = vrot.slane %v2578_v57, 2  ;;  %v2574_v27 = vadd.f32 %v2573_v53, %v2572_v45 }
 0x781   :  { %v2568_v51 = vadd.f32 %v2567_v62, %v2566_v42  ;;  %v2563_v50 = vrot.slane %v2562_v24, 1 }
 0x782   :  { %v2580_v60 = vadd.f32 %v2579_v25, %v2578_v57  ;;  %v2575_v12 = vrot.slane %v2574_v27, 1 }
 0x783   :  { %v2569_v16 = vrot.slane %v2568_v51, 1  ;;  %v2564_v41 = vadd.f32 %v2563_v50, %v2562_v24 }
 0x784   :  { %v2581_v14 = vrot.slane %v2580_v60, 1  ;;  %v2576_v29 = vadd.f32 %v2575_v12, %v2574_v27 }
 0x785   :  { %v2570_v6 = vadd.f32 %v2569_v16, %v2568_v51  ;;  %4073 = vrcp.f32 %v2564_v41 }
 0x786   :  { %v2582_v39 = vadd.f32 %v2581_v14, %v2580_v60  ;;  %4075 = vrcp.f32 %v2576_v29 }
 0x787   :  { %4077 = vrcp.f32 %v2570_v6 }
 0x788   :  { %4079 = vrcp.f32 %v2582_v39 }
 0x792   :  { %v4074_v20 = vpop.eup %4073 }
 0x793   :  { %v4076_v52 = vpop.eup %4075  ;;  %v2587_v37 = vmul.f32 %v4074_v20, %v4066_v56  ;;  %v2613_v56 = vpop.trf.xlu0 }
 0x794   :  { %v4078_v5 = vpop.eup %4077  ;;  %v2589_v48 = vmul.f32 %v4076_v52, %v4068_v21 }
 0x795   :  { %v4080_v35 = vpop.eup %4079  ;;  %v2588_v1 = vmul.f32 %v4078_v5, %v4070_v43  ;;  %v2629_v46 = vpack.c.bf16 %v2587_v37, %v2587_v37  ;;  %v2986_v5 = vld [vmem:[%s5538_s4 + $0x60] sm:$0xff] }
 0x796   :  { %v2590_v4 = vmul.f32 %v4080_v35, %v4072_v26  ;;  %v2631_v0 = vpack.c.bf16 %v2589_v48, %v2589_v48  ;;  %3004 = vperm.xlu0 %3637, %v2986_v5  }
 0x797   :  { %v2630_v13 = vpack.c.bf16 %v2588_v1, %v2588_v1  ;;  %v2640_v58 = vsel %vm1808_vm6, %v2629_v46, 0  ;;  %v2614_v21 = vpop.trf.xlu0 }
 0x798   :  { %v2632_v55 = vpack.c.bf16 %v2590_v4, %v2590_v4  ;;  %v2646_v8 = vsel %vm1808_vm6, %v2631_v0, 0  ;;  %v2628_v43 = vpack.c.bf16 %v2614_v21, %v2613_v56  ;;  %v2978_v56 = vld [vmem:[%s5536_s0 + $0x28] sm:$0x66] }
 0x799   :  { %3576 = vmatprep.subr.msk.bf16.mxu1 %vm1808_vm6, %v2630_v13 }
 0x79a   :  { %3579 = vmatprep.subr.msk.bf16.mxu0 %vm1808_vm6, %v2632_v55  ;;  %2666 = vmatpush1.bf16.msra.mxu1 %v2640_v58 }
 0x79b   :  { %2719 = vmatpush1.bf16.msra.mxu0 %v2646_v8  ;;  %v2977_v8 = vld [vmem:[%s5536_s0 + $0x20] sm:$0x66] }
 0x79d   :  { %3577 = vmatmul.mubr.msk.bf16.vlgmr.msra.gmra.mxu1 %vm1801_vm7, %v2627_v63 }
 0x79e   :  { %3580 = vmatmul.mubr.msk.bf16.vlgmr.msra.gmra.mxu0 %vm1801_vm7, %v2627_v63  ;;  %2693 = vmatprep.mubr.bf16.mxu1 %v5638_v59 }
 0x79f   :  { %2746 = vmatprep.mubr.bf16.mxu0 %v5638_v59 }
 0x7a5   :  { %3578 = vmatmul.mubr.msk.bf16.gmra.mxu1 %vm1801_vm7, %v2628_v43 }
 0x7a6   :  { %3581 = vmatmul.mubr.msk.bf16.gmra.mxu0 %vm1801_vm7, %v2628_v43  ;;  %2797 = vmatprep.mubr.bf16.mxu1 %v5638_v59 }
 0x7a7   :  { %2850 = vmatprep.mubr.bf16.mxu0 %v5638_v59 }
 0x85d   :  { %v2685_v26 = vpop.f32.mrf.mxu1 }
 0x85e   :  { %v2738_v45 = vpop.f32.mrf.mxu0 }
 0x85f   :  { %v2687_v42 = vpop.f32.mrf.mxu1 }
 0x860   :  { %v2740_v30 = vpop.f32.mrf.mxu0 }
 0x861   :  { %v2689_v57 = vpop.f32.mrf.mxu1 }
 0x862   :  { %v2742_v53 = vpop.f32.mrf.mxu0  ;;  %v2757_v52 = vpack.c.bf16 %v2689_v57, %v2685_v26 }
 0x863   :  { %v2691_v62 = vpop.f32.mrf.mxu1  ;;  %v2759_v37 = vpack.c.bf16 %v2742_v53, %v2738_v45  ;;  %v3591_v45 = vcombine.high %v2977_v8, %v2977_v8 }
 0x864   :  { %v2744_v24 = vpop.f32.mrf.mxu0  ;;  %v2758_v39 = vpack.c.bf16 %v2691_v62, %v2687_v42  ;;  %v3593_v42 = vcombine.high %v2978_v56, %v2978_v56 }
 0x865   :  { %v2695_v25 = vpop.f32.mrf.mxu1  ;;  %v2760_v20 = vpack.c.bf16 %v2744_v24, %v2740_v30  ;;  %v3590_v30 = vcombine.low %v2977_v8, %v2977_v8 }
 0x866   :  { %v2748_v27 = vpop.f32.mrf.mxu0 }
 0x867   :  { %v2697_v51 = vpop.f32.mrf.mxu1 }
 0x868   :  { %v2750_v50 = vpop.f32.mrf.mxu0 }
 0x869   :  { %v2699_v60 = vpop.f32.mrf.mxu1 }
 0x86a   :  { %v2752_v12 = vpop.f32.mrf.mxu0  ;;  %v2761_v29 = vpack.c.bf16 %v2699_v60, %v2695_v25 }
 0x86b   :  { %v2701_v16 = vpop.f32.mrf.mxu1  ;;  %v2763_v44 = vpack.c.bf16 %v2752_v12, %v2748_v27 }
 0x86c   :  { %v2762_v41 = vpack.c.bf16 %v2701_v16, %v2697_v51  ;;  %v2754_v14 = vpop.f32.mrf.mxu0  ;;  %v3592_v16 = vcombine.low %v2978_v56, %v2978_v56 }
 0x86d   :  { %v2764_v6 = vpack.c.bf16 %v2754_v14, %v2750_v50 }
 0x86e   :  { %2777 = vmatprep.subr.bf16.mxu1 %v2762_v41 }
 0x86f   :  { %2830 = vmatprep.subr.bf16.mxu0 %v2764_v6  ;;  %2778 = vmatpush1.bf16.msra.mxu1 %v2761_v29  ;;  %v3029_v6 = vrot.slane %v3592_v16, 1 }
 0x870   :  { %2831 = vmatpush1.bf16.msra.mxu0 %v2763_v44  ;;  %2779 = vmatprep.subr.bf16.mxu1 %v2758_v39  ;;  %v3000_v44 = vpop.permute.xlu1 %2999 }
 0x871   :  { %2832 = vmatprep.subr.bf16.mxu0 %v2760_v20 }
 0x873   :  { %2780 = vmatpush1.bf16.msra.mxu1 %v2757_v52 }
 0x874   :  { %2833 = vmatpush1.bf16.msra.mxu0 %v2759_v37 }
 0x876   :  { %3582 = vmatmul.mubr.msk.bf16.vlgmr.msra.gmra.mxu1 %vm1274_vm5, %v5152_v38 }
 0x877   :  { %3584 = vmatmul.mubr.msk.bf16.vlgmr.msra.gmra.mxu0 %vm1274_vm5, %v5152_v38  ;;  %2807 = vmatprep.mubr.bf16.mxu1 %v5638_v59 }
 0x878   :  { %2860 = vmatprep.mubr.bf16.mxu0 %v5638_v59 }
 0x87e   :  { %3583 = vmatmul.mubr.msk.bf16.gmra.mxu1 %vm1274_vm5, %v5163_v7 }
 0x87f   :  { %3585 = vmatmul.mubr.msk.bf16.gmra.mxu0 %vm1274_vm5, %v5163_v7  ;;  %2927 = vmatprep.mubr.bf16.mxu1 %v5638_v59 }
 0x880   :  { %2968 = vmatprep.mubr.bf16.mxu0 %v5638_v59 }
 0x936   :  { %v2799_v38 = vpop.f32.mrf.mxu1 }
 0x937   :  { %v2852_v47 = vpop.f32.mrf.mxu0 }
 0x938   :  { %v2801_v48 = vpop.f32.mrf.mxu1 }
 0x939   :  { %v2854_v35 = vpop.f32.mrf.mxu0  ;;  %v2872_v60 = vadd.f32 %v2801_v48, %v5296_v10  ;;  %v3028_v10 = vrot.slane %v3591_v45, 1  ;;  %v2990_v48 = vpop.permute.xlu1 %2989 }
 0x93a   :  { %v2803_v1 = vpop.f32.mrf.mxu1 }
 0x93b   :  { %v2856_v46 = vpop.f32.mrf.mxu0 }
 0x93c   :  { %v2805_v4 = vpop.f32.mrf.mxu1 }
 0x93d   :  { %v2858_v0 = vpop.f32.mrf.mxu0  ;;  %v2876_v57 = vadd.f32 %v2805_v4, %v5299_v17  ;;  %v2995_v8 = vpop.permute.xlu1 %2994 }
 0x93e   :  { %v2809_v13 = vpop.f32.mrf.mxu1  ;;  %v2878_v27 = vadd.f32 %v2858_v0, %v5305_v31  ;;  %v2877_v31 = vadd.f32 %v2856_v46, %v5326_v23  ;;  %v3045_v23 = vsel %vm1000_vm2, %v3029_v6, 0 }
 0x93f   :  { %v2862_v55 = vpop.f32.mrf.mxu0  ;;  %v2879_v51 = vadd.f32 %v2809_v13, %v5280_v11  ;;  %v2888_v14 = vpack.c.bf16 %v2876_v57, %v2872_v60 }
 0x940   :  { %v2811_v7 = vpop.f32.mrf.mxu1  ;;  %v2881_v12 = vadd.f32 %v2862_v55, %v5288_v2  ;;  %v2873_v2 = vadd.f32 %v2852_v47, %v5323_v22  ;;  %v3663_v22 = vld [vmem:[%s5537_s3 + $0x68] sm:$0xff]  }
 0x941   :  { %v2864_v58 = vpop.f32.mrf.mxu0  ;;  %v2880_v53 = vadd.f32 %v2811_v7, %v5253_v19  ;;  %v2874_v19 = vadd.f32 %v2854_v35, %v5302_v15  ;;  %v3027_v15 = vrot.slane %v3590_v30, 1 }
 0x942   :  { %v2813_v63 = vpop.f32.mrf.mxu1  ;;  %v2882_v50 = vadd.f32 %v2864_v58, %v5264_v61  ;;  %v2871_v61 = vadd.f32 %v2799_v38, %v5315_v54  ;;  %v2889_v39 = vpack.c.bf16 %v2877_v31, %v2873_v2 }
 0x943   :  { %v2866_v21 = vpop.f32.mrf.mxu0  ;;  %v2883_v43 = vadd.f32 %v2813_v63, %v5285_v3  ;;  %v3039_v54 = vsel %vm1000_vm2, %v3027_v15, 0 }
 0x944   :  { %v2815_v26 = vpop.f32.mrf.mxu1  ;;  %v2885_v62 = vadd.f32 %v2866_v21, %v5291_v49  ;;  %v2875_v49 = vadd.f32 %v2803_v1, %v5318_v40  ;;  %v3030_v40 = vrot.slane %v3593_v42, 1 }
 0x945   :  { %v2884_v24 = vadd.f32 %v2815_v26, %v5272_v36  ;;  %v2868_v25 = vpop.f32.mrf.mxu0  ;;  %v2891_v36 = vpack.c.bf16 %v2883_v43, %v2879_v51 }
 0x946   :  { %v2886_v3 = vadd.f32 %v2868_v25, %v5275_v18  ;;  %v2893_v11 = vpack.c.bf16 %v2885_v62, %v2881_v12  ;;  %v2890_v18 = vpack.c.bf16 %v2878_v27, %v2874_v19  ;;  %v2887_v29 = vpack.c.bf16 %v2875_v49, %v2871_v61  ;;  %v3005_v19 = vpop.permute.xlu0 %3004 }
 0x947   :  { %v2892_v17 = vpack.c.bf16 %v2884_v24, %v2880_v53 }
 0x948   :  { %v2894_v41 = vpack.c.bf16 %v2886_v3, %v2882_v50 }
 0x949   :  { %2907 = vmatprep.subr.bf16.mxu1 %v2892_v17 }
 0x94a   :  { %2948 = vmatprep.subr.bf16.mxu0 %v2894_v41  ;;  %2908 = vmatpush1.bf16.msra.mxu1 %v2891_v36 }
 0x94b   :  { %2949 = vmatpush1.bf16.msra.mxu0 %v2893_v11  ;;  %2909 = vmatprep.subr.bf16.mxu1 %v2888_v14 }
 0x94c   :  { %2950 = vmatprep.subr.bf16.mxu0 %v2890_v18 }
 0x94e   :  { %2910 = vmatpush1.bf16.msra.mxu1 %v2887_v29 }
 0x94f   :  { %2951 = vmatpush1.bf16.msra.mxu0 %v2889_v39  ;;  %3594 = vmatprep.subr.msk.bf16.mxu1 %vm1000_vm2, %v3028_v10 }
 0x950   :  { %3597 = vmatprep.subr.msk.bf16.mxu0 %vm1000_vm2, %v3030_v40 }
 0x951   :  { %3586 = vmatmul.mubr.msk.bf16.vlgmr.msra.gmra.mxu1 %vm1274_vm5, %v5312_v28 }
 0x952   :  { %3587 = vmatmul.mubr.msk.bf16.vlgmr.msra.gmra.mxu0 %vm1274_vm5, %v5312_v28  ;;  %3065 = vmatpush1.bf16.msra.mxu1 %v3039_v54  ;;  %v3664_v28 = vld [vmem:[%s5537_s3 + $0x70] sm:$0xff]  }
 0x953   :  { %3118 = vmatpush1.bf16.msra.mxu0 %v3045_v23  ;;  %3082 = vmatprep.mubr.bf16.mxu1 %v5638_v59 }
 0x954   :  { %3135 = vmatprep.mubr.bf16.mxu0 %v5638_v59 }
 0x959   :  { %3595 = vmatmul.mubr.msk.bf16.vlgmr.msra.gmra.mxu1 %vm3031_vm8, %v3663_v22 }
 0x95a   :  { %3598 = vmatmul.mubr.msk.bf16.vlgmr.msra.gmra.mxu0 %vm3031_vm8, %v3663_v22  ;;  %3092 = vmatprep.mubr.bf16.mxu1 %v5638_v59 }
 0x95b   :  { %3145 = vmatprep.mubr.bf16.mxu0 %v5638_v59 }
 0x961   :  { %3596 = vmatmul.mubr.msk.bf16.gmra.mxu1 %vm3031_vm8, %v3664_v28 }
 0x962   :  { %3599 = vmatmul.mubr.msk.bf16.gmra.mxu0 %vm3031_vm8, %v3664_v28  ;;  %3312 = vmatprep.mubr.bf16.mxu1 %v5638_v59 }
 0x963   :  { %3353 = vmatprep.mubr.bf16.mxu0 %v5638_v59 }
 0xa11   :  { %v5439_v20 = vpop.f32.mrf.mxu1 }
 0xa12   :  { %v5441_v52 = vpop.f32.mrf.mxu0 }
 0xa13   :  { %v5443_v37 = vpop.f32.mrf.mxu1 }
 0xa14   :  { %v5445_v5 = vpop.f32.mrf.mxu0 }
 0xa15   :  { %v2933_v38 = vpop.f32.mrf.mxu1 }
 0xa16   :  { %v2974_v47 = vpop.f32.mrf.mxu0 }
 0xa17   :  { %v2934_v35 = vpop.f32.mrf.mxu1 }
 0xa18   :  { %v2975_v1 = vpop.f32.mrf.mxu0 }
 0xa19   :  { %v3084_v46 = vpop.f32.mrf.mxu1 }
 0xa1a   :  { %v5447_v4 = vadd.f32 %v3084_v46, %v2990_v48  ;;  %v3137_v0 = vpop.f32.mrf.mxu0 }
 0xa1b   :  { %v5449_v13 = vadd.f32 %v3137_v0, %v2990_v48  ;;  %v3086_v59 = vpop.f32.mrf.mxu1 }
 0xa1c   :  { %v3600_v55 = vmul.f32 -1.442695, %v5447_v4  ;;  %v5452_v7 = vadd.f32 %v3086_v59, %v2990_v48  ;;  %v3139_v58 = vpop.f32.mrf.mxu0 }
 0xa1d   :  { %v3602_v56 = vmul.f32 -1.442695, %v5449_v13  ;;  %v5455_v63 = vadd.f32 %v3139_v58, %v2990_v48  ;;  %v3088_v21 = vpop.f32.mrf.mxu1 }
 0xa1e   :  { %4081 = vpow2.f32 %v3600_v55  ;;  %v3601_v43 = vmul.f32 -1.442695, %v5452_v7  ;;  %v5458_v26 = vadd.f32 %v3088_v21, %v2995_v8  ;;  %v3141_v45 = vpop.f32.mrf.mxu0 }
 0xa1f   :  { %4083 = vpow2.f32 %v3602_v56  ;;  %v3603_v42 = vmul.f32 -1.442695, %v5455_v63  ;;  %v5461_v30 = vadd.f32 %v3141_v45, %v2995_v8  ;;  %v3090_v57 = vpop.f32.mrf.mxu1 }
 0xa20   :  { %4085 = vpow2.f32 %v3601_v43  ;;  %v3604_v53 = vmul.f32 -1.442695, %v5458_v26  ;;  %v5464_v62 = vadd.f32 %v3090_v57, %v2995_v8  ;;  %v3143_v24 = vpop.f32.mrf.mxu0 }
 0xa21   :  { %4087 = vpow2.f32 %v3603_v42  ;;  %v3606_v25 = vmul.f32 -1.442695, %v5461_v30  ;;  %v5467_v27 = vadd.f32 %v3143_v24, %v2995_v8  ;;  %v3094_v51 = vpop.f32.mrf.mxu1 }
 0xa22   :  { %4089 = vpow2.f32 %v3604_v53  ;;  %v3605_v50 = vmul.f32 -1.442695, %v5464_v62  ;;  %v5470_v3 = vadd.f32 %v3094_v51, %v3000_v44  ;;  %v3147_v60 = vpop.f32.mrf.mxu0 }
 0xa23   :  { %4091 = vpow2.f32 %v3606_v25  ;;  %v3607_v12 = vmul.f32 -1.442695, %v5467_v27  ;;  %v5473_v17 = vadd.f32 %v3147_v60, %v3000_v44  ;;  %v3096_v16 = vpop.f32.mrf.mxu1 }
 0xa24   :  { %4093 = vpow2.f32 %v3605_v50  ;;  %v3608_v49 = vmul.f32 -1.442695, %v5470_v3  ;;  %v5476_v36 = vadd.f32 %v3096_v16, %v3000_v44  ;;  %v3149_v41 = vpop.f32.mrf.mxu0 }
 0xa25   :  { %4095 = vpow2.f32 %v3607_v12  ;;  %v3610_v31 = vmul.f32 -1.442695, %v5473_v17  ;;  %v5479_v14 = vadd.f32 %v3149_v41, %v3000_v44  ;;  %v3098_v11 = vpop.f32.mrf.mxu1 }
 0xa26   :  { %4097 = vpow2.f32 %v3608_v49  ;;  %v3609_v61 = vmul.f32 -1.442695, %v5476_v36  ;;  %v5482_v18 = vadd.f32 %v3098_v11, %v3005_v19  ;;  %v3151_v2 = vpop.f32.mrf.mxu0 }
 0xa27   :  { %4099 = vpow2.f32 %v3610_v31  ;;  %v3611_v10 = vmul.f32 -1.442695, %v5479_v14  ;;  %v5485_v15 = vadd.f32 %v3151_v2, %v3005_v19  ;;  %v3100_v29 = vpop.f32.mrf.mxu1 }
 0xa28   :  { %4101 = vpow2.f32 %v3609_v61  ;;  %v3612_v40 = vmul.f32 -1.442695, %v5482_v18  ;;  %v5488_v6 = vadd.f32 %v3100_v29, %v3005_v19  ;;  %v3153_v39 = vpop.f32.mrf.mxu0 }
 0xa29   :  { %4103 = vpow2.f32 %v3611_v10  ;;  %v3614_v54 = vmul.f32 -1.442695, %v5485_v15  ;;  %v5491_v23 = vadd.f32 %v3153_v39, %v3005_v19 }
 0xa2a   :  { %4105 = vpow2.f32 %v3612_v40  ;;  %v3613_v22 = vmul.f32 -1.442695, %v5488_v6 }
 0xa2b   :  { %v4082_v28 = vpop.eup %4081  ;;  %4107 = vpow2.f32 %v3614_v54  ;;  %v3615_v44 = vmul.f32 -1.442695, %v5491_v23 }
 0xa2c   :  { %v4084_v38 = vpop.eup %4083  ;;  %4109 = vpow2.f32 %v3613_v22  ;;  %v3204_v31 = vadd.f32 1.0, %v4082_v28 }
 0xa2d   :  { %v4086_v47 = vpop.eup %4085  ;;  %4111 = vpow2.f32 %v3615_v44  ;;  %v3206_v61 = vadd.f32 1.0, %v4084_v38 }
 0xa2e   :  { %v4088_v48 = vpop.eup %4087  ;;  %v3205_v35 = vadd.f32 1.0, %v4086_v47 }
 0xa2f   :  { %v4090_v1 = vpop.eup %4089  ;;  %v3207_v46 = vadd.f32 1.0, %v4088_v48 }
 0xa30   :  { %v4092_v0 = vpop.eup %4091  ;;  %v3208_v59 = vadd.f32 1.0, %v4090_v1  ;;  %4113 = vrcp.f32 %v3205_v35 }
 0xa31   :  { %v4094_v55 = vpop.eup %4093  ;;  %4115 = vrcp.f32 %v3207_v46  ;;  %v3210_v49 = vadd.f32 1.0, %v4092_v0 }
 0xa32   :  { %v4096_v58 = vpop.eup %4095  ;;  %v3209_v8 = vadd.f32 1.0, %v4094_v55  ;;  %4117 = vrcp.f32 %v3208_v59 }
 0xa33   :  { %v4098_v56 = vpop.eup %4097  ;;  %v3211_v21 = vadd.f32 1.0, %v4096_v58 }
 0xa34   :  { %v4100_v43 = vpop.eup %4099  ;;  %4119 = vrcp.f32 %v3209_v8  ;;  %v3212_v45 = vadd.f32 1.0, %v4098_v56 }
 0xa35   :  { %v4102_v42 = vpop.eup %4101  ;;  %4121 = vrcp.f32 %v3211_v21  ;;  %v3214_v57 = vadd.f32 1.0, %v4100_v43 }
 0xa36   :  { %v4104_v53 = vpop.eup %4103  ;;  %4123 = vrcp.f32 %v3212_v45  ;;  %v3213_v24 = vadd.f32 1.0, %v4102_v42 }
 0xa37   :  { %v4106_v25 = vpop.eup %4105  ;;  %4125 = vrcp.f32 %v3214_v57  ;;  %v3215_v51 = vadd.f32 1.0, %v4104_v53 }
 0xa38   :  { %v4108_v50 = vpop.eup %4107  ;;  %4127 = vrcp.f32 %v3213_v24  ;;  %v3216_v60 = vadd.f32 1.0, %v4106_v25 }
 0xa39   :  { %v4110_v12 = vpop.eup %4109  ;;  %4129 = vrcp.f32 %v3215_v51  ;;  %v3218_v16 = vadd.f32 1.0, %v4108_v50 }
 0xa3a   :  { %v4112_v19 = vpop.eup %4111  ;;  %4131 = vrcp.f32 %v3216_v60  ;;  %v3217_v41 = vadd.f32 1.0, %v4110_v12 }
 0xa3b   :  { %4133 = vrcp.f32 %v3218_v16  ;;  %v3219_v11 = vadd.f32 1.0, %v4112_v19 }
 0xa3c   :  { %4135 = vrcp.f32 %v3217_v41 }
 0xa3d   :  { %4137 = vrcp.f32 %v3219_v11  ;;  %v4114_v2 = vpop.eup %4113 }
 0xa3e   :  { %4139 = vrcp.f32 %v3210_v49  ;;  %v4116_v10 = vpop.eup %4115 }
 0xa3f   :  { %4141 = vrcp.f32 %v3204_v31  ;;  %v4118_v29 = vpop.eup %4117 }
 0xa40   :  { %4143 = vrcp.f32 %v3206_v61 }
 0xa41   :  { %v4120_v40 = vpop.eup %4119 }
 0xa42   :  { %v4122_v39 = vpop.eup %4121  ;;  %v3257_v46 = vmul.f32 %v4120_v40, %v5464_v62 }
 0xa43   :  { %v4124_v54 = vpop.eup %4123  ;;  %v3259_v8 = vmul.f32 %v4122_v39, %v5467_v27 }
 0xa44   :  { %v4126_v22 = vpop.eup %4125  ;;  %v3260_v56 = vmul.f32 %v4124_v54, %v5470_v3 }
 0xa45   :  { %v4128_v44 = vpop.eup %4127  ;;  %v3262_v62 = vmul.f32 %v4126_v22, %v5473_v17 }
 0xa46   :  { %v4130_v47 = vpop.eup %4129  ;;  %v3261_v0 = vmul.f32 %v4128_v44, %v5476_v36 }
 0xa47   :  { %v4132_v48 = vpop.eup %4131  ;;  %v3263_v21 = vmul.f32 %v4130_v47, %v5479_v14 }
 0xa48   :  { %v4134_v35 = vpop.eup %4133  ;;  %v3264_v1 = vmul.f32 %v4132_v48, %v5482_v18  ;;  %v3253_v18 = vmul.f32 %v4114_v2, %v5452_v7 }
 0xa49   :  { %v4136_v28 = vpop.eup %4135  ;;  %v3266_v59 = vmul.f32 %v4134_v35, %v5485_v15  ;;  %v3255_v15 = vmul.f32 %v4116_v10, %v5455_v63 }
 0xa4a   :  { %v4138_v38 = vpop.eup %4137  ;;  %v3265_v55 = vmul.f32 %v4136_v28, %v5488_v6  ;;  %v3256_v6 = vmul.f32 %v4118_v29, %v5458_v26  ;;  %v3273_v57 = vpack.c.bf16 %v3264_v1, %v3260_v56  ;;  %v3270_v14 = vpack.c.bf16 %v3257_v46, %v3253_v18  ;;  %v3268_v26 = vld [vmem:[%s5537_s3 + $0x78] sm:$0x3] }
 0xa4b   :  { %v4140_v58 = vpop.eup %4139  ;;  %v3267_v43 = vmul.f32 %v4138_v38, %v5491_v23  ;;  %v3275_v3 = vpack.c.bf16 %v3266_v59, %v3262_v62  ;;  %v3272_v7 = vpack.c.bf16 %v3259_v8, %v3255_v15 }
 0xa4c   :  { %v4142_v45 = vpop.eup %4141  ;;  %v3274_v42 = vpack.c.bf16 %v3265_v55, %v3261_v0  ;;  %v3258_v27 = vmul.f32 %v4140_v58, %v5461_v30 }
 0xa4d   :  { %v4144_v36 = vpop.eup %4143  ;;  %v3276_v53 = vpack.c.bf16 %v3267_v43, %v3263_v21  ;;  %v3252_v23 = vmul.f32 %v4142_v45, %v5447_v4  ;;  %v2084_v4 = vpop.permute.xlu1 %2083 }
 0xa4e   :  { %3292 = vmatprep.subr.bf16.mxu1 %v3274_v42  ;;  %v3254_v17 = vmul.f32 %v4144_v36, %v5449_v13  ;;  %v2124_v25 = vadd.f32 %v5356_v32, %v2084_v4  ;;  %v2165_v13 = vadd.f32 %v5358_v9, %v2084_v4  ;;  %v2126_v51 = vadd.f32 %v5360_v34, %v2084_v4 }
 0xa4f   :  { %3333 = vmatprep.subr.bf16.mxu0 %v3276_v53  ;;  %3293 = vmatpush1.bf16.msra.mxu1 %v3273_v57  ;;  %v3269_v24 = vpack.c.bf16 %v3256_v6, %v3252_v23  ;;  %v2167_v50 = vadd.f32 %v5362_v33, %v2084_v4  ;;  %v2930_v12 = vadd.f32 %v5439_v20, %v2084_v4 }
 0xa50   :  { %3334 = vmatpush1.bf16.msra.mxu0 %v3275_v3  ;;  %3294 = vmatprep.subr.bf16.mxu1 %v3270_v14  ;;  %v3271_v63 = vpack.c.bf16 %v3258_v27, %v3254_v17  ;;  %v2971_v16 = vadd.f32 %v5441_v52, %v2084_v4  ;;  %v2932_v19 = vadd.f32 %v5443_v37, %v2084_v4 }
 0xa51   :  { %3335 = vmatprep.subr.bf16.mxu0 %v3272_v7  ;;  %v2973_v49 = vadd.f32 %v5445_v5, %v2084_v4 }
 0xa53   :  { %3295 = vmatpush1.bf16.msra.mxu1 %v3269_v24 }
 0xa54   :  { %3336 = vmatpush1.bf16.msra.mxu0 %v3271_v63 }
 0xa56   :  { %3616 = vmatmul.mubr.msk.bf16.vlgmr.msra.gmra.mxu1 %vm1274_vm5, %v3268_v26 }
 0xa57   :  { %3617 = vmatmul.mubr.msk.bf16.vlgmr.msra.gmra.mxu0 %vm1274_vm5, %v3268_v26 }
 0xb16   :  { %v3314_v30 = vpop.f32.mrf.mxu1 }
 0xb17   :  { %v3355_v60 = vpop.f32.mrf.mxu0  ;;  %v3362_v31 = vadd.f32 %v3314_v30, %v2124_v25  ;;  %v3364_v11 = vadd.f32 %v3314_v30, %v2165_v13 }
 0xb18   :  { %v3316_v41 = vpop.f32.mrf.mxu1  ;;  %v3366_v9 = vadd.f32 %v3355_v60, %v2930_v12  ;;  %v3368_v10 = vadd.f32 %v3355_v60, %v2971_v16 }
 0xb19   :  { %v3363_v61 = vadd.f32 %v3316_v41, %v2126_v51  ;;  %v3365_v32 = vadd.f32 %v3316_v41, %v2167_v50  ;;  %v3357_v2 = vpop.f32.mrf.mxu0 }
 0xb1a   :  { %v3367_v34 = vadd.f32 %v3357_v2, %v2932_v19  ;;  %v3369_v29 = vadd.f32 %v3357_v2, %v2973_v49  ;;  %v3318_v33 = vpop.f32.mrf.mxu1 }
 0xb1b   :  { %v3378_v40 = vcombine.low %v3362_v31, %v3363_v61  ;;  %v3379_v39 = vcombine.low %v3364_v11, %v3365_v32  ;;  %v3359_v20 = vpop.f32.mrf.mxu0 }
 0xb1c   :  { %v3380_v54 = vcombine.low %v3366_v9, %v3367_v34  ;;  %v3381_v52 = vcombine.low %v3368_v10, %v3369_v29  ;;  %v3319_v22 = vpop.f32.mrf.mxu1 }
 0xb1d   :  { %3386 = vst [vmem:[%s5541_s5] sm:$0xff] %v3378_v40  ;;  %3387 = vst [vmem:[%s5541_s5 + $0x8] sm:$0xff] %v3379_v39  ;;  %v3360_v37 = vpop.f32.mrf.mxu0 }
 0xb1e   :  { %3388 = vst [vmem:[%s5541_s5 + $0x10] sm:$0xff] %v3380_v54  ;;  %3389 = vst [vmem:[%s5541_s5 + $0x18] sm:$0xff] %v3381_v52 }

</bundles_post_ra>
